<compile_context>
chip_gen: v6e
topology: v6e:2x2x1
jax: 0.10.0
libtpu: 0.0.40
codegen_flags: <defaults>
</compile_context>

<pallas_src>
import functools

import jax
import jax.numpy as jnp
from jax import lax
from jax.experimental import pallas as pl
from jax.experimental.pallas import tpu as pltpu


# ----------------------------- Pallas conv kernel ----------------------------
def _conv_bn_act_kernel(x_ref, w_ref, b_ref, *rest, groups, th, ws, ow,
                        relu, fuse_res):
    """Direct NHWC conv + BN bias + optional residual + optional ReLU.

    x_ref : (1, Hs, Ws, Cin)   bf16  phase-split, padded input (whole image)
    w_ref : (KH, KW, Cin, TN)  bf16  BN scale already folded in
    b_ref : (1, TN)            f32   BN bias
    rest  : ([res_ref (1, th*ow, TN)], out_ref (1, th*ow, TN))

    `groups` is a static tuple of (c0, ((row_base, dh, dw), ...)): taps grouped
    by their column offset c0 inside the phase block.  Row offsets are cheap
    dynamic slices along the untiled H axis; the column shift is applied once
    per group on the f32 partial result (no per-tap input repack).
    """
    if fuse_res:
        r_ref, o_ref = rest
    else:
        (o_ref,) = rest
    tn = o_ref.shape[-1]
    t = pl.program_id(2)                       # output-row tile index
    row0 = t * th
    L = th * ws

    acc = jnp.zeros((th * ow, tn), jnp.float32)
    for c0, taps in groups:
        part = jnp.zeros((L, tn), jnp.float32)
        for rbase, dh, dw in taps:
            slab = x_ref[0, pl.ds(row0 + rbase, th), :, :]     # (th, Ws, Cin)
            a = slab.reshape(L, slab.shape[-1])                # Ws % 16 == 0
            part = part + jnp.dot(a, w_ref[dh, dw],
                                  preferred_element_type=jnp.float32)
        # one column-shift + dense extraction per group (<= KW per tile)
        acc = acc + part.reshape(th, ws, tn)[:, c0:c0 + ow, :].reshape(
            th * ow, tn)

    y = acc + b_ref[...]                                       # bias, f32
    if fuse_res:
        y = y + r_ref[0].astype(jnp.float32)                   # residual add
    if relu:
        y = jnp.maximum(y, 0.0)
    o_ref[0] = y.astype(o_ref.dtype)                           # dense store


# --------------------------------- helpers ------------------------------------
def _phase_split(x, stride, pad):
    """NHWC -> (B, s*s*hph, wph, C); wph padded to a multiple of 16 so the
    in-kernel (th, wph, C) -> (th*wph, C) reshape needs no relayout and the
    kernel never issues strided loads."""
    B, H, W, C = x.shape
    s = stride
    Hp, Wp = H + 2 * pad, W + 2 * pad
    hph = -(-Hp // s)
    wph = -(-Wp // s)
    wph = -(-wph // 16) * 16
    Hp2, Wp2 = hph * s, wph * s
    x = jnp.pad(x, ((0, 0), (pad, Hp2 - H - pad), (pad, Wp2 - W - pad), (0, 0)))
    x = x.reshape(B, hph, s, wph, s, C).transpose(0, 2, 4, 1, 3, 5)
    return x.reshape(B, s * s * hph, wph, C), hph, wph


def _pick_tn(oc):
    """OC tile: 128 on v5e (128x128 MXU / single vst slot), else 256."""
    try:
        kind = jax.devices()[0].device_kind.lower()
    except Exception:
        kind = ""
    pref = 128 if ("v5 lite" in kind or "v5lite" in kind or "v5e" in kind) else 256
    for cand in (pref, 256, 128):
        if oc % cand == 0:
            return cand
    return oc


def _pick_th(oh, ow, target=16):
    """Output-row tile: divisor of OH, <= target, keeping th*ow % 8 == 0."""
    for cand in range(min(oh, target), 0, -1):
        if oh % cand == 0 and (cand == oh or (cand * ow) % 8 == 0):
            return cand
    return oh


def conv_bn_act(x, wf, bias, *, stride=1, pad=0, relu=False, residual=None,
                out_dtype=jnp.bfloat16):
    """y = maybe_relu(conv(x)*scale + bias [+ residual]); NHWC in / NHWC out.

    wf   : (KH, KW, Cin, OC) bf16, BN scale pre-folded (see fold_conv_bn).
    bias : (1, OC) f32.
    """
    B, H, W, Cin = x.shape
    KH, KW, _, OC = wf.shape
    OH = (H + 2 * pad - KH) // stride + 1
    OW = (W + 2 * pad - KW) // stride + 1

    xs, hph, wph = _phase_split(x.astype(jnp.bfloat16), stride, pad)
    Hs = stride * stride * hph

    # Taps grouped by their column offset inside a phase block.
    grp = {}
    for dh in range(KH):
        for dw in range(KW):
            c0 = dw // stride
            rbase = ((dh % stride) * stride + (dw % stride)) * hph + dh // stride
            grp.setdefault(c0, []).append((rbase, dh, dw))
    groups = tuple(sorted((c0, tuple(t)) for c0, t in grp.items()))
    assert max(grp) + OW <= wph, "column shift would leave the padded slab"

    tn = _pick_tn(OC)
    th = _pick_th(OH, OW)
    nb, nt = OC // tn, OH // th

    # Grid order: keep whichever operand causes more HBM re-fetch resident.
    w_bytes = KH * KW * Cin * OC * 2
    a_bytes = Hs * wph * Cin * 2
    weights_outer = (B - 1) * w_bytes > (nb - 1) * B * a_bytes
    if weights_outer:
        grid = (nb, B, nt)
        x_map = lambda n, b, t: (b, 0, 0, 0)
        w_map = lambda n, b, t: (0, 0, 0, n)
        s_map = lambda n, b, t: (0, n)
        o_map = lambda n, b, t: (b, t, n)
    else:
        grid = (B, nb, nt)
        x_map = lambda b, n, t: (b, 0, 0, 0)
        w_map = lambda b, n, t: (0, 0, 0, n)
        s_map = lambda b, n, t: (0, n)
        o_map = lambda b, n, t: (b, t, n)

    in_specs = [
        pl.BlockSpec((1, Hs, wph, Cin), x_map),
        pl.BlockSpec((KH, KW, Cin, tn), w_map),
        pl.BlockSpec((1, tn), s_map),
    ]
    inputs = [xs, wf, bias]
    if residual is not None:
        res = residual.reshape(B, OH * OW, OC).astype(jnp.bfloat16)
        in_specs.append(pl.BlockSpec((1, th * OW, tn), o_map))
        inputs.append(res)

    kernel = functools.partial(
        _conv_bn_act_kernel, groups=groups, th=th, ws=wph, ow=OW,
        relu=relu, fuse_res=residual is not None)

    out_isz = jnp.dtype(out_dtype).itemsize
    blk = (Hs * wph * Cin * 2 + KH * KW * Cin * tn * 2 + tn * 4
           + th * OW * tn * out_isz
           + (th * OW * tn * 2 if residual is not None else 0))
    vmem_limit = int(min(max(4 * blk, 32 << 20), 64 << 20))

    out = pl.pallas_call(
        kernel,
        out_shape=jax.ShapeDtypeStruct((B, OH * OW, OC), out_dtype),
        grid_spec=pltpu.PrefetchScalarGridSpec(
            num_scalar_prefetch=0,
            grid=grid,
            in_specs=in_specs,
            out_specs=pl.BlockSpec((1, th * OW, tn), o_map),
        ),
        compiler_params=pltpu.CompilerParams(
            dimension_semantics=("parallel", "parallel", "parallel"),
            vmem_limit_bytes=vmem_limit),
    )(*inputs)
    return out.reshape(B, OH, OW, OC)


# -------------------------- parameter prep (one-time) --------------------------
def fold_conv_bn(w, bn, eps=1e-5):
    """Fold inference-mode BN into the conv.  Returns (wf bf16 (KH,KW,Cin,OC),
    bias f32 (1, OC)).  Hoisted out of the per-forward path."""
    gamma, beta, mean, var = bn
    scale = gamma * lax.rsqrt(var + eps)
    wf = (w * scale[:, None, None, None]).transpose(2, 3, 1, 0)
    wf = wf.astype(jnp.bfloat16)
    bias = (beta - mean * scale).reshape(1, -1).astype(jnp.float32)
    # NOTE: folding BN scale into bf16 weights costs a little mantissa; fold it
    # into the f32 epilogue instead if tighter accuracy is ever required.
    return wf, bias


def prepare_basic_block(p):
    q = {'stride': p['stride']}
    q['w1'], q['b1'] = fold_conv_bn(p['w1'], p['bn1'])
    q['w2'], q['b2'] = fold_conv_bn(p['w2'], p['bn2'])
    if 'wd' in p:
        q['wd'], q['bd'] = fold_conv_bn(p['wd'], p['bnd'])
    return q


# --------------------------- BasicBlock (expansion=1) -------------------------
def basic_block_nhwc(q, x):
    """relu(bn2(conv2(relu(bn1(conv1(x))))) + downsample(x)); NHWC in/out."""
    y = conv_bn_act(x, q['w1'], q['b1'], stride=q['stride'], pad=1, relu=True)
    if 'wd' in q:                                  # 1x1 downsample conv + BN
        idn = conv_bn_act(x, q['wd'], q['bd'], stride=q['stride'], pad=0,
                          relu=False)
    else:
        idn = x
    # Residual add + final ReLU fused into the second conv's epilogue.
    return conv_bn_act(y, q['w2'], q['b2'], stride=1, pad=1, relu=True,
                       residual=idn)


# -------------------------------- parameters ----------------------------------
def init_block_params(key, in_c, out_c, stride):
    ks = jax.random.split(key, 6)

    def conv_w(k, oc, ic, ksz):                    # kaiming_normal_, fan_out
        std = (2.0 / (oc * ksz * ksz)) ** 0.5
        return jax.random.normal(k, (oc, ic, ksz, ksz), jnp.float32) * std

    def bn(k, c):                                  # (gamma, beta, mean, var)
        k1, k2, k3, k4 = jax.random.split(k, 4)
        return (0.5 + jax.random.uniform(k1, (c,), jnp.float32),
                0.1 * jax.random.normal(k2, (c,), jnp.float32),
                0.1 * jax.random.normal(k3, (c,), jnp.float32),
                0.5 + jax.random.uniform(k4, (c,), jnp.float32))

    p = {'w1': conv_w(ks[0], out_c, in_c, 3), 'bn1': bn(ks[1], out_c),
         'w2': conv_w(ks[2], out_c, out_c, 3), 'bn2': bn(ks[3], out_c),
         'stride': stride}
    if stride != 1 or in_c != out_c:
        p['wd'] = conv_w(ks[4], out_c, in_c, 1)
        p['bnd'] = bn(ks[5], out_c)
    return p


# ------------------------- pure-JAX reference (NCHW) --------------------------
def _conv_ref(x, w, stride, pad):
    return lax.conv_general_dilated(
        x, w, (stride, stride), [(pad, pad), (pad, pad)],
        dimension_numbers=('NCHW', 'OIHW', 'NCHW'),
        precision=lax.Precision.HIGHEST)


def _bn_fold_ref(bn, eps=1e-5):
    gamma, beta, mean, var = bn
    scale = gamma * lax.rsqrt(var + eps)
    return scale, beta - mean * scale


def basic_block_ref(p, x):
    def affine(t, sb):
        s, b = sb
        return t * s[None, :, None, None] + b[None, :, None, None]

    y = jnp.maximum(affine(_conv_ref(x, p['w1'], p['stride'], 1),
                           _bn_fold_ref(p['bn1'])), 0.0)
    y = affine(_conv_ref(y, p['w2'], 1, 1), _bn_fold_ref(p['bn2']))
    if 'wd' in p:
        idn = affine(_conv_ref(x, p['wd'], p['stride'], 0),
                     _bn_fold_ref(p['bnd']))
    else:
        idn = x
    return jnp.maximum(y + idn, 0.0)


# ------------------------------------ main ------------------------------------
if __name__ == "__main__":
    key = jax.random.PRNGKey(0)
    kx, kp1, kp2 = jax.random.split(key, 3)

    # Small shapes: batch=2, 16x16 spatial, 64 -> 128 channels.
    x = jax.random.normal(kx, (2, 64, 16, 16), jnp.float32)
    p1 = init_block_params(kp1, 64, 128, 2)    # downsample path (stride 2)
    p2 = init_block_params(kp2, 128, 128, 1)   # identity path (stride 1)

    q1 = prepare_basic_block(p1)               # BN fold / weight prep hoisted
    q2 = prepare_basic_block(p2)

    @jax.jit
    def model(a_nchw):
        h = jnp.transpose(a_nchw, (0, 2, 3, 1))    # NHWC once at the boundary
        h = basic_block_nhwc(q1, h)
        h = basic_block_nhwc(q2, h)
        return jnp.transpose(h, (0, 3, 1, 2)).astype(jnp.float32)

    out = model(x)
    jax.block_until_ready(out)

    ref = basic_block_ref(p2, basic_block_ref(p1, x))
    err = float(jnp.max(jnp.abs(out - ref)) / (jnp.max(jnp.abs(ref)) + 1e-6))

    assert out.shape == (2, 128, 8, 8), out.shape
    assert bool(jnp.all(jnp.isfinite(out)))
    assert err < 0.05, f"relative error too large: {err}"
    print("KERNEL_OK")
</pallas_src>

<mosaic_0001>
module attributes {stable_mosaic.version = 11 : i64} {
  func.func @_conv_bn_act_kernel(%arg0: i32, %arg1: i32, %arg2: i32, %arg3: memref<1x32x16x64xbf16, #tpu.memory_space<vmem>>, %arg4: memref<1x1x64x128xbf16, #tpu.memory_space<vmem>>, %arg5: memref<1x128xf32, #tpu.memory_space<vmem>>, %arg6: memref<1x64x128xbf16, #tpu.memory_space<vmem>>) attributes {dimension_semantics = [#tpu.dimension_semantics<parallel>, #tpu.dimension_semantics<parallel>, #tpu.dimension_semantics<parallel>], iteration_bounds = array<i64: 1, 2, 1>, scalar_prefetch = 0 : i64, scratch_operands = 0 : i64, tpu.core_type = #tpu.core_type<tc>, window_params = [{transform_indices = @transform_0, window_bounds = array<i64: 1, 32, 16, 64>}, {transform_indices = @transform_1, window_bounds = array<i64: 1, 1, 64, 128>}, {transform_indices = @transform_2, window_bounds = array<i64: 1, 128>}, {transform_indices = @transform_3, window_bounds = array<i64: 1, 64, 128>}]} {
    %c8_i32 = arith.constant 8 : i32
    %0 = arith.muli %arg2, %c8_i32 : i32
    %cst = arith.constant 0.000000e+00 : f32
    %1 = vector.broadcast %cst : f32 to vector<64x128xf32>
    %cst_0 = arith.constant 0.000000e+00 : f32
    %2 = vector.broadcast %cst_0 : f32 to vector<128x128xf32>
    %c0_i32 = arith.constant 0 : i32
    %3 = arith.addi %0, %c0_i32 : i32
    %c0 = arith.constant 0 : index
    %4 = arith.index_cast %3 : i32 to index
    %c0_1 = arith.constant 0 : index
    %c0_2 = arith.constant 0 : index
    %5 = vector.load %arg3[%c0, %4, %c0_1, %c0_2] : memref<1x32x16x64xbf16, #tpu.memory_space<vmem>>, vector<1x8x16x64xbf16>
    %6 = vector.shape_cast %5 : vector<1x8x16x64xbf16> to vector<8x16x64xbf16>
    %7 = vector.shape_cast %6 : vector<8x16x64xbf16> to vector<128x64xbf16>
    %c0_3 = arith.constant 0 : index
    %c0_4 = arith.constant 0 : index
    %c0_5 = arith.constant 0 : index
    %c0_6 = arith.constant 0 : index
    %8 = vector.load %arg4[%c0_3, %c0_4, %c0_5, %c0_6] : memref<1x1x64x128xbf16, #tpu.memory_space<vmem>>, vector<1x1x64x128xbf16>
    %9 = vector.shape_cast %8 : vector<1x1x64x128xbf16> to vector<64x128xbf16>
    %cst_7 = arith.constant dense<0.000000e+00> : vector<128x128xf32>
    %10 = tpu.matmul %7, %9, %cst_7 {dimension_numbers = #tpu.dot_dimension_numbers<[1], [0], [0], [1], [0, 0, 1, 1], [], []>} : vector<128x64xbf16>, vector<64x128xbf16>, vector<128x128xf32> -> vector<128x128xf32>
    %11 = arith.addf %2, %10 : vector<128x128xf32>
    %12 = vector.shape_cast %11 : vector<128x128xf32> to vector<8x16x128xf32>
    %13 = vector.extract_strided_slice %12 {offsets = [0, 0, 0], sizes = [8, 8, 128], strides = [1, 1, 1]} : vector<8x16x128xf32> to vector<8x8x128xf32>
    %14 = vector.shape_cast %13 : vector<8x8x128xf32> to vector<64x128xf32>
    %15 = arith.addf %1, %14 : vector<64x128xf32>
    %c0_8 = arith.constant 0 : index
    %c0_9 = arith.constant 0 : index
    %16 = vector.load %arg5[%c0_8, %c0_9] : memref<1x128xf32, #tpu.memory_space<vmem>>, vector<1x128xf32>
    %17 = vector.broadcast %16 : vector<1x128xf32> to vector<64x128xf32>
    %18 = arith.addf %15, %17 : vector<64x128xf32>
    %19 = arith.truncf %18 : vector<64x128xf32> to vector<64x128xbf16>
    %c0_10 = arith.constant 0 : index
    %c0_11 = arith.constant 0 : index
    %c0_12 = arith.constant 0 : index
    %20 = vector.load %arg6[%c0_10, %c0_11, %c0_12] : memref<1x64x128xbf16, #tpu.memory_space<vmem>>, vector<1x64x128xbf16>
    %21 = vector.shape_cast %20 : vector<1x64x128xbf16> to vector<64x128xbf16>
    %22 = vector.shape_cast %19 : vector<64x128xbf16> to vector<1x64x128xbf16>
    tpu.vector_store %arg6[%c0_10, %c0_11, %c0_12], %22 {strides = array<i32>} : memref<1x64x128xbf16, #tpu.memory_space<vmem>>, vector<1x64x128xbf16>,
    return
  }
  func.func @transform_0(%arg0: i32, %arg1: i32, %arg2: i32) -> (i32, i32, i32, i32) {
    %c0_i32 = arith.constant 0 : i32
    %c0_i32_0 = arith.constant 0 : i32
    %c0_i32_1 = arith.constant 0 : i32
    %c0_i32_2 = arith.constant 0 : i32
    return %arg1, %c0_i32, %c0_i32_0, %c0_i32_1 : i32, i32, i32, i32
  }
  func.func @transform_1(%arg0: i32, %arg1: i32, %arg2: i32) -> (i32, i32, i32, i32) {
    %c0_i32 = arith.constant 0 : i32
    %c0_i32_0 = arith.constant 0 : i32
    %c0_i32_1 = arith.constant 0 : i32
    %c0_i32_2 = arith.constant 0 : i32
    return %c0_i32, %c0_i32_0, %c0_i32_1, %arg0 : i32, i32, i32, i32
  }
  func.func @transform_2(%arg0: i32, %arg1: i32, %arg2: i32) -> (i32, i32) {
    %c0_i32 = arith.constant 0 : i32
    %c0_i32_0 = arith.constant 0 : i32
    return %c0_i32, %arg0 : i32, i32
  }
  func.func @transform_3(%arg0: i32, %arg1: i32, %arg2: i32) -> (i32, i32, i32) {
    %c0_i32 = arith.constant 0 : i32
    return %arg1, %arg2, %arg0 : i32, i32, i32
  }
}

module attributes {stable_mosaic.version = 11 : i64} {
  func.func @_conv_bn_act_kernel(%arg0: i32, %arg1: i32, %arg2: i32, %arg3: memref<1x36x16x64xbf16, #tpu.memory_space<vmem>>, %arg4: memref<3x3x64x128xbf16, #tpu.memory_space<vmem>>, %arg5: memref<1x128xf32, #tpu.memory_space<vmem>>, %arg6: memref<1x64x128xbf16, #tpu.memory_space<vmem>>) attributes {dimension_semantics = [#tpu.dimension_semantics<parallel>, #tpu.dimension_semantics<parallel>, #tpu.dimension_semantics<parallel>], iteration_bounds = array<i64: 1, 2, 1>, scalar_prefetch = 0 : i64, scratch_operands = 0 : i64, tpu.core_type = #tpu.core_type<tc>, window_params = [{transform_indices = @transform_0, window_bounds = array<i64: 1, 36, 16, 64>}, {transform_indices = @transform_1, window_bounds = array<i64: 3, 3, 64, 128>}, {transform_indices = @transform_2, window_bounds = array<i64: 1, 128>}, {transform_indices = @transform_3, window_bounds = array<i64: 1, 64, 128>}]} {
    %c8_i32 = arith.constant 8 : i32
    %0 = arith.muli %arg2, %c8_i32 : i32
    %cst = arith.constant 0.000000e+00 : f32
    %1 = vector.broadcast %cst : f32 to vector<64x128xf32>
    %cst_0 = arith.constant 0.000000e+00 : f32
    %2 = vector.broadcast %cst_0 : f32 to vector<128x128xf32>
    %c0_i32 = arith.constant 0 : i32
    %3 = arith.addi %0, %c0_i32 : i32
    %c0 = arith.constant 0 : index
    %4 = arith.index_cast %3 : i32 to index
    %c0_1 = arith.constant 0 : index
    %c0_2 = arith.constant 0 : index
    %5 = vector.load %arg3[%c0, %4, %c0_1, %c0_2] : memref<1x36x16x64xbf16, #tpu.memory_space<vmem>>, vector<1x8x16x64xbf16>
    %6 = vector.shape_cast %5 : vector<1x8x16x64xbf16> to vector<8x16x64xbf16>
    %7 = vector.shape_cast %6 : vector<8x16x64xbf16> to vector<128x64xbf16>
    %c0_3 = arith.constant 0 : index
    %c0_4 = arith.constant 0 : index
    %c0_5 = arith.constant 0 : index
    %c0_6 = arith.constant 0 : index
    %8 = vector.load %arg4[%c0_3, %c0_4, %c0_5, %c0_6] : memref<3x3x64x128xbf16, #tpu.memory_space<vmem>>, vector<1x1x64x128xbf16>
    %9 = vector.shape_cast %8 : vector<1x1x64x128xbf16> to vector<64x128xbf16>
    %cst_7 = arith.constant dense<0.000000e+00> : vector<128x128xf32>
    %10 = tpu.matmul %7, %9, %cst_7 {dimension_numbers = #tpu.dot_dimension_numbers<[1], [0], [0], [1], [0, 0, 1, 1], [], []>} : vector<128x64xbf16>, vector<64x128xbf16>, vector<128x128xf32> -> vector<128x128xf32>
    %11 = arith.addf %2, %10 : vector<128x128xf32>
    %c9_i32 = arith.constant 9 : i32
    %12 = arith.addi %0, %c9_i32 : i32
    %c0_8 = arith.constant 0 : index
    %13 = arith.index_cast %12 : i32 to index
    %c0_9 = arith.constant 0 : index
    %c0_10 = arith.constant 0 : index
    %14 = vector.load %arg3[%c0_8, %13, %c0_9, %c0_10] : memref<1x36x16x64xbf16, #tpu.memory_space<vmem>>, vector<1x8x16x64xbf16>
    %15 = vector.shape_cast %14 : vector<1x8x16x64xbf16> to vector<8x16x64xbf16>
    %16 = vector.shape_cast %15 : vector<8x16x64xbf16> to vector<128x64xbf16>
    %c0_11 = arith.constant 0 : index
    %c1 = arith.constant 1 : index
    %c0_12 = arith.constant 0 : index
    %c0_13 = arith.constant 0 : index
    %17 = vector.load %arg4[%c0_11, %c1, %c0_12, %c0_13] : memref<3x3x64x128xbf16, #tpu.memory_space<vmem>>, vector<1x1x64x128xbf16>
    %18 = vector.shape_cast %17 : vector<1x1x64x128xbf16> to vector<64x128xbf16>
    %cst_14 = arith.constant dense<0.000000e+00> : vector<128x128xf32>
    %19 = tpu.matmul %16, %18, %cst_14 {dimension_numbers = #tpu.dot_dimension_numbers<[1], [0], [0], [1], [0, 0, 1, 1], [], []>} : vector<128x64xbf16>, vector<64x128xbf16>, vector<128x128xf32> -> vector<128x128xf32>
    %20 = arith.addf %11, %19 : vector<128x128xf32>
    %c18_i32 = arith.constant 18 : i32
    %21 = arith.addi %0, %c18_i32 : i32
    %c0_15 = arith.constant 0 : index
    %22 = arith.index_cast %21 : i32 to index
    %c0_16 = arith.constant 0 : index
    %c0_17 = arith.constant 0 : index
    %23 = vector.load %arg3[%c0_15, %22, %c0_16, %c0_17] : memref<1x36x16x64xbf16, #tpu.memory_space<vmem>>, vector<1x8x16x64xbf16>
    %24 = vector.shape_cast %23 : vector<1x8x16x64xbf16> to vector<8x16x64xbf16>
    %25 = vector.shape_cast %24 : vector<8x16x64xbf16> to vector<128x64xbf16>
    %c1_18 = arith.constant 1 : index
    %c0_19 = arith.constant 0 : index
    %c0_20 = arith.constant 0 : index
    %c0_21 = arith.constant 0 : index
    %26 = vector.load %arg4[%c1_18, %c0_19, %c0_20, %c0_21] : memref<3x3x64x128xbf16, #tpu.memory_space<vmem>>, vector<1x1x64x128xbf16>
    %27 = vector.shape_cast %26 : vector<1x1x64x128xbf16> to vector<64x128xbf16>
    %cst_22 = arith.constant dense<0.000000e+00> : vector<128x128xf32>
    %28 = tpu.matmul %25, %27, %cst_22 {dimension_numbers = #tpu.dot_dimension_numbers<[1], [0], [0], [1], [0, 0, 1, 1], [], []>} : vector<128x64xbf16>, vector<64x128xbf16>, vector<128x128xf32> -> vector<128x128xf32>
    %29 = arith.addf %20, %28 : vector<128x128xf32>
    %c27_i32 = arith.constant 27 : i32
    %30 = arith.addi %0, %c27_i32 : i32
    %c0_23 = arith.constant 0 : index
    %31 = arith.index_cast %30 : i32 to index
    %c0_24 = arith.constant 0 : index
    %c0_25 = arith.constant 0 : index
    %32 = vector.load %arg3[%c0_23, %31, %c0_24, %c0_25] : memref<1x36x16x64xbf16, #tpu.memory_space<vmem>>, vector<1x8x16x64xbf16>
    %33 = vector.shape_cast %32 : vector<1x8x16x64xbf16> to vector<8x16x64xbf16>
    %34 = vector.shape_cast %33 : vector<8x16x64xbf16> to vector<128x64xbf16>
    %c1_26 = arith.constant 1 : index
    %c1_27 = arith.constant 1 : index
    %c0_28 = arith.constant 0 : index
    %c0_29 = arith.constant 0 : index
    %35 = vector.load %arg4[%c1_26, %c1_27, %c0_28, %c0_29] : memref<3x3x64x128xbf16, #tpu.memory_space<vmem>>, vector<1x1x64x128xbf16>
    %36 = vector.shape_cast %35 : vector<1x1x64x128xbf16> to vector<64x128xbf16>
    %cst_30 = arith.constant dense<0.000000e+00> : vector<128x128xf32>
    %37 = tpu.matmul %34, %36, %cst_30 {dimension_numbers = #tpu.dot_dimension_numbers<[1], [0], [0], [1], [0, 0, 1, 1], [], []>} : vector<128x64xbf16>, vector<64x128xbf16>, vector<128x128xf32> -> vector<128x128xf32>
    %38 = arith.addf %29, %37 : vector<128x128xf32>
    %c1_i32 = arith.constant 1 : i32
    %39 = arith.addi %0, %c1_i32 : i32
    %c0_31 = arith.constant 0 : index
    %40 = arith.index_cast %39 : i32 to index
    %c0_32 = arith.constant 0 : index
    %c0_33 = arith.constant 0 : index
    %41 = vector.load %arg3[%c0_31, %40, %c0_32, %c0_33] : memref<1x36x16x64xbf16, #tpu.memory_space<vmem>>, vector<1x8x16x64xbf16>
    %42 = vector.shape_cast %41 : vector<1x8x16x64xbf16> to vector<8x16x64xbf16>
    %43 = vector.shape_cast %42 : vector<8x16x64xbf16> to vector<128x64xbf16>
    %c2 = arith.constant 2 : index
    %c0_34 = arith.constant 0 : index
    %c0_35 = arith.constant 0 : index
    %c0_36 = arith.constant 0 : index
    %44 = vector.load %arg4[%c2, %c0_34, %c0_35, %c0_36] : memref<3x3x64x128xbf16, #tpu.memory_space<vmem>>, vector<1x1x64x128xbf16>
    %45 = vector.shape_cast %44 : vector<1x1x64x128xbf16> to vector<64x128xbf16>
    %cst_37 = arith.constant dense<0.000000e+00> : vector<128x128xf32>
    %46 = tpu.matmul %43, %45, %cst_37 {dimension_numbers = #tpu.dot_dimension_numbers<[1], [0], [0], [1], [0, 0, 1, 1], [], []>} : vector<128x64xbf16>, vector<64x128xbf16>, vector<128x128xf32> -> vector<128x128xf32>
    %47 = arith.addf %38, %46 : vector<128x128xf32>
    %c10_i32 = arith.constant 10 : i32
    %48 = arith.addi %0, %c10_i32 : i32
    %c0_38 = arith.constant 0 : index
    %49 = arith.index_cast %48 : i32 to index
    %c0_39 = arith.constant 0 : index
    %c0_40 = arith.constant 0 : index
    %50 = vector.load %arg3[%c0_38, %49, %c0_39, %c0_40] : memref<1x36x16x64xbf16, #tpu.memory_space<vmem>>, vector<1x8x16x64xbf16>
    %51 = vector.shape_cast %50 : vector<1x8x16x64xbf16> to vector<8x16x64xbf16>
    %52 = vector.shape_cast %51 : vector<8x16x64xbf16> to vector<128x64xbf16>
    %c2_41 = arith.constant 2 : index
    %c1_42 = arith.constant 1 : index
    %c0_43 = arith.constant 0 : index
    %c0_44 = arith.constant 0 : index
    %53 = vector.load %arg4[%c2_41, %c1_42, %c0_43, %c0_44] : memref<3x3x64x128xbf16, #tpu.memory_space<vmem>>, vector<1x1x64x128xbf16>
    %54 = vector.shape_cast %53 : vector<1x1x64x128xbf16> to vector<64x128xbf16>
    %cst_45 = arith.constant dense<0.000000e+00> : vector<128x128xf32>
    %55 = tpu.matmul %52, %54, %cst_45 {dimension_numbers = #tpu.dot_dimension_numbers<[1], [0], [0], [1], [0, 0, 1, 1], [], []>} : vector<128x64xbf16>, vector<64x128xbf16>, vector<128x128xf32> -> vector<128x128xf32>
    %56 = arith.addf %47, %55 : vector<128x128xf32>
    %57 = vector.shape_cast %56 : vector<128x128xf32> to vector<8x16x128xf32>
    %58 = vector.extract_strided_slice %57 {offsets = [0, 0, 0], sizes = [8, 8, 128], strides = [1, 1, 1]} : vector<8x16x128xf32> to vector<8x8x128xf32>
    %59 = vector.shape_cast %58 : vector<8x8x128xf32> to vector<64x128xf32>
    %60 = arith.addf %1, %59 : vector<64x128xf32>
    %cst_46 = arith.constant 0.000000e+00 : f32
    %61 = vector.broadcast %cst_46 : f32 to vector<128x128xf32>
    %c0_i32_47 = arith.constant 0 : i32
    %62 = arith.addi %0, %c0_i32_47 : i32
    %c0_48 = arith.constant 0 : index
    %63 = arith.index_cast %62 : i32 to index
    %c0_49 = arith.constant 0 : index
    %c0_50 = arith.constant 0 : index
    %64 = vector.load %arg3[%c0_48, %63, %c0_49, %c0_50] : memref<1x36x16x64xbf16, #tpu.memory_space<vmem>>, vector<1x8x16x64xbf16>
    %65 = vector.shape_cast %64 : vector<1x8x16x64xbf16> to vector<8x16x64xbf16>
    %66 = vector.shape_cast %65 : vector<8x16x64xbf16> to vector<128x64xbf16>
    %c0_51 = arith.constant 0 : index
    %c2_52 = arith.constant 2 : index
    %c0_53 = arith.constant 0 : index
    %c0_54 = arith.constant 0 : index
    %67 = vector.load %arg4[%c0_51, %c2_52, %c0_53, %c0_54] : memref<3x3x64x128xbf16, #tpu.memory_space<vmem>>, vector<1x1x64x128xbf16>
    %68 = vector.shape_cast %67 : vector<1x1x64x128xbf16> to vector<64x128xbf16>
    %cst_55 = arith.constant dense<0.000000e+00> : vector<128x128xf32>
    %69 = tpu.matmul %66, %68, %cst_55 {dimension_numbers = #tpu.dot_dimension_numbers<[1], [0], [0], [1], [0, 0, 1, 1], [], []>} : vector<128x64xbf16>, vector<64x128xbf16>, vector<128x128xf32> -> vector<128x128xf32>
    %70 = arith.addf %61, %69 : vector<128x128xf32>
    %c18_i32_56 = arith.constant 18 : i32
    %71 = arith.addi %0, %c18_i32_56 : i32
    %c0_57 = arith.constant 0 : index
    %72 = arith.index_cast %71 : i32 to index
    %c0_58 = arith.constant 0 : index
    %c0_59 = arith.constant 0 : index
    %73 = vector.load %arg3[%c0_57, %72, %c0_58, %c0_59] : memref<1x36x16x64xbf16, #tpu.memory_space<vmem>>, vector<1x8x16x64xbf16>
    %74 = vector.shape_cast %73 : vector<1x8x16x64xbf16> to vector<8x16x64xbf16>
    %75 = vector.shape_cast %74 : vector<8x16x64xbf16> to vector<128x64xbf16>
    %c1_60 = arith.constant 1 : index
    %c2_61 = arith.constant 2 : index
    %c0_62 = arith.constant 0 : index
    %c0_63 = arith.constant 0 : index
    %76 = vector.load %arg4[%c1_60, %c2_61, %c0_62, %c0_63] : memref<3x3x64x128xbf16, #tpu.memory_space<vmem>>, vector<1x1x64x128xbf16>
    %77 = vector.shape_cast %76 : vector<1x1x64x128xbf16> to vector<64x128xbf16>
    %cst_64 = arith.constant dense<0.000000e+00> : vector<128x128xf32>
    %78 = tpu.matmul %75, %77, %cst_64 {dimension_numbers = #tpu.dot_dimension_numbers<[1], [0], [0], [1], [0, 0, 1, 1], [], []>} : vector<128x64xbf16>, vector<64x128xbf16>, vector<128x128xf32> -> vector<128x128xf32>
    %79 = arith.addf %70, %78 : vector<128x128xf32>
    %c1_i32_65 = arith.constant 1 : i32
    %80 = arith.addi %0, %c1_i32_65 : i32
    %c0_66 = arith.constant 0 : index
    %81 = arith.index_cast %80 : i32 to index
    %c0_67 = arith.constant 0 : index
    %c0_68 = arith.constant 0 : index
    %82 = vector.load %arg3[%c0_66, %81, %c0_67, %c0_68] : memref<1x36x16x64xbf16, #tpu.memory_space<vmem>>, vector<1x8x16x64xbf16>
    %83 = vector.shape_cast %82 : vector<1x8x16x64xbf16> to vector<8x16x64xbf16>
    %84 = vector.shape_cast %83 : vector<8x16x64xbf16> to vector<128x64xbf16>
    %c2_69 = arith.constant 2 : index
    %c2_70 = arith.constant 2 : index
    %c0_71 = arith.constant 0 : index
    %c0_72 = arith.constant 0 : index
    %85 = vector.load %arg4[%c2_69, %c2_70, %c0_71, %c0_72] : memref<3x3x64x128xbf16, #tpu.memory_space<vmem>>, vector<1x1x64x128xbf16>
    %86 = vector.shape_cast %85 : vector<1x1x64x128xbf16> to vector<64x128xbf16>
    %cst_73 = arith.constant dense<0.000000e+00> : vector<128x128xf32>
    %87 = tpu.matmul %84, %86, %cst_73 {dimension_numbers = #tpu.dot_dimension_numbers<[1], [0], [0], [1], [0, 0, 1, 1], [], []>} : vector<128x64xbf16>, vector<64x128xbf16>, vector<128x128xf32> -> vector<128x128xf32>
    %88 = arith.addf %79, %87 : vector<128x128xf32>
    %89 = vector.shape_cast %88 : vector<128x128xf32> to vector<8x16x128xf32>
    %90 = vector.extract_strided_slice %89 {offsets = [0, 1, 0], sizes = [8, 8, 128], strides = [1, 1, 1]} : vector<8x16x128xf32> to vector<8x8x128xf32>
    %91 = vector.shape_cast %90 : vector<8x8x128xf32> to vector<64x128xf32>
    %92 = arith.addf %60, %91 : vector<64x128xf32>
    %c0_74 = arith.constant 0 : index
    %c0_75 = arith.constant 0 : index
    %93 = vector.load %arg5[%c0_74, %c0_75] : memref<1x128xf32, #tpu.memory_space<vmem>>, vector<1x128xf32>
    %94 = vector.broadcast %93 : vector<1x128xf32> to vector<64x128xf32>
    %95 = arith.addf %92, %94 : vector<64x128xf32>
    %cst_76 = arith.constant 0.000000e+00 : f32
    %96 = vector.broadcast %cst_76 : f32 to vector<64x128xf32>
    %97 = arith.maximumf %95, %96 : vector<64x128xf32>
    %98 = arith.truncf %97 : vector<64x128xf32> to vector<64x128xbf16>
    %c0_77 = arith.constant 0 : index
    %c0_78 = arith.constant 0 : index
    %c0_79 = arith.constant 0 : index
    %99 = vector.load %arg6[%c0_77, %c0_78, %c0_79] : memref<1x64x128xbf16, #tpu.memory_space<vmem>>, vector<1x64x128xbf16>
    %100 = vector.shape_cast %99 : vector<1x64x128xbf16> to vector<64x128xbf16>
    %101 = vector.shape_cast %98 : vector<64x128xbf16> to vector<1x64x128xbf16>
    tpu.vector_store %arg6[%c0_77, %c0_78, %c0_79], %101 {strides = array<i32>} : memref<1x64x128xbf16, #tpu.memory_space<vmem>>, vector<1x64x128xbf16>,
    return
  }
  func.func @transform_0(%arg0: i32, %arg1: i32, %arg2: i32) -> (i32, i32, i32, i32) {
    %c0_i32 = arith.constant 0 : i32
    %c0_i32_0 = arith.constant 0 : i32
    %c0_i32_1 = arith.constant 0 : i32
    %c0_i32_2 = arith.constant 0 : i32
    return %arg1, %c0_i32, %c0_i32_0, %c0_i32_1 : i32, i32, i32, i32
  }
  func.func @transform_1(%arg0: i32, %arg1: i32, %arg2: i32) -> (i32, i32, i32, i32) {
    %c0_i32 = arith.constant 0 : i32
    %c0_i32_0 = arith.constant 0 : i32
    %c0_i32_1 = arith.constant 0 : i32
    %c0_i32_2 = arith.constant 0 : i32
    return %c0_i32, %c0_i32_0, %c0_i32_1, %arg0 : i32, i32, i32, i32
  }
  func.func @transform_2(%arg0: i32, %arg1: i32, %arg2: i32) -> (i32, i32) {
    %c0_i32 = arith.constant 0 : i32
    %c0_i32_0 = arith.constant 0 : i32
    return %c0_i32, %arg0 : i32, i32
  }
  func.func @transform_3(%arg0: i32, %arg1: i32, %arg2: i32) -> (i32, i32, i32) {
    %c0_i32 = arith.constant 0 : i32
    return %arg1, %arg2, %arg0 : i32, i32, i32
  }
}

module attributes {stable_mosaic.version = 11 : i64} {
  func.func @_conv_bn_act_kernel(%arg0: i32, %arg1: i32, %arg2: i32, %arg3: memref<1x10x16x128xbf16, #tpu.memory_space<vmem>>, %arg4: memref<3x3x128x128xbf16, #tpu.memory_space<vmem>>, %arg5: memref<1x128xf32, #tpu.memory_space<vmem>>, %arg6: memref<1x64x128xbf16, #tpu.memory_space<vmem>>, %arg7: memref<1x64x128xbf16, #tpu.memory_space<vmem>>) attributes {dimension_semantics = [#tpu.dimension_semantics<parallel>, #tpu.dimension_semantics<parallel>, #tpu.dimension_semantics<parallel>], iteration_bounds = array<i64: 1, 2, 1>, scalar_prefetch = 0 : i64, scratch_operands = 0 : i64, tpu.core_type = #tpu.core_type<tc>, window_params = [{transform_indices = @transform_0, window_bounds = array<i64: 1, 10, 16, 128>}, {transform_indices = @transform_1, window_bounds = array<i64: 3, 3, 128, 128>}, {transform_indices = @transform_2, window_bounds = array<i64: 1, 128>}, {transform_indices = @transform_3, window_bounds = array<i64: 1, 64, 128>}, {transform_indices = @transform_4, window_bounds = array<i64: 1, 64, 128>}]} {
    %c8_i32 = arith.constant 8 : i32
    %0 = arith.muli %arg2, %c8_i32 : i32
    %cst = arith.constant 0.000000e+00 : f32
    %1 = vector.broadcast %cst : f32 to vector<64x128xf32>
    %cst_0 = arith.constant 0.000000e+00 : f32
    %2 = vector.broadcast %cst_0 : f32 to vector<128x128xf32>
    %c0_i32 = arith.constant 0 : i32
    %3 = arith.addi %0, %c0_i32 : i32
    %c0 = arith.constant 0 : index
    %4 = arith.index_cast %3 : i32 to index
    %c0_1 = arith.constant 0 : index
    %c0_2 = arith.constant 0 : index
    %5 = vector.load %arg3[%c0, %4, %c0_1, %c0_2] : memref<1x10x16x128xbf16, #tpu.memory_space<vmem>>, vector<1x8x16x128xbf16>
    %6 = vector.shape_cast %5 : vector<1x8x16x128xbf16> to vector<8x16x128xbf16>
    %7 = vector.shape_cast %6 : vector<8x16x128xbf16> to vector<128x128xbf16>
    %c0_3 = arith.constant 0 : index
    %c0_4 = arith.constant 0 : index
    %c0_5 = arith.constant 0 : index
    %c0_6 = arith.constant 0 : index
    %8 = vector.load %arg4[%c0_3, %c0_4, %c0_5, %c0_6] : memref<3x3x128x128xbf16, #tpu.memory_space<vmem>>, vector<1x1x128x128xbf16>
    %9 = vector.shape_cast %8 : vector<1x1x128x128xbf16> to vector<128x128xbf16>
    %cst_7 = arith.constant dense<0.000000e+00> : vector<128x128xf32>
    %10 = tpu.matmul %7, %9, %cst_7 {dimension_numbers = #tpu.dot_dimension_numbers<[1], [0], [0], [1], [0, 0, 1, 1], [], []>} : vector<128x128xbf16>, vector<128x128xbf16>, vector<128x128xf32> -> vector<128x128xf32>
    %11 = arith.addf %2, %10 : vector<128x128xf32>
    %c1_i32 = arith.constant 1 : i32
    %12 = arith.addi %0, %c1_i32 : i32
    %c0_8 = arith.constant 0 : index
    %13 = arith.index_cast %12 : i32 to index
    %c0_9 = arith.constant 0 : index
    %c0_10 = arith.constant 0 : index
    %14 = vector.load %arg3[%c0_8, %13, %c0_9, %c0_10] : memref<1x10x16x128xbf16, #tpu.memory_space<vmem>>, vector<1x8x16x128xbf16>
    %15 = vector.shape_cast %14 : vector<1x8x16x128xbf16> to vector<8x16x128xbf16>
    %16 = vector.shape_cast %15 : vector<8x16x128xbf16> to vector<128x128xbf16>
    %c1 = arith.constant 1 : index
    %c0_11 = arith.constant 0 : index
    %c0_12 = arith.constant 0 : index
    %c0_13 = arith.constant 0 : index
    %17 = vector.load %arg4[%c1, %c0_11, %c0_12, %c0_13] : memref<3x3x128x128xbf16, #tpu.memory_space<vmem>>, vector<1x1x128x128xbf16>
    %18 = vector.shape_cast %17 : vector<1x1x128x128xbf16> to vector<128x128xbf16>
    %cst_14 = arith.constant dense<0.000000e+00> : vector<128x128xf32>
    %19 = tpu.matmul %16, %18, %cst_14 {dimension_numbers = #tpu.dot_dimension_numbers<[1], [0], [0], [1], [0, 0, 1, 1], [], []>} : vector<128x128xbf16>, vector<128x128xbf16>, vector<128x128xf32> -> vector<128x128xf32>
    %20 = arith.addf %11, %19 : vector<128x128xf32>
    %c2_i32 = arith.constant 2 : i32
    %21 = arith.addi %0, %c2_i32 : i32
    %c0_15 = arith.constant 0 : index
    %22 = arith.index_cast %21 : i32 to index
    %c0_16 = arith.constant 0 : index
    %c0_17 = arith.constant 0 : index
    %23 = vector.load %arg3[%c0_15, %22, %c0_16, %c0_17] : memref<1x10x16x128xbf16, #tpu.memory_space<vmem>>, vector<1x8x16x128xbf16>
    %24 = vector.shape_cast %23 : vector<1x8x16x128xbf16> to vector<8x16x128xbf16>
    %25 = vector.shape_cast %24 : vector<8x16x128xbf16> to vector<128x128xbf16>
    %c2 = arith.constant 2 : index
    %c0_18 = arith.constant 0 : index
    %c0_19 = arith.constant 0 : index
    %c0_20 = arith.constant 0 : index
    %26 = vector.load %arg4[%c2, %c0_18, %c0_19, %c0_20] : memref<3x3x128x128xbf16, #tpu.memory_space<vmem>>, vector<1x1x128x128xbf16>
    %27 = vector.shape_cast %26 : vector<1x1x128x128xbf16> to vector<128x128xbf16>
    %cst_21 = arith.constant dense<0.000000e+00> : vector<128x128xf32>
    %28 = tpu.matmul %25, %27, %cst_21 {dimension_numbers = #tpu.dot_dimension_numbers<[1], [0], [0], [1], [0, 0, 1, 1], [], []>} : vector<128x128xbf16>, vector<128x128xbf16>, vector<128x128xf32> -> vector<128x128xf32>
    %29 = arith.addf %20, %28 : vector<128x128xf32>
    %30 = vector.shape_cast %29 : vector<128x128xf32> to vector<8x16x128xf32>
    %31 = vector.extract_strided_slice %30 {offsets = [0, 0, 0], sizes = [8, 8, 128], strides = [1, 1, 1]} : vector<8x16x128xf32> to vector<8x8x128xf32>
    %32 = vector.shape_cast %31 : vector<8x8x128xf32> to vector<64x128xf32>
    %33 = arith.addf %1, %32 : vector<64x128xf32>
    %cst_22 = arith.constant 0.000000e+00 : f32
    %34 = vector.broadcast %cst_22 : f32 to vector<128x128xf32>
    %c0_i32_23 = arith.constant 0 : i32
    %35 = arith.addi %0, %c0_i32_23 : i32
    %c0_24 = arith.constant 0 : index
    %36 = arith.index_cast %35 : i32 to index
    %c0_25 = arith.constant 0 : index
    %c0_26 = arith.constant 0 : index
    %37 = vector.load %arg3[%c0_24, %36, %c0_25, %c0_26] : memref<1x10x16x128xbf16, #tpu.memory_space<vmem>>, vector<1x8x16x128xbf16>
    %38 = vector.shape_cast %37 : vector<1x8x16x128xbf16> to vector<8x16x128xbf16>
    %39 = vector.shape_cast %38 : vector<8x16x128xbf16> to vector<128x128xbf16>
    %c0_27 = arith.constant 0 : index
    %c1_28 = arith.constant 1 : index
    %c0_29 = arith.constant 0 : index
    %c0_30 = arith.constant 0 : index
    %40 = vector.load %arg4[%c0_27, %c1_28, %c0_29, %c0_30] : memref<3x3x128x128xbf16, #tpu.memory_space<vmem>>, vector<1x1x128x128xbf16>
    %41 = vector.shape_cast %40 : vector<1x1x128x128xbf16> to vector<128x128xbf16>
    %cst_31 = arith.constant dense<0.000000e+00> : vector<128x128xf32>
    %42 = tpu.matmul %39, %41, %cst_31 {dimension_numbers = #tpu.dot_dimension_numbers<[1], [0], [0], [1], [0, 0, 1, 1], [], []>} : vector<128x128xbf16>, vector<128x128xbf16>, vector<128x128xf32> -> vector<128x128xf32>
    %43 = arith.addf %34, %42 : vector<128x128xf32>
    %c1_i32_32 = arith.constant 1 : i32
    %44 = arith.addi %0, %c1_i32_32 : i32
    %c0_33 = arith.constant 0 : index
    %45 = arith.index_cast %44 : i32 to index
    %c0_34 = arith.constant 0 : index
    %c0_35 = arith.constant 0 : index
    %46 = vector.load %arg3[%c0_33, %45, %c0_34, %c0_35] : memref<1x10x16x128xbf16, #tpu.memory_space<vmem>>, vector<1x8x16x128xbf16>
    %47 = vector.shape_cast %46 : vector<1x8x16x128xbf16> to vector<8x16x128xbf16>
    %48 = vector.shape_cast %47 : vector<8x16x128xbf16> to vector<128x128xbf16>
    %c1_36 = arith.constant 1 : index
    %c1_37 = arith.constant 1 : index
    %c0_38 = arith.constant 0 : index
    %c0_39 = arith.constant 0 : index
    %49 = vector.load %arg4[%c1_36, %c1_37, %c0_38, %c0_39] : memref<3x3x128x128xbf16, #tpu.memory_space<vmem>>, vector<1x1x128x128xbf16>
    %50 = vector.shape_cast %49 : vector<1x1x128x128xbf16> to vector<128x128xbf16>
    %cst_40 = arith.constant dense<0.000000e+00> : vector<128x128xf32>
    %51 = tpu.matmul %48, %50, %cst_40 {dimension_numbers = #tpu.dot_dimension_numbers<[1], [0], [0], [1], [0, 0, 1, 1], [], []>} : vector<128x128xbf16>, vector<128x128xbf16>, vector<128x128xf32> -> vector<128x128xf32>
    %52 = arith.addf %43, %51 : vector<128x128xf32>
    %c2_i32_41 = arith.constant 2 : i32
    %53 = arith.addi %0, %c2_i32_41 : i32
    %c0_42 = arith.constant 0 : index
    %54 = arith.index_cast %53 : i32 to index
    %c0_43 = arith.constant 0 : index
    %c0_44 = arith.constant 0 : index
    %55 = vector.load %arg3[%c0_42, %54, %c0_43, %c0_44] : memref<1x10x16x128xbf16, #tpu.memory_space<vmem>>, vector<1x8x16x128xbf16>
    %56 = vector.shape_cast %55 : vector<1x8x16x128xbf16> to vector<8x16x128xbf16>
    %57 = vector.shape_cast %56 : vector<8x16x128xbf16> to vector<128x128xbf16>
    %c2_45 = arith.constant 2 : index
    %c1_46 = arith.constant 1 : index
    %c0_47 = arith.constant 0 : index
    %c0_48 = arith.constant 0 : index
    %58 = vector.load %arg4[%c2_45, %c1_46, %c0_47, %c0_48] : memref<3x3x128x128xbf16, #tpu.memory_space<vmem>>, vector<1x1x128x128xbf16>
    %59 = vector.shape_cast %58 : vector<1x1x128x128xbf16> to vector<128x128xbf16>
    %cst_49 = arith.constant dense<0.000000e+00> : vector<128x128xf32>
    %60 = tpu.matmul %57, %59, %cst_49 {dimension_numbers = #tpu.dot_dimension_numbers<[1], [0], [0], [1], [0, 0, 1, 1], [], []>} : vector<128x128xbf16>, vector<128x128xbf16>, vector<128x128xf32> -> vector<128x128xf32>
    %61 = arith.addf %52, %60 : vector<128x128xf32>
    %62 = vector.shape_cast %61 : vector<128x128xf32> to vector<8x16x128xf32>
    %63 = vector.extract_strided_slice %62 {offsets = [0, 1, 0], sizes = [8, 8, 128], strides = [1, 1, 1]} : vector<8x16x128xf32> to vector<8x8x128xf32>
    %64 = vector.shape_cast %63 : vector<8x8x128xf32> to vector<64x128xf32>
    %65 = arith.addf %33, %64 : vector<64x128xf32>
    %cst_50 = arith.constant 0.000000e+00 : f32
    %66 = vector.broadcast %cst_50 : f32 to vector<128x128xf32>
    %c0_i32_51 = arith.constant 0 : i32
    %67 = arith.addi %0, %c0_i32_51 : i32
    %c0_52 = arith.constant 0 : index
    %68 = arith.index_cast %67 : i32 to index
    %c0_53 = arith.constant 0 : index
    %c0_54 = arith.constant 0 : index
    %69 = vector.load %arg3[%c0_52, %68, %c0_53, %c0_54] : memref<1x10x16x128xbf16, #tpu.memory_space<vmem>>, vector<1x8x16x128xbf16>
    %70 = vector.shape_cast %69 : vector<1x8x16x128xbf16> to vector<8x16x128xbf16>
    %71 = vector.shape_cast %70 : vector<8x16x128xbf16> to vector<128x128xbf16>
    %c0_55 = arith.constant 0 : index
    %c2_56 = arith.constant 2 : index
    %c0_57 = arith.constant 0 : index
    %c0_58 = arith.constant 0 : index
    %72 = vector.load %arg4[%c0_55, %c2_56, %c0_57, %c0_58] : memref<3x3x128x128xbf16, #tpu.memory_space<vmem>>, vector<1x1x128x128xbf16>
    %73 = vector.shape_cast %72 : vector<1x1x128x128xbf16> to vector<128x128xbf16>
    %cst_59 = arith.constant dense<0.000000e+00> : vector<128x128xf32>
    %74 = tpu.matmul %71, %73, %cst_59 {dimension_numbers = #tpu.dot_dimension_numbers<[1], [0], [0], [1], [0, 0, 1, 1], [], []>} : vector<128x128xbf16>, vector<128x128xbf16>, vector<128x128xf32> -> vector<128x128xf32>
    %75 = arith.addf %66, %74 : vector<128x128xf32>
    %c1_i32_60 = arith.constant 1 : i32
    %76 = arith.addi %0, %c1_i32_60 : i32
    %c0_61 = arith.constant 0 : index
    %77 = arith.index_cast %76 : i32 to index
    %c0_62 = arith.constant 0 : index
    %c0_63 = arith.constant 0 : index
    %78 = vector.load %arg3[%c0_61, %77, %c0_62, %c0_63] : memref<1x10x16x128xbf16, #tpu.memory_space<vmem>>, vector<1x8x16x128xbf16>
    %79 = vector.shape_cast %78 : vector<1x8x16x128xbf16> to vector<8x16x128xbf16>
    %80 = vector.shape_cast %79 : vector<8x16x128xbf16> to vector<128x128xbf16>
    %c1_64 = arith.constant 1 : index
    %c2_65 = arith.constant 2 : index
    %c0_66 = arith.constant 0 : index
    %c0_67 = arith.constant 0 : index
    %81 = vector.load %arg4[%c1_64, %c2_65, %c0_66, %c0_67] : memref<3x3x128x128xbf16, #tpu.memory_space<vmem>>, vector<1x1x128x128xbf16>
    %82 = vector.shape_cast %81 : vector<1x1x128x128xbf16> to vector<128x128xbf16>
    %cst_68 = arith.constant dense<0.000000e+00> : vector<128x128xf32>
    %83 = tpu.matmul %80, %82, %cst_68 {dimension_numbers = #tpu.dot_dimension_numbers<[1], [0], [0], [1], [0, 0, 1, 1], [], []>} : vector<128x128xbf16>, vector<128x128xbf16>, vector<128x128xf32> -> vector<128x128xf32>
    %84 = arith.addf %75, %83 : vector<128x128xf32>
    %c2_i32_69 = arith.constant 2 : i32
    %85 = arith.addi %0, %c2_i32_69 : i32
    %c0_70 = arith.constant 0 : index
    %86 = arith.index_cast %85 : i32 to index
    %c0_71 = arith.constant 0 : index
    %c0_72 = arith.constant 0 : index
    %87 = vector.load %arg3[%c0_70, %86, %c0_71, %c0_72] : memref<1x10x16x128xbf16, #tpu.memory_space<vmem>>, vector<1x8x16x128xbf16>
    %88 = vector.shape_cast %87 : vector<1x8x16x128xbf16> to vector<8x16x128xbf16>
    %89 = vector.shape_cast %88 : vector<8x16x128xbf16> to vector<128x128xbf16>
    %c2_73 = arith.constant 2 : index
    %c2_74 = arith.constant 2 : index
    %c0_75 = arith.constant 0 : index
    %c0_76 = arith.constant 0 : index
    %90 = vector.load %arg4[%c2_73, %c2_74, %c0_75, %c0_76] : memref<3x3x128x128xbf16, #tpu.memory_space<vmem>>, vector<1x1x128x128xbf16>
    %91 = vector.shape_cast %90 : vector<1x1x128x128xbf16> to vector<128x128xbf16>
    %cst_77 = arith.constant dense<0.000000e+00> : vector<128x128xf32>
    %92 = tpu.matmul %89, %91, %cst_77 {dimension_numbers = #tpu.dot_dimension_numbers<[1], [0], [0], [1], [0, 0, 1, 1], [], []>} : vector<128x128xbf16>, vector<128x128xbf16>, vector<128x128xf32> -> vector<128x128xf32>
    %93 = arith.addf %84, %92 : vector<128x128xf32>
    %94 = vector.shape_cast %93 : vector<128x128xf32> to vector<8x16x128xf32>
    %95 = vector.extract_strided_slice %94 {offsets = [0, 2, 0], sizes = [8, 8, 128], strides = [1, 1, 1]} : vector<8x16x128xf32> to vector<8x8x128xf32>
    %96 = vector.shape_cast %95 : vector<8x8x128xf32> to vector<64x128xf32>
    %97 = arith.addf %65, %96 : vector<64x128xf32>
    %c0_78 = arith.constant 0 : index
    %c0_79 = arith.constant 0 : index
    %98 = vector.load %arg5[%c0_78, %c0_79] : memref<1x128xf32, #tpu.memory_space<vmem>>, vector<1x128xf32>
    %99 = vector.broadcast %98 : vector<1x128xf32> to vector<64x128xf32>
    %100 = arith.addf %97, %99 : vector<64x128xf32>
    %c0_80 = arith.constant 0 : index
    %c0_81 = arith.constant 0 : index
    %c0_82 = arith.constant 0 : index
    %101 = vector.load %arg6[%c0_80, %c0_81, %c0_82] : memref<1x64x128xbf16, #tpu.memory_space<vmem>>, vector<1x64x128xbf16>
    %102 = vector.shape_cast %101 : vector<1x64x128xbf16> to vector<64x128xbf16>
    %103 = arith.extf %102 : vector<64x128xbf16> to vector<64x128xf32>
    %104 = arith.addf %100, %103 : vector<64x128xf32>
    %cst_83 = arith.constant 0.000000e+00 : f32
    %105 = vector.broadcast %cst_83 : f32 to vector<64x128xf32>
    %106 = arith.maximumf %104, %105 : vector<64x128xf32>
    %107 = arith.truncf %106 : vector<64x128xf32> to vector<64x128xbf16>
    %c0_84 = arith.constant 0 : index
    %c0_85 = arith.constant 0 : index
    %c0_86 = arith.constant 0 : index
    %108 = vector.load %arg7[%c0_84, %c0_85, %c0_86] : memref<1x64x128xbf16, #tpu.memory_space<vmem>>, vector<1x64x128xbf16>
    %109 = vector.shape_cast %108 : vector<1x64x128xbf16> to vector<64x128xbf16>
    %110 = vector.shape_cast %107 : vector<64x128xbf16> to vector<1x64x128xbf16>
    tpu.vector_store %arg7[%c0_84, %c0_85, %c0_86], %110 {strides = array<i32>} : memref<1x64x128xbf16, #tpu.memory_space<vmem>>, vector<1x64x128xbf16>,
    return
  }
  func.func @transform_0(%arg0: i32, %arg1: i32, %arg2: i32) -> (i32, i32, i32, i32) {
    %c0_i32 = arith.constant 0 : i32
    %c0_i32_0 = arith.constant 0 : i32
    %c0_i32_1 = arith.constant 0 : i32
    %c0_i32_2 = arith.constant 0 : i32
    return %arg1, %c0_i32, %c0_i32_0, %c0_i32_1 : i32, i32, i32, i32
  }
  func.func @transform_1(%arg0: i32, %arg1: i32, %arg2: i32) -> (i32, i32, i32, i32) {
    %c0_i32 = arith.constant 0 : i32
    %c0_i32_0 = arith.constant 0 : i32
    %c0_i32_1 = arith.constant 0 : i32
    %c0_i32_2 = arith.constant 0 : i32
    return %c0_i32, %c0_i32_0, %c0_i32_1, %arg0 : i32, i32, i32, i32
  }
  func.func @transform_2(%arg0: i32, %arg1: i32, %arg2: i32) -> (i32, i32) {
    %c0_i32 = arith.constant 0 : i32
    %c0_i32_0 = arith.constant 0 : i32
    return %c0_i32, %arg0 : i32, i32
  }
  func.func @transform_3(%arg0: i32, %arg1: i32, %arg2: i32) -> (i32, i32, i32) {
    %c0_i32 = arith.constant 0 : i32
    return %arg1, %arg2, %arg0 : i32, i32, i32
  }
  func.func @transform_4(%arg0: i32, %arg1: i32, %arg2: i32) -> (i32, i32, i32) {
    %c0_i32 = arith.constant 0 : i32
    return %arg1, %arg2, %arg0 : i32, i32, i32
  }
}

module attributes {stable_mosaic.version = 11 : i64} {
  func.func @_conv_bn_act_kernel(%arg0: i32, %arg1: i32, %arg2: i32, %arg3: memref<1x10x16x128xbf16, #tpu.memory_space<vmem>>, %arg4: memref<3x3x128x128xbf16, #tpu.memory_space<vmem>>, %arg5: memref<1x128xf32, #tpu.memory_space<vmem>>, %arg6: memref<1x64x128xbf16, #tpu.memory_space<vmem>>) attributes {dimension_semantics = [#tpu.dimension_semantics<parallel>, #tpu.dimension_semantics<parallel>, #tpu.dimension_semantics<parallel>], iteration_bounds = array<i64: 1, 2, 1>, scalar_prefetch = 0 : i64, scratch_operands = 0 : i64, tpu.core_type = #tpu.core_type<tc>, window_params = [{transform_indices = @transform_0, window_bounds = array<i64: 1, 10, 16, 128>}, {transform_indices = @transform_1, window_bounds = array<i64: 3, 3, 128, 128>}, {transform_indices = @transform_2, window_bounds = array<i64: 1, 128>}, {transform_indices = @transform_3, window_bounds = array<i64: 1, 64, 128>}]} {
    %c8_i32 = arith.constant 8 : i32
    %0 = arith.muli %arg2, %c8_i32 : i32
    %cst = arith.constant 0.000000e+00 : f32
    %1 = vector.broadcast %cst : f32 to vector<64x128xf32>
    %cst_0 = arith.constant 0.000000e+00 : f32
    %2 = vector.broadcast %cst_0 : f32 to vector<128x128xf32>
    %c0_i32 = arith.constant 0 : i32
    %3 = arith.addi %0, %c0_i32 : i32
    %c0 = arith.constant 0 : index
    %4 = arith.index_cast %3 : i32 to index
    %c0_1 = arith.constant 0 : index
    %c0_2 = arith.constant 0 : index
    %5 = vector.load %arg3[%c0, %4, %c0_1, %c0_2] : memref<1x10x16x128xbf16, #tpu.memory_space<vmem>>, vector<1x8x16x128xbf16>
    %6 = vector.shape_cast %5 : vector<1x8x16x128xbf16> to vector<8x16x128xbf16>
    %7 = vector.shape_cast %6 : vector<8x16x128xbf16> to vector<128x128xbf16>
    %c0_3 = arith.constant 0 : index
    %c0_4 = arith.constant 0 : index
    %c0_5 = arith.constant 0 : index
    %c0_6 = arith.constant 0 : index
    %8 = vector.load %arg4[%c0_3, %c0_4, %c0_5, %c0_6] : memref<3x3x128x128xbf16, #tpu.memory_space<vmem>>, vector<1x1x128x128xbf16>
    %9 = vector.shape_cast %8 : vector<1x1x128x128xbf16> to vector<128x128xbf16>
    %cst_7 = arith.constant dense<0.000000e+00> : vector<128x128xf32>
    %10 = tpu.matmul %7, %9, %cst_7 {dimension_numbers = #tpu.dot_dimension_numbers<[1], [0], [0], [1], [0, 0, 1, 1], [], []>} : vector<128x128xbf16>, vector<128x128xbf16>, vector<128x128xf32> -> vector<128x128xf32>
    %11 = arith.addf %2, %10 : vector<128x128xf32>
    %c1_i32 = arith.constant 1 : i32
    %12 = arith.addi %0, %c1_i32 : i32
    %c0_8 = arith.constant 0 : index
    %13 = arith.index_cast %12 : i32 to index
    %c0_9 = arith.constant 0 : index
    %c0_10 = arith.constant 0 : index
    %14 = vector.load %arg3[%c0_8, %13, %c0_9, %c0_10] : memref<1x10x16x128xbf16, #tpu.memory_space<vmem>>, vector<1x8x16x128xbf16>
    %15 = vector.shape_cast %14 : vector<1x8x16x128xbf16> to vector<8x16x128xbf16>
    %16 = vector.shape_cast %15 : vector<8x16x128xbf16> to vector<128x128xbf16>
    %c1 = arith.constant 1 : index
    %c0_11 = arith.constant 0 : index
    %c0_12 = arith.constant 0 : index
    %c0_13 = arith.constant 0 : index
    %17 = vector.load %arg4[%c1, %c0_11, %c0_12, %c0_13] : memref<3x3x128x128xbf16, #tpu.memory_space<vmem>>, vector<1x1x128x128xbf16>
    %18 = vector.shape_cast %17 : vector<1x1x128x128xbf16> to vector<128x128xbf16>
    %cst_14 = arith.constant dense<0.000000e+00> : vector<128x128xf32>
    %19 = tpu.matmul %16, %18, %cst_14 {dimension_numbers = #tpu.dot_dimension_numbers<[1], [0], [0], [1], [0, 0, 1, 1], [], []>} : vector<128x128xbf16>, vector<128x128xbf16>, vector<128x128xf32> -> vector<128x128xf32>
    %20 = arith.addf %11, %19 : vector<128x128xf32>
    %c2_i32 = arith.constant 2 : i32
    %21 = arith.addi %0, %c2_i32 : i32
    %c0_15 = arith.constant 0 : index
    %22 = arith.index_cast %21 : i32 to index
    %c0_16 = arith.constant 0 : index
    %c0_17 = arith.constant 0 : index
    %23 = vector.load %arg3[%c0_15, %22, %c0_16, %c0_17] : memref<1x10x16x128xbf16, #tpu.memory_space<vmem>>, vector<1x8x16x128xbf16>
    %24 = vector.shape_cast %23 : vector<1x8x16x128xbf16> to vector<8x16x128xbf16>
    %25 = vector.shape_cast %24 : vector<8x16x128xbf16> to vector<128x128xbf16>
    %c2 = arith.constant 2 : index
    %c0_18 = arith.constant 0 : index
    %c0_19 = arith.constant 0 : index
    %c0_20 = arith.constant 0 : index
    %26 = vector.load %arg4[%c2, %c0_18, %c0_19, %c0_20] : memref<3x3x128x128xbf16, #tpu.memory_space<vmem>>, vector<1x1x128x128xbf16>
    %27 = vector.shape_cast %26 : vector<1x1x128x128xbf16> to vector<128x128xbf16>
    %cst_21 = arith.constant dense<0.000000e+00> : vector<128x128xf32>
    %28 = tpu.matmul %25, %27, %cst_21 {dimension_numbers = #tpu.dot_dimension_numbers<[1], [0], [0], [1], [0, 0, 1, 1], [], []>} : vector<128x128xbf16>, vector<128x128xbf16>, vector<128x128xf32> -> vector<128x128xf32>
    %29 = arith.addf %20, %28 : vector<128x128xf32>
    %30 = vector.shape_cast %29 : vector<128x128xf32> to vector<8x16x128xf32>
    %31 = vector.extract_strided_slice %30 {offsets = [0, 0, 0], sizes = [8, 8, 128], strides = [1, 1, 1]} : vector<8x16x128xf32> to vector<8x8x128xf32>
    %32 = vector.shape_cast %31 : vector<8x8x128xf32> to vector<64x128xf32>
    %33 = arith.addf %1, %32 : vector<64x128xf32>
    %cst_22 = arith.constant 0.000000e+00 : f32
    %34 = vector.broadcast %cst_22 : f32 to vector<128x128xf32>
    %c0_i32_23 = arith.constant 0 : i32
    %35 = arith.addi %0, %c0_i32_23 : i32
    %c0_24 = arith.constant 0 : index
    %36 = arith.index_cast %35 : i32 to index
    %c0_25 = arith.constant 0 : index
    %c0_26 = arith.constant 0 : index
    %37 = vector.load %arg3[%c0_24, %36, %c0_25, %c0_26] : memref<1x10x16x128xbf16, #tpu.memory_space<vmem>>, vector<1x8x16x128xbf16>
    %38 = vector.shape_cast %37 : vector<1x8x16x128xbf16> to vector<8x16x128xbf16>
    %39 = vector.shape_cast %38 : vector<8x16x128xbf16> to vector<128x128xbf16>
    %c0_27 = arith.constant 0 : index
    %c1_28 = arith.constant 1 : index
    %c0_29 = arith.constant 0 : index
    %c0_30 = arith.constant 0 : index
    %40 = vector.load %arg4[%c0_27, %c1_28, %c0_29, %c0_30] : memref<3x3x128x128xbf16, #tpu.memory_space<vmem>>, vector<1x1x128x128xbf16>
    %41 = vector.shape_cast %40 : vector<1x1x128x128xbf16> to vector<128x128xbf16>
    %cst_31 = arith.constant dense<0.000000e+00> : vector<128x128xf32>
    %42 = tpu.matmul %39, %41, %cst_31 {dimension_numbers = #tpu.dot_dimension_numbers<[1], [0], [0], [1], [0, 0, 1, 1], [], []>} : vector<128x128xbf16>, vector<128x128xbf16>, vector<128x128xf32> -> vector<128x128xf32>
    %43 = arith.addf %34, %42 : vector<128x128xf32>
    %c1_i32_32 = arith.constant 1 : i32
    %44 = arith.addi %0, %c1_i32_32 : i32
    %c0_33 = arith.constant 0 : index
    %45 = arith.index_cast %44 : i32 to index
    %c0_34 = arith.constant 0 : index
    %c0_35 = arith.constant 0 : index
    %46 = vector.load %arg3[%c0_33, %45, %c0_34, %c0_35] : memref<1x10x16x128xbf16, #tpu.memory_space<vmem>>, vector<1x8x16x128xbf16>
    %47 = vector.shape_cast %46 : vector<1x8x16x128xbf16> to vector<8x16x128xbf16>
    %48 = vector.shape_cast %47 : vector<8x16x128xbf16> to vector<128x128xbf16>
    %c1_36 = arith.constant 1 : index
    %c1_37 = arith.constant 1 : index
    %c0_38 = arith.constant 0 : index
    %c0_39 = arith.constant 0 : index
    %49 = vector.load %arg4[%c1_36, %c1_37, %c0_38, %c0_39] : memref<3x3x128x128xbf16, #tpu.memory_space<vmem>>, vector<1x1x128x128xbf16>
    %50 = vector.shape_cast %49 : vector<1x1x128x128xbf16> to vector<128x128xbf16>
    %cst_40 = arith.constant dense<0.000000e+00> : vector<128x128xf32>
    %51 = tpu.matmul %48, %50, %cst_40 {dimension_numbers = #tpu.dot_dimension_numbers<[1], [0], [0], [1], [0, 0, 1, 1], [], []>} : vector<128x128xbf16>, vector<128x128xbf16>, vector<128x128xf32> -> vector<128x128xf32>
    %52 = arith.addf %43, %51 : vector<128x128xf32>
    %c2_i32_41 = arith.constant 2 : i32
    %53 = arith.addi %0, %c2_i32_41 : i32
    %c0_42 = arith.constant 0 : index
    %54 = arith.index_cast %53 : i32 to index
    %c0_43 = arith.constant 0 : index
    %c0_44 = arith.constant 0 : index
    %55 = vector.load %arg3[%c0_42, %54, %c0_43, %c0_44] : memref<1x10x16x128xbf16, #tpu.memory_space<vmem>>, vector<1x8x16x128xbf16>
    %56 = vector.shape_cast %55 : vector<1x8x16x128xbf16> to vector<8x16x128xbf16>
    %57 = vector.shape_cast %56 : vector<8x16x128xbf16> to vector<128x128xbf16>
    %c2_45 = arith.constant 2 : index
    %c1_46 = arith.constant 1 : index
    %c0_47 = arith.constant 0 : index
    %c0_48 = arith.constant 0 : index
    %58 = vector.load %arg4[%c2_45, %c1_46, %c0_47, %c0_48] : memref<3x3x128x128xbf16, #tpu.memory_space<vmem>>, vector<1x1x128x128xbf16>
    %59 = vector.shape_cast %58 : vector<1x1x128x128xbf16> to vector<128x128xbf16>
    %cst_49 = arith.constant dense<0.000000e+00> : vector<128x128xf32>
    %60 = tpu.matmul %57, %59, %cst_49 {dimension_numbers = #tpu.dot_dimension_numbers<[1], [0], [0], [1], [0, 0, 1, 1], [], []>} : vector<128x128xbf16>, vector<128x128xbf16>, vector<128x128xf32> -> vector<128x128xf32>
    %61 = arith.addf %52, %60 : vector<128x128xf32>
    %62 = vector.shape_cast %61 : vector<128x128xf32> to vector<8x16x128xf32>
    %63 = vector.extract_strided_slice %62 {offsets = [0, 1, 0], sizes = [8, 8, 128], strides = [1, 1, 1]} : vector<8x16x128xf32> to vector<8x8x128xf32>
    %64 = vector.shape_cast %63 : vector<8x8x128xf32> to vector<64x128xf32>
    %65 = arith.addf %33, %64 : vector<64x128xf32>
    %cst_50 = arith.constant 0.000000e+00 : f32
    %66 = vector.broadcast %cst_50 : f32 to vector<128x128xf32>
    %c0_i32_51 = arith.constant 0 : i32
    %67 = arith.addi %0, %c0_i32_51 : i32
    %c0_52 = arith.constant 0 : index
    %68 = arith.index_cast %67 : i32 to index
    %c0_53 = arith.constant 0 : index
    %c0_54 = arith.constant 0 : index
    %69 = vector.load %arg3[%c0_52, %68, %c0_53, %c0_54] : memref<1x10x16x128xbf16, #tpu.memory_space<vmem>>, vector<1x8x16x128xbf16>
    %70 = vector.shape_cast %69 : vector<1x8x16x128xbf16> to vector<8x16x128xbf16>
    %71 = vector.shape_cast %70 : vector<8x16x128xbf16> to vector<128x128xbf16>
    %c0_55 = arith.constant 0 : index
    %c2_56 = arith.constant 2 : index
    %c0_57 = arith.constant 0 : index
    %c0_58 = arith.constant 0 : index
    %72 = vector.load %arg4[%c0_55, %c2_56, %c0_57, %c0_58] : memref<3x3x128x128xbf16, #tpu.memory_space<vmem>>, vector<1x1x128x128xbf16>
    %73 = vector.shape_cast %72 : vector<1x1x128x128xbf16> to vector<128x128xbf16>
    %cst_59 = arith.constant dense<0.000000e+00> : vector<128x128xf32>
    %74 = tpu.matmul %71, %73, %cst_59 {dimension_numbers = #tpu.dot_dimension_numbers<[1], [0], [0], [1], [0, 0, 1, 1], [], []>} : vector<128x128xbf16>, vector<128x128xbf16>, vector<128x128xf32> -> vector<128x128xf32>
    %75 = arith.addf %66, %74 : vector<128x128xf32>
    %c1_i32_60 = arith.constant 1 : i32
    %76 = arith.addi %0, %c1_i32_60 : i32
    %c0_61 = arith.constant 0 : index
    %77 = arith.index_cast %76 : i32 to index
    %c0_62 = arith.constant 0 : index
    %c0_63 = arith.constant 0 : index
    %78 = vector.load %arg3[%c0_61, %77, %c0_62, %c0_63] : memref<1x10x16x128xbf16, #tpu.memory_space<vmem>>, vector<1x8x16x128xbf16>
    %79 = vector.shape_cast %78 : vector<1x8x16x128xbf16> to vector<8x16x128xbf16>
    %80 = vector.shape_cast %79 : vector<8x16x128xbf16> to vector<128x128xbf16>
    %c1_64 = arith.constant 1 : index
    %c2_65 = arith.constant 2 : index
    %c0_66 = arith.constant 0 : index
    %c0_67 = arith.constant 0 : index
    %81 = vector.load %arg4[%c1_64, %c2_65, %c0_66, %c0_67] : memref<3x3x128x128xbf16, #tpu.memory_space<vmem>>, vector<1x1x128x128xbf16>
    %82 = vector.shape_cast %81 : vector<1x1x128x128xbf16> to vector<128x128xbf16>
    %cst_68 = arith.constant dense<0.000000e+00> : vector<128x128xf32>
    %83 = tpu.matmul %80, %82, %cst_68 {dimension_numbers = #tpu.dot_dimension_numbers<[1], [0], [0], [1], [0, 0, 1, 1], [], []>} : vector<128x128xbf16>, vector<128x128xbf16>, vector<128x128xf32> -> vector<128x128xf32>
    %84 = arith.addf %75, %83 : vector<128x128xf32>
    %c2_i32_69 = arith.constant 2 : i32
    %85 = arith.addi %0, %c2_i32_69 : i32
    %c0_70 = arith.constant 0 : index
    %86 = arith.index_cast %85 : i32 to index
    %c0_71 = arith.constant 0 : index
    %c0_72 = arith.constant 0 : index
    %87 = vector.load %arg3[%c0_70, %86, %c0_71, %c0_72] : memref<1x10x16x128xbf16, #tpu.memory_space<vmem>>, vector<1x8x16x128xbf16>
    %88 = vector.shape_cast %87 : vector<1x8x16x128xbf16> to vector<8x16x128xbf16>
    %89 = vector.shape_cast %88 : vector<8x16x128xbf16> to vector<128x128xbf16>
    %c2_73 = arith.constant 2 : index
    %c2_74 = arith.constant 2 : index
    %c0_75 = arith.constant 0 : index
    %c0_76 = arith.constant 0 : index
    %90 = vector.load %arg4[%c2_73, %c2_74, %c0_75, %c0_76] : memref<3x3x128x128xbf16, #tpu.memory_space<vmem>>, vector<1x1x128x128xbf16>
    %91 = vector.shape_cast %90 : vector<1x1x128x128xbf16> to vector<128x128xbf16>
    %cst_77 = arith.constant dense<0.000000e+00> : vector<128x128xf32>
    %92 = tpu.matmul %89, %91, %cst_77 {dimension_numbers = #tpu.dot_dimension_numbers<[1], [0], [0], [1], [0, 0, 1, 1], [], []>} : vector<128x128xbf16>, vector<128x128xbf16>, vector<128x128xf32> -> vector<128x128xf32>
    %93 = arith.addf %84, %92 : vector<128x128xf32>
    %94 = vector.shape_cast %93 : vector<128x128xf32> to vector<8x16x128xf32>
    %95 = vector.extract_strided_slice %94 {offsets = [0, 2, 0], sizes = [8, 8, 128], strides = [1, 1, 1]} : vector<8x16x128xf32> to vector<8x8x128xf32>
    %96 = vector.shape_cast %95 : vector<8x8x128xf32> to vector<64x128xf32>
    %97 = arith.addf %65, %96 : vector<64x128xf32>
    %c0_78 = arith.constant 0 : index
    %c0_79 = arith.constant 0 : index
    %98 = vector.load %arg5[%c0_78, %c0_79] : memref<1x128xf32, #tpu.memory_space<vmem>>, vector<1x128xf32>
    %99 = vector.broadcast %98 : vector<1x128xf32> to vector<64x128xf32>
    %100 = arith.addf %97, %99 : vector<64x128xf32>
    %cst_80 = arith.constant 0.000000e+00 : f32
    %101 = vector.broadcast %cst_80 : f32 to vector<64x128xf32>
    %102 = arith.maximumf %100, %101 : vector<64x128xf32>
    %103 = arith.truncf %102 : vector<64x128xf32> to vector<64x128xbf16>
    %c0_81 = arith.constant 0 : index
    %c0_82 = arith.constant 0 : index
    %c0_83 = arith.constant 0 : index
    %104 = vector.load %arg6[%c0_81, %c0_82, %c0_83] : memref<1x64x128xbf16, #tpu.memory_space<vmem>>, vector<1x64x128xbf16>
    %105 = vector.shape_cast %104 : vector<1x64x128xbf16> to vector<64x128xbf16>
    %106 = vector.shape_cast %103 : vector<64x128xbf16> to vector<1x64x128xbf16>
    tpu.vector_store %arg6[%c0_81, %c0_82, %c0_83], %106 {strides = array<i32>} : memref<1x64x128xbf16, #tpu.memory_space<vmem>>, vector<1x64x128xbf16>,
    return
  }
  func.func @transform_0(%arg0: i32, %arg1: i32, %arg2: i32) -> (i32, i32, i32, i32) {
    %c0_i32 = arith.constant 0 : i32
    %c0_i32_0 = arith.constant 0 : i32
    %c0_i32_1 = arith.constant 0 : i32
    %c0_i32_2 = arith.constant 0 : i32
    return %arg1, %c0_i32, %c0_i32_0, %c0_i32_1 : i32, i32, i32, i32
  }
  func.func @transform_1(%arg0: i32, %arg1: i32, %arg2: i32) -> (i32, i32, i32, i32) {
    %c0_i32 = arith.constant 0 : i32
    %c0_i32_0 = arith.constant 0 : i32
    %c0_i32_1 = arith.constant 0 : i32
    %c0_i32_2 = arith.constant 0 : i32
    return %c0_i32, %c0_i32_0, %c0_i32_1, %arg0 : i32, i32, i32, i32
  }
  func.func @transform_2(%arg0: i32, %arg1: i32, %arg2: i32) -> (i32, i32) {
    %c0_i32 = arith.constant 0 : i32
    %c0_i32_0 = arith.constant 0 : i32
    return %c0_i32, %arg0 : i32, i32
  }
  func.func @transform_3(%arg0: i32, %arg1: i32, %arg2: i32) -> (i32, i32, i32) {
    %c0_i32 = arith.constant 0 : i32
    return %arg1, %arg2, %arg0 : i32, i32, i32
  }
}

</mosaic_0001>

<bundles_post_ra>
// kernel: model.6
= control target key start
LH: loop header
LB: loop body
LE: loop exit
PB: predicated region body
PF: predicated region fallthrough
CT: control target
= control target key end

     0   :  { %s832_s12 = smov 0   ;;  %s834_s13 = smov 0   ;;  %s892_s0 = inlined_call_operand.vmem [shape: bf16[2,32,16,64], index: 0, kind: input, shape index: {}]   ;;  %s893_s1 = inlined_call_operand.vmem [shape: bf16[1,1,64,128], index: 1, kind: input, shape index: {}]   ;;  %s894_s2 = inlined_call_operand.vmem [shape: f32[1,128], index: 2, kind: input, shape index: {}]   ;;  %s895_s3 = inlined_call_operand.vmem [shape: bf16[2,64,128], index: 3, kind: output, shape index: {}]  }
   0x1   :  { %s836_s14 = smov 0  }
   0x2 LB: > { %s28_s15 = sadd.s32 1, %s806_s13  ;;  %p639_p0 = scmp.ge.s32.totalorder %s810_s14, 1  ;;  %s810_s14 = sphi %s836_s14, %s13_s14   ;;  %s806_s13 = sphi %s834_s13, %s897_s13   ;;  %s802_s12 = sphi %s832_s12, %s896_s12  }
   0x3   : > { %p30_p1 = scmp.ge.s32.totalorder %s28_s15, 2  ;;  %p177_p2 = scmp.lt.s32.totalorder %s810_s14, 3 }
   0x5   : > { %s899_s15 = smov (%p30_p1, %s28_s15), 0  ;;  %p178_p3 = pnand %p639_p0, %p177_p2 }
   0x6   : > { %p215_p4 = scmp.lt.s32.totalorder (!%p178_p3), %s802_s12, 1 }
   0x7   : > { %181 = sbr.rel (%p178_p3) target bundleno = 237 (0xed), region = 32 }
   0xc   : > { %v776_v0 = vld [vmem:[%s893_s1 + $0x18] sm:$0xff]   ;;  %v777_v1 = vld [vmem:[%s893_s1 + $0x10] sm:$0xff]   ;;  %s901_s12 = smov (!%p215_p4, %s802_s12), 1  ;;  %v778_v2 = vld [vmem:[%s893_s1 + $0x8] sm:$0xff]   ;;  %vm333_vm0 = vcmask 523264  }
   0xd   : > { %720 = vmatprep.subr.bf16.mxu0 %v776_v0  ;;  %744 = vmatprep.subr.bf16.mxu1 %v776_v0  ;;  %s675_s22 = sshll.u32 %s901_s12, 8  ;;  %v779_v5 = vld [vmem:[%s893_s1] sm:$0xff]   ;;  %s676_s30 = sshll.u32 %s901_s12, 5 }
   0xe   : > { %721 = vmatpush3.bf16.msra.mxu0 %v776_v0  ;;  %748 = vmatpush3.bf16.msra.mxu1 %v776_v0  ;;  %s219_s25 = scalar_lea.vmem %s892_s0, %s675_s22  ;;  %v664_v13 = vld [vmem:[%s894_s2] ss:$0 sm:$0xff]  ;;  %s238_s6 = scalar_lea.vmem %s895_s3, %s676_s30 }
   0xf   : > { %722 = vmatprep.subr.bf16.mxu0 %v777_v1  ;;  %745 = vmatprep.subr.bf16.mxu1 %v777_v1  ;;  %v780_v3 = vld [vmem:[%s219_s25] sm:$0xff]   ;;  %v782_v6 = vld [vmem:[%s219_s25 + $0x8] sm:$0xff]   ;;  %v784_v8 = vld [vmem:[%s219_s25 + $0x10] sm:$0xff]  }
  0x10   : > { %v781_v4 = vld [vmem:[%s219_s25 + $0x20] sm:$0xff]   ;;  %728 = vmatprep.mubr.msk.bf16.mxu0 %vm333_vm0, %v780_v3  ;;  %v783_v7 = vld [vmem:[%s219_s25 + $0x28] sm:$0xff]   ;;  %v785_v9 = vld [vmem:[%s219_s25 + $0x30] sm:$0xff]  }
  0x11   : > { %736 = vmatprep.mubr.msk.bf16.mxu1 %vm333_vm0, %v781_v4  ;;  %v786_v10 = vld [vmem:[%s219_s25 + $0x18] sm:$0xff]  }
  0x12   : > { %723 = vmatpush3.bf16.msra.mxu0 %v777_v1  ;;  %749 = vmatpush3.bf16.msra.mxu1 %v777_v1  ;;  %v787_v11 = vld [vmem:[%s219_s25 + $0x38] sm:$0xff]  }
  0x13   : > { %724 = vmatprep.subr.bf16.mxu0 %v778_v2  ;;  %746 = vmatprep.subr.bf16.mxu1 %v778_v2 }
  0x16   : > { %725 = vmatpush3.bf16.msra.mxu0 %v778_v2  ;;  %750 = vmatpush3.bf16.msra.mxu1 %v778_v2 }
  0x17   : > { %726 = vmatprep.subr.bf16.mxu0 %v779_v5  ;;  %747 = vmatprep.subr.bf16.mxu1 %v779_v5 }
  0x1a   : > { %727 = vmatpush3.bf16.msra.mxu0 %v779_v5  ;;  %751 = vmatpush3.bf16.msra.mxu1 %v779_v5 }
  0x1d   : > { %729 = vmatmul.mubr.msk.bf16.vlgmr.msra.gmra.mxu0 %vm333_vm0, %v782_v6  ;;  %737 = vmatmul.mubr.msk.bf16.vlgmr.msra.gmra.mxu1 %vm333_vm0, %v783_v7 }
  0x1e   : > { %732 = vmatprep.mubr.msk.bf16.mxu0 %vm333_vm0, %v784_v8  ;;  %740 = vmatprep.mubr.msk.bf16.mxu1 %vm333_vm0, %v785_v9 }
  0x25   : > { %733 = vmatmul.mubr.msk.bf16.gmra.mxu0 %vm333_vm0, %v786_v10  ;;  %741 = vmatmul.mubr.msk.bf16.gmra.mxu1 %vm333_vm0, %v787_v11 }
  0xdd   : > { %v730_v12 = vpop.f32.mrf.mxu0  ;;  %v738_v14 = vpop.f32.mrf.mxu1 }
  0xde   : > { %v463_v17 = vadd.f32 %v730_v12, %v664_v13  ;;  %v467_v18 = vadd.f32 %v738_v14, %v664_v13 }
  0xdf   : > { %v392_v15 = vpop.f32.mrf.mxu0  ;;  %v420_v16 = vpop.f32.mrf.mxu1 }
  0xe0   : > { %v462_v19 = vadd.f32 %v664_v13, %v392_v15  ;;  %v466_v20 = vadd.f32 %v664_v13, %v420_v16 }
  0xe1   : > { %v731_v21 = vpop.f32.mrf.mxu0  ;;  %v739_v22 = vpop.f32.mrf.mxu1 }
  0xe2   : > { %v688_v23 = vpack.c.bf16 %v463_v17, %v462_v19  ;;  %v698_v24 = vpack.c.bf16 %v467_v18, %v466_v20 }
  0xe3   : > { %v395_v25 = vpop.f32.mrf.mxu0  ;;  %v423_v26 = vpop.f32.mrf.mxu1 }
  0xe4   : > { %689 = vst [vmem:[%s238_s6] sm:$0xff] %v688_v23   ;;  %706 = vst [vmem:[%s238_s6 + $0x10] sm:$0xff] %v698_v24  }
  0xe5   : > { %v734_v27 = vpop.f32.mrf.mxu0  ;;  %v742_v28 = vpop.f32.mrf.mxu1 }
  0xe6   : > { %v465_v31 = vadd.f32 %v734_v27, %v664_v13  ;;  %v469_v32 = vadd.f32 %v742_v28, %v664_v13 }
  0xe7   : > { %v406_v29 = vpop.f32.mrf.mxu0  ;;  %v434_v30 = vpop.f32.mrf.mxu1 }
  0xe8   : > { %v464_v33 = vadd.f32 %v664_v13, %v406_v29  ;;  %v468_v34 = vadd.f32 %v664_v13, %v434_v30 }
  0xe9   : > { %v735_v35 = vpop.f32.mrf.mxu0  ;;  %v743_v36 = vpop.f32.mrf.mxu1 }
  0xea   : > { %v693_v37 = vpack.c.bf16 %v465_v31, %v464_v33  ;;  %v703_v38 = vpack.c.bf16 %v469_v32, %v468_v34 }
  0xeb   : > { %v409_v39 = vpop.f32.mrf.mxu0  ;;  %v437_v40 = vpop.f32.mrf.mxu1 }
  0xec   : > { %705 = vst [vmem:[%s238_s6 + $0x8] sm:$0xff] %v693_v37   ;;  %707 = vst [vmem:[%s238_s6 + $0x18] sm:$0xff] %v703_v38  }
  0xed PF: > { %s13_s14 = sadd.s32 1, %s810_s14   ;;  %s896_s12 = smov %s806_s13 }
  0xee   : > { %p10_p5 = scmp.ge.s32.totalorder %s13_s14, 4   ;;  %s897_s13 = smov %s899_s15 }
  0xf0   :  { %12 = sbr.rel (!%p10_p5) target bundleno = 2 (0x2), region = 69 }

// kernel: model.8
= control target key start
LH: loop header
LB: loop body
LE: loop exit
PB: predicated region body
PF: predicated region fallthrough
CT: control target
= control target key end

     0   :  { %s3156_s12 = smov 0   ;;  %s3158_s13 = smov 0   ;;  %s3643_s0 = inlined_call_operand.vmem [shape: bf16[2,10,16,128], index: 0, kind: input, shape index: {}]   ;;  %s3644_s1 = inlined_call_operand.vmem [shape: bf16[3,3,128,128], index: 1, kind: input, shape index: {}]   ;;  %s3645_s2 = inlined_call_operand.vmem [shape: f32[1,128], index: 2, kind: input, shape index: {}]   ;;  %s3646_s3 = inlined_call_operand.vmem [shape: bf16[2,64,128], index: 3, kind: output, shape index: {}]  }
   0x1   :  { %s3160_s14 = smov 0  }
   0x2 LB: > { %s28_s15 = sadd.s32 1, %s3130_s13  ;;  %p2240_p0 = scmp.ge.s32.totalorder %s3134_s14, 1  ;;  %s3134_s14 = sphi %s3160_s14, %s13_s14   ;;  %s3130_s13 = sphi %s3158_s13, %s3648_s13   ;;  %s3126_s12 = sphi %s3156_s12, %s3647_s12  }
   0x3   : > { %p30_p1 = scmp.ge.s32.totalorder %s28_s15, 2  ;;  %p177_p2 = scmp.lt.s32.totalorder %s3134_s14, 3 }
   0x5   : > { %s3650_s15 = smov (%p30_p1, %s28_s15), 0  ;;  %p178_p3 = pnand %p2240_p0, %p177_p2 }
   0x6   : > { %p215_p4 = scmp.lt.s32.totalorder (!%p178_p3), %s3126_s12, 1 }
   0x7   : > { %181 = sbr.rel (%p178_p3) target bundleno = 395 (0x18b), region = 32 }
   0xc   : > { %v3016_v0 = vld [vmem:[%s3644_s1 + $0xf8] sm:$0xff]   ;;  %v3018_v2 = vld [vmem:[%s3644_s1 + $0xf0] sm:$0xff]   ;;  %v3020_v4 = vld [vmem:[%s3644_s1 + $0xe8] sm:$0xff]   ;;  %s3652_s12 = smov (!%p215_p4, %s3126_s12), 1  ;;  %vm1440_vm0 = vcmask 1046528   ;;  %vm1999_vm1 = vcmask 1045504  }
   0xd   : > { %v3017_v1 = vld [vmem:[%s3644_s1 + $0x38] sm:$0xff]   ;;  %2687 = vmatprep.subr.bf16.mxu0 %v3016_v0  ;;  %v3019_v3 = vld [vmem:[%s3644_s1 + $0x30] sm:$0xff]   ;;  %v3021_v5 = vld [vmem:[%s3644_s1 + $0x28] sm:$0xff]   ;;  %s2991_s5 = smul.u32 80, %s3652_s12  ;;  %s2511_s30 = sshll.u32 %s3652_s12, 5 }
   0xe   : > { %2719 = vmatprep.subr.bf16.mxu1 %v3017_v1  ;;  %2688 = vmatpush3.bf16.msra.mxu0 %v3016_v0  ;;  %v3022_v6 = vld [vmem:[%s3644_s1 + $0xe0] sm:$0xff]   ;;  %v3024_v8 = vld [vmem:[%s3644_s1 + $0xd8] sm:$0xff]   ;;  %v3026_v10 = vld [vmem:[%s3644_s1 + $0xd0] sm:$0xff]   ;;  %s238_s6 = scalar_lea.vmem %s3646_s3, %s2511_s30 }
   0xf   : > { %2720 = vmatpush3.bf16.msra.mxu1 %v3017_v1  ;;  %2689 = vmatprep.subr.bf16.mxu0 %v3018_v2  ;;  %v3023_v7 = vld [vmem:[%s3644_s1 + $0x20] sm:$0xff]   ;;  %v3025_v9 = vld [vmem:[%s3644_s1 + $0x18] sm:$0xff]   ;;  %s3210_s16 = scalar_lea.vmem %s3643_s0, %s2991_s5  ;;  %v3027_v11 = vld [vmem:[%s3644_s1 + $0x10] sm:$0xff]  }
  0x10   : > { %2721 = vmatprep.subr.bf16.mxu1 %v3019_v3  ;;  %v3219_v12 = vld [vmem:[%s3210_s16 + $0x8] sm:$0xff]   ;;  %v3222_v13 = vld [vmem:[%s3210_s16] sm:$0xff]   ;;  %v3239_v18 = vld [vmem:[%s3210_s16 + $0x10] sm:$0xff]  }
  0x11   : > { %2703 = vmatprep.mubr.bf16.mxu0 %v3219_v12  ;;  %2735 = vmatprep.mubr.bf16.mxu1 %v3222_v13  ;;  %v3028_v14 = vld [vmem:[%s3644_s1 + $0xc8] sm:$0xff]   ;;  %v3030_v16 = vld [vmem:[%s3644_s1 + $0xc0] sm:$0xff]   ;;  %v3036_v19 = vld [vmem:[%s3644_s1 + $0x1b8] sm:$0xff]  }
  0x12   : > { %2690 = vmatpush3.bf16.msra.mxu0 %v3018_v2  ;;  %v3029_v15 = vld [vmem:[%s3644_s1 + $0x8] sm:$0xff]   ;;  %v3031_v17 = vld [vmem:[%s3644_s1] sm:$0xff]   ;;  %v3037_v20 = vld [vmem:[%s3644_s1 + $0x138] sm:$0xff]  }
  0x13   : > { %2722 = vmatpush3.bf16.msra.mxu1 %v3019_v3  ;;  %2691 = vmatprep.subr.bf16.mxu0 %v3020_v4  ;;  %v3248_v21 = vld [vmem:[%s3210_s16 + $0x8] sm:$0xff]   ;;  %v3038_v22 = vld [vmem:[%s3644_s1 + $0x1b0] sm:$0xff]   ;;  %v3257_v24 = vld [vmem:[%s3210_s16 + $0x18] sm:$0xff]  }
  0x14   : > { %2723 = vmatprep.subr.bf16.mxu1 %v3021_v5  ;;  %v3039_v23 = vld [vmem:[%s3644_s1 + $0x130] sm:$0xff]   ;;  %v3265_v26 = vld [vmem:[%s3210_s16 + $0x20] sm:$0xff]   ;;  %v3044_v27 = vld [vmem:[%s3644_s1 + $0x1a8] sm:$0xff]  }
  0x15   : > { %v3261_v25 = vld [vmem:[%s3210_s16 + $0x10] sm:$0xff]   ;;  %v3045_v28 = vld [vmem:[%s3644_s1 + $0x128] sm:$0xff]   ;;  %v3276_v29 = vld [vmem:[%s3210_s16 + $0x18] sm:$0xff]  }
  0x16   : > { %2692 = vmatpush3.bf16.msra.mxu0 %v3020_v4  ;;  %v3046_v30 = vld [vmem:[%s3644_s1 + $0x1a0] sm:$0xff]   ;;  %v3285_v32 = vld [vmem:[%s3210_s16 + $0x28] sm:$0xff]   ;;  %v3293_v34 = vld [vmem:[%s3210_s16 + $0x30] sm:$0xff]  }
  0x17   : > { %2724 = vmatpush3.bf16.msra.mxu1 %v3021_v5  ;;  %2693 = vmatprep.subr.bf16.mxu0 %v3022_v6  ;;  %v3047_v31 = vld [vmem:[%s3644_s1 + $0x120] sm:$0xff]   ;;  %v3052_v35 = vld [vmem:[%s3644_s1 + $0x198] sm:$0xff]   ;;  %v3304_v37 = vld [vmem:[%s3210_s16 + $0x28] sm:$0xff]  }
  0x18   : > { %2725 = vmatprep.subr.bf16.mxu1 %v3023_v7  ;;  %v3289_v33 = vld [vmem:[%s3210_s16 + $0x20] sm:$0xff]   ;;  %v3053_v36 = vld [vmem:[%s3644_s1 + $0x118] sm:$0xff]   ;;  %v3054_v38 = vld [vmem:[%s3644_s1 + $0x190] sm:$0xff]  }
  0x19   : > { %v3055_v39 = vld [vmem:[%s3644_s1 + $0x110] sm:$0xff]   ;;  %v3313_v40 = vld [vmem:[%s3210_s16 + $0x38] sm:$0xff]   ;;  %v3321_v42 = vld [vmem:[%s3210_s16 + $0x40] sm:$0xff]  }
  0x1a   : > { %2694 = vmatpush3.bf16.msra.mxu0 %v3022_v6  ;;  %v3317_v41 = vld [vmem:[%s3210_s16 + $0x30] sm:$0xff]   ;;  %v3060_v43 = vld [vmem:[%s3644_s1 + $0x188] sm:$0xff]   ;;  %v3332_v45 = vld [vmem:[%s3210_s16 + $0x38] sm:$0xff]  }
  0x1b   : > { %2726 = vmatpush3.bf16.msra.mxu1 %v3023_v7  ;;  %2695 = vmatprep.subr.bf16.mxu0 %v3024_v8  ;;  %v3061_v44 = vld [vmem:[%s3644_s1 + $0x108] sm:$0xff]   ;;  %v3062_v46 = vld [vmem:[%s3644_s1 + $0x180] sm:$0xff]   ;;  %v3341_v48 = vld [vmem:[%s3210_s16 + $0x10] sm:$0xff]  }
  0x1c   : > { %2727 = vmatprep.subr.bf16.mxu1 %v3025_v9  ;;  %v3063_v47 = vld [vmem:[%s3644_s1 + $0x100] sm:$0xff]   ;;  %v3066_v49 = vld [vmem:[%s3644_s1 + $0x78] sm:$0xff]   ;;  %v3068_v52 = vld [vmem:[%s3644_s1 + $0x70] sm:$0xff]  }
  0x1d   : > { %v3067_v50 = vld [vmem:[%s3644_s1 + $0x1f8] sm:$0xff]   ;;  %v3069_v53 = vld [vmem:[%s3644_s1 + $0x1f0] sm:$0xff]   ;;  %v3363_v54 = vld [vmem:[%s3210_s16 + $0x20] sm:$0xff]  }
  0x1e   : > { %2696 = vmatpush3.bf16.msra.mxu0 %v3024_v8  ;;  %v3354_v51 = vld [vmem:[%s3210_s16 + $0x18] sm:$0xff]   ;;  %v3072_v55 = vld [vmem:[%s3644_s1 + $0x68] sm:$0xff]   ;;  %v3074_v58 = vld [vmem:[%s3644_s1 + $0x60] sm:$0xff]  }
  0x1f   : > { %2728 = vmatpush3.bf16.msra.mxu1 %v3025_v9  ;;  %2697 = vmatprep.subr.bf16.mxu0 %v3026_v10  ;;  %v3073_v56 = vld [vmem:[%s3644_s1 + $0x1e8] sm:$0xff]   ;;  %v3075_v59 = vld [vmem:[%s3644_s1 + $0x1e0] sm:$0xff]   ;;  %v3385_v60 = vld [vmem:[%s3210_s16 + $0x30] sm:$0xff]  }
  0x20   : > { %2729 = vmatprep.subr.bf16.mxu1 %v3027_v11  ;;  %v3376_v57 = vld [vmem:[%s3210_s16 + $0x28] sm:$0xff]   ;;  %v3078_v61 = vld [vmem:[%s3644_s1 + $0x58] sm:$0xff]   ;;  %v3080_v0 = vld [vmem:[%s3644_s1 + $0x50] sm:$0xff]  }
  0x21   : > { %v3079_v62 = vld [vmem:[%s3644_s1 + $0x1d8] sm:$0xff]   ;;  %v3081_v1 = vld [vmem:[%s3644_s1 + $0x1d0] sm:$0xff]   ;;  %v3407_v2 = vld [vmem:[%s3210_s16 + $0x40] sm:$0xff]  }
  0x22   : > { %2698 = vmatpush3.bf16.msra.mxu0 %v3026_v10  ;;  %v3398_v63 = vld [vmem:[%s3210_s16 + $0x38] sm:$0xff]   ;;  %v3084_v3 = vld [vmem:[%s3644_s1 + $0x48] sm:$0xff]   ;;  %v3086_v6 = vld [vmem:[%s3644_s1 + $0x40] sm:$0xff]  }
  0x23   : > { %2730 = vmatpush3.bf16.msra.mxu1 %v3027_v11  ;;  %2699 = vmatprep.subr.bf16.mxu0 %v3028_v14  ;;  %v3085_v4 = vld [vmem:[%s3644_s1 + $0x1c8] sm:$0xff]   ;;  %v3087_v7 = vld [vmem:[%s3644_s1 + $0x1c0] sm:$0xff]   ;;  %v3088_v8 = vld [vmem:[%s3644_s1 + $0x178] sm:$0xff]  }
  0x24   : > { %2731 = vmatprep.subr.bf16.mxu1 %v3029_v15  ;;  %v3420_v5 = vld [vmem:[%s3210_s16 + $0x48] sm:$0xff]   ;;  %v3089_v9 = vld [vmem:[%s3644_s1 + $0xb8] sm:$0xff]   ;;  %v3090_v10 = vld [vmem:[%s3644_s1 + $0x170] sm:$0xff]  }
  0x25   : > { %v3091_v11 = vld [vmem:[%s3644_s1 + $0xb0] sm:$0xff]  }
  0x26   : > { %2700 = vmatpush3.bf16.msra.mxu0 %v3028_v14  ;;  %v3092_v14 = vld [vmem:[%s3644_s1 + $0x168] sm:$0xff]  }
  0x27   : > { %2732 = vmatpush3.bf16.msra.mxu1 %v3029_v15  ;;  %2701 = vmatprep.subr.bf16.mxu0 %v3030_v16  ;;  %v3093_v15 = vld [vmem:[%s3644_s1 + $0xa8] sm:$0xff]  }
  0x28   : > { %2733 = vmatprep.subr.bf16.mxu1 %v3031_v17 }
  0x2a   : > { %2702 = vmatpush3.bf16.msra.mxu0 %v3030_v16  ;;  %v3094_v16 = vld [vmem:[%s3644_s1 + $0x160] sm:$0xff]  }
  0x2b   : > { %2734 = vmatpush3.bf16.msra.mxu1 %v3031_v17  ;;  %2751 = vmatprep.subr.bf16.mxu0 %v3036_v19  ;;  %v3095_v17 = vld [vmem:[%s3644_s1 + $0xa0] sm:$0xff]  }
  0x2c   : > { %2783 = vmatprep.subr.bf16.mxu1 %v3037_v20 }
  0x2d   : > { %2704 = vmatmul.mubr.bf16.vlgmr.msra.gmra.mxu0 %v3239_v18 }
  0x2e   : > { %2736 = vmatmul.mubr.bf16.vlgmr.msra.gmra.mxu1 %v3248_v21  ;;  %2752 = vmatpush3.bf16.msra.mxu0 %v3036_v19  ;;  %v3096_v19 = vld [vmem:[%s3644_s1 + $0x158] sm:$0xff]  }
  0x2f   : > { %2784 = vmatpush3.bf16.msra.mxu1 %v3037_v20  ;;  %2753 = vmatprep.subr.bf16.mxu0 %v3038_v22  ;;  %v3097_v20 = vld [vmem:[%s3644_s1 + $0x98] sm:$0xff]  }
  0x30   : > { %2785 = vmatprep.subr.bf16.mxu1 %v3039_v23  ;;  %2707 = vmatprep.mubr.bf16.mxu0 %v3257_v24 }
  0x31   : > { %2739 = vmatprep.mubr.bf16.mxu1 %v3261_v25 }
  0x32   : > { %2754 = vmatpush3.bf16.msra.mxu0 %v3038_v22  ;;  %v3098_v22 = vld [vmem:[%s3644_s1 + $0x150] sm:$0xff]  }
  0x33   : > { %2786 = vmatpush3.bf16.msra.mxu1 %v3039_v23  ;;  %2755 = vmatprep.subr.bf16.mxu0 %v3044_v27  ;;  %v3099_v23 = vld [vmem:[%s3644_s1 + $0x90] sm:$0xff]  }
  0x34   : > { %2787 = vmatprep.subr.bf16.mxu1 %v3045_v28 }
  0x35   : > { %2708 = vmatmul.mubr.bf16.gmra.mxu0 %v3265_v26 }
  0x36   : > { %2740 = vmatmul.mubr.bf16.gmra.mxu1 %v3276_v29  ;;  %2756 = vmatpush3.bf16.msra.mxu0 %v3044_v27  ;;  %v3100_v27 = vld [vmem:[%s3644_s1 + $0x148] sm:$0xff]  }
  0x37   : > { %2788 = vmatpush3.bf16.msra.mxu1 %v3045_v28  ;;  %2757 = vmatprep.subr.bf16.mxu0 %v3046_v30  ;;  %v3101_v28 = vld [vmem:[%s3644_s1 + $0x88] sm:$0xff]  }
  0x38   : > { %2789 = vmatprep.subr.bf16.mxu1 %v3047_v31  ;;  %2711 = vmatprep.mubr.bf16.mxu0 %v3285_v32 }
  0x39   : > { %2743 = vmatprep.mubr.bf16.mxu1 %v3289_v33 }
  0x3a   : > { %2758 = vmatpush3.bf16.msra.mxu0 %v3046_v30  ;;  %v3102_v30 = vld [vmem:[%s3644_s1 + $0x140] sm:$0xff]  }
  0x3b   : > { %2790 = vmatpush3.bf16.msra.mxu1 %v3047_v31  ;;  %2759 = vmatprep.subr.bf16.mxu0 %v3052_v35  ;;  %v3103_v31 = vld [vmem:[%s3644_s1 + $0x80] sm:$0xff]  }
  0x3c   : > { %2791 = vmatprep.subr.bf16.mxu1 %v3053_v36 }
  0x3d   : > { %2712 = vmatmul.mubr.bf16.gmra.mxu0 %v3293_v34 }
  0x3e   : > { %2744 = vmatmul.mubr.bf16.gmra.mxu1 %v3304_v37  ;;  %2760 = vmatpush3.bf16.msra.mxu0 %v3052_v35  ;;  %v3104_v35 = vld [vmem:[%s3644_s1 + $0x238] sm:$0xff]  }
  0x3f   : > { %2792 = vmatpush3.bf16.msra.mxu1 %v3053_v36  ;;  %2761 = vmatprep.subr.bf16.mxu0 %v3054_v38  ;;  %v3105_v36 = vld [vmem:[%s3644_s1 + $0x230] sm:$0xff]  }
  0x40   : > { %2793 = vmatprep.subr.bf16.mxu1 %v3055_v39  ;;  %2715 = vmatprep.mubr.bf16.mxu0 %v3313_v40 }
  0x41   : > { %2747 = vmatprep.mubr.bf16.mxu1 %v3317_v41 }
  0x42   : > { %2762 = vmatpush3.bf16.msra.mxu0 %v3054_v38 }
  0x43   : > { %2794 = vmatpush3.bf16.msra.mxu1 %v3055_v39  ;;  %2763 = vmatprep.subr.bf16.mxu0 %v3060_v43 }
  0x44   : > { %2795 = vmatprep.subr.bf16.mxu1 %v3061_v44 }
  0x45   : > { %2716 = vmatmul.mubr.bf16.gmra.mxu0 %v3321_v42 }
  0x46   : > { %2748 = vmatmul.mubr.bf16.gmra.mxu1 %v3332_v45  ;;  %2764 = vmatpush3.bf16.msra.mxu0 %v3060_v43 }
  0x47   : > { %2796 = vmatpush3.bf16.msra.mxu1 %v3061_v44  ;;  %2765 = vmatprep.subr.bf16.mxu0 %v3062_v46 }
  0x48   : > { %2797 = vmatprep.subr.bf16.mxu1 %v3063_v47  ;;  %2767 = vmatprep.mubr.bf16.mxu0 %v3341_v48 }
  0x49   : > { %2799 = vmatprep.mubr.bf16.mxu1 %v3219_v12 }
  0x4a   : > { %2766 = vmatpush3.bf16.msra.mxu0 %v3062_v46 }
  0x4b   : > { %2798 = vmatpush3.bf16.msra.mxu1 %v3063_v47  ;;  %2815 = vmatprep.subr.bf16.mxu0 %v3066_v49 }
  0x4c   : > { %2847 = vmatprep.subr.bf16.mxu1 %v3067_v50 }
  0x4d   : > { %2768 = vmatmul.mubr.bf16.vlgmr.msra.gmra.mxu0 %v3354_v51 }
  0x4e   : > { %2800 = vmatmul.mubr.bf16.vlgmr.msra.gmra.mxu1 %v3239_v18  ;;  %2816 = vmatpush3.bf16.msra.mxu0 %v3066_v49 }
  0x4f   : > { %2848 = vmatpush3.bf16.msra.mxu1 %v3067_v50  ;;  %2817 = vmatprep.subr.bf16.mxu0 %v3068_v52 }
  0x50   : > { %2849 = vmatprep.subr.bf16.mxu1 %v3069_v53  ;;  %2771 = vmatprep.mubr.bf16.mxu0 %v3363_v54 }
  0x51   : > { %2803 = vmatprep.mubr.bf16.mxu1 %v3257_v24 }
  0x52   : > { %2818 = vmatpush3.bf16.msra.mxu0 %v3068_v52 }
  0x53   : > { %2850 = vmatpush3.bf16.msra.mxu1 %v3069_v53  ;;  %2819 = vmatprep.subr.bf16.mxu0 %v3072_v55 }
  0x54   : > { %2851 = vmatprep.subr.bf16.mxu1 %v3073_v56 }
  0x55   : > { %2772 = vmatmul.mubr.bf16.gmra.mxu0 %v3376_v57 }
  0x56   : > { %2804 = vmatmul.mubr.bf16.gmra.mxu1 %v3265_v26  ;;  %2820 = vmatpush3.bf16.msra.mxu0 %v3072_v55 }
  0x57   : > { %2852 = vmatpush3.bf16.msra.mxu1 %v3073_v56  ;;  %2821 = vmatprep.subr.bf16.mxu0 %v3074_v58 }
  0x58   : > { %2853 = vmatprep.subr.bf16.mxu1 %v3075_v59  ;;  %2775 = vmatprep.mubr.bf16.mxu0 %v3385_v60 }
  0x59   : > { %2807 = vmatprep.mubr.bf16.mxu1 %v3285_v32 }
  0x5a   : > { %2822 = vmatpush3.bf16.msra.mxu0 %v3074_v58 }
  0x5b   : > { %2854 = vmatpush3.bf16.msra.mxu1 %v3075_v59  ;;  %2823 = vmatprep.subr.bf16.mxu0 %v3078_v61 }
  0x5c   : > { %2855 = vmatprep.subr.bf16.mxu1 %v3079_v62 }
  0x5d   : > { %2776 = vmatmul.mubr.bf16.gmra.mxu0 %v3398_v63 }
  0x5e   : > { %2808 = vmatmul.mubr.bf16.gmra.mxu1 %v3293_v34  ;;  %2824 = vmatpush3.bf16.msra.mxu0 %v3078_v61 }
  0x5f   : > { %2856 = vmatpush3.bf16.msra.mxu1 %v3079_v62  ;;  %2825 = vmatprep.subr.bf16.mxu0 %v3080_v0 }
  0x60   : > { %2857 = vmatprep.subr.bf16.mxu1 %v3081_v1  ;;  %2779 = vmatprep.mubr.bf16.mxu0 %v3407_v2 }
  0x61   : > { %2811 = vmatprep.mubr.bf16.mxu1 %v3313_v40 }
  0x62   : > { %2826 = vmatpush3.bf16.msra.mxu0 %v3080_v0 }
  0x63   : > { %2858 = vmatpush3.bf16.msra.mxu1 %v3081_v1  ;;  %2827 = vmatprep.subr.bf16.mxu0 %v3084_v3 }
  0x64   : > { %2859 = vmatprep.subr.bf16.mxu1 %v3085_v4 }
  0x65   : > { %2780 = vmatmul.mubr.bf16.gmra.mxu0 %v3420_v5 }
  0x66   : > { %2812 = vmatmul.mubr.bf16.gmra.mxu1 %v3321_v42  ;;  %2828 = vmatpush3.bf16.msra.mxu0 %v3084_v3 }
  0x67   : > { %2860 = vmatpush3.bf16.msra.mxu1 %v3085_v4  ;;  %2829 = vmatprep.subr.bf16.mxu0 %v3086_v6 }
  0x68   : > { %2861 = vmatprep.subr.bf16.mxu1 %v3087_v7  ;;  %2831 = vmatprep.mubr.bf16.mxu0 %v3222_v13 }
  0x69   : > { %2863 = vmatprep.mubr.bf16.mxu1 %v3341_v48 }
  0x6a   : > { %2830 = vmatpush3.bf16.msra.mxu0 %v3086_v6 }
  0x6b   : > { %2862 = vmatpush3.bf16.msra.mxu1 %v3087_v7  ;;  %2879 = vmatprep.subr.bf16.mxu0 %v3088_v8 }
  0x6c   : > { %2911 = vmatprep.subr.bf16.mxu1 %v3089_v9 }
  0x6d   : > { %2832 = vmatmul.mubr.bf16.vlgmr.msra.gmra.mxu0 %v3248_v21 }
  0x6e   : > { %2864 = vmatmul.mubr.bf16.vlgmr.msra.gmra.mxu1 %v3354_v51  ;;  %2880 = vmatpush3.bf16.msra.mxu0 %v3088_v8 }
  0x6f   : > { %2912 = vmatpush3.bf16.msra.mxu1 %v3089_v9  ;;  %2881 = vmatprep.subr.bf16.mxu0 %v3090_v10 }
  0x70   : > { %2913 = vmatprep.subr.bf16.mxu1 %v3091_v11  ;;  %2835 = vmatprep.mubr.bf16.mxu0 %v3261_v25 }
  0x71   : > { %2867 = vmatprep.mubr.bf16.mxu1 %v3363_v54 }
  0x72   : > { %2882 = vmatpush3.bf16.msra.mxu0 %v3090_v10 }
  0x73   : > { %2914 = vmatpush3.bf16.msra.mxu1 %v3091_v11  ;;  %2883 = vmatprep.subr.bf16.mxu0 %v3092_v14 }
  0x74   : > { %2915 = vmatprep.subr.bf16.mxu1 %v3093_v15 }
  0x75   : > { %2836 = vmatmul.mubr.bf16.gmra.mxu0 %v3276_v29 }
  0x76   : > { %2868 = vmatmul.mubr.bf16.gmra.mxu1 %v3376_v57  ;;  %2884 = vmatpush3.bf16.msra.mxu0 %v3092_v14 }
  0x77   : > { %2916 = vmatpush3.bf16.msra.mxu1 %v3093_v15  ;;  %2885 = vmatprep.subr.bf16.mxu0 %v3094_v16 }
  0x78   : > { %2917 = vmatprep.subr.bf16.mxu1 %v3095_v17  ;;  %2839 = vmatprep.mubr.bf16.mxu0 %v3289_v33 }
  0x79   : > { %2871 = vmatprep.mubr.bf16.mxu1 %v3385_v60 }
  0x7a   : > { %2886 = vmatpush3.bf16.msra.mxu0 %v3094_v16 }
  0x7b   : > { %2918 = vmatpush3.bf16.msra.mxu1 %v3095_v17  ;;  %2887 = vmatprep.subr.bf16.mxu0 %v3096_v19 }
  0x7c   : > { %2919 = vmatprep.subr.bf16.mxu1 %v3097_v20 }
  0x7d   : > { %2840 = vmatmul.mubr.bf16.gmra.mxu0 %v3304_v37 }
  0x7e   : > { %2872 = vmatmul.mubr.bf16.gmra.mxu1 %v3398_v63  ;;  %2888 = vmatpush3.bf16.msra.mxu0 %v3096_v19 }
  0x7f   : > { %2920 = vmatpush3.bf16.msra.mxu1 %v3097_v20  ;;  %2889 = vmatprep.subr.bf16.mxu0 %v3098_v22 }
  0x80   : > { %2921 = vmatprep.subr.bf16.mxu1 %v3099_v23  ;;  %2843 = vmatprep.mubr.bf16.mxu0 %v3317_v41 }
  0x81   : > { %2875 = vmatprep.mubr.bf16.mxu1 %v3407_v2 }
  0x82   : > { %2890 = vmatpush3.bf16.msra.mxu0 %v3098_v22 }
  0x83   : > { %2922 = vmatpush3.bf16.msra.mxu1 %v3099_v23  ;;  %2891 = vmatprep.subr.bf16.mxu0 %v3100_v27 }
  0x84   : > { %2923 = vmatprep.subr.bf16.mxu1 %v3101_v28 }
  0x85   : > { %2844 = vmatmul.mubr.bf16.gmra.mxu0 %v3332_v45 }
  0x86   : > { %2876 = vmatmul.mubr.bf16.gmra.mxu1 %v3420_v5  ;;  %2892 = vmatpush3.bf16.msra.mxu0 %v3100_v27 }
  0x87   : > { %2924 = vmatpush3.bf16.msra.mxu1 %v3101_v28  ;;  %2893 = vmatprep.subr.bf16.mxu0 %v3102_v30 }
  0x88   : > { %2925 = vmatprep.subr.bf16.mxu1 %v3103_v31  ;;  %2895 = vmatprep.mubr.bf16.mxu0 %v3219_v12  ;;  %v3106_v12 = vld [vmem:[%s3644_s1 + $0x228] sm:$0xff]  }
  0x89   : > { %2927 = vmatprep.mubr.bf16.mxu1 %v3222_v13  ;;  %v3107_v13 = vld [vmem:[%s3644_s1 + $0x220] sm:$0xff]  }
  0x8a   : > { %2894 = vmatpush3.bf16.msra.mxu0 %v3102_v30 }
  0x8b   : > { %2926 = vmatpush3.bf16.msra.mxu1 %v3103_v31  ;;  %2943 = vmatprep.subr.bf16.mxu0 %v3104_v35 }
  0x8c   : > { %2975 = vmatprep.subr.bf16.mxu1 %v3104_v35 }
  0x8d   : > { %2896 = vmatmul.mubr.bf16.vlgmr.msra.gmra.mxu0 %v3239_v18  ;;  %v3108_v18 = vld [vmem:[%s3644_s1 + $0x218] sm:$0xff]  }
  0x8e   : > { %2928 = vmatmul.mubr.bf16.vlgmr.msra.gmra.mxu1 %v3248_v21  ;;  %2944 = vmatpush3.bf16.msra.mxu0 %v3104_v35  ;;  %v3109_v21 = vld [vmem:[%s3644_s1 + $0x210] sm:$0xff]  }
  0x8f   : > { %2983 = vmatpush3.bf16.msra.mxu1 %v3104_v35  ;;  %2945 = vmatprep.subr.bf16.mxu0 %v3105_v36 }
  0x90   : > { %2976 = vmatprep.subr.bf16.mxu1 %v3105_v36  ;;  %2899 = vmatprep.mubr.bf16.mxu0 %v3257_v24  ;;  %v3110_v24 = vld [vmem:[%s3644_s1 + $0x208] sm:$0xff]  }
  0x91   : > { %2931 = vmatprep.mubr.bf16.mxu1 %v3261_v25  ;;  %v3111_v25 = vld [vmem:[%s3644_s1 + $0x200] sm:$0xff]  }
  0x92   : > { %2946 = vmatpush3.bf16.msra.mxu0 %v3105_v36 }
  0x93   : > { %2984 = vmatpush3.bf16.msra.mxu1 %v3105_v36  ;;  %2947 = vmatprep.subr.bf16.mxu0 %v3106_v12 }
  0x94   : > { %2977 = vmatprep.subr.bf16.mxu1 %v3106_v12 }
  0x95   : > { %2900 = vmatmul.mubr.bf16.gmra.mxu0 %v3265_v26 }
  0x96   : > { %2932 = vmatmul.mubr.bf16.gmra.mxu1 %v3276_v29  ;;  %2948 = vmatpush3.bf16.msra.mxu0 %v3106_v12 }
  0x97   : > { %2985 = vmatpush3.bf16.msra.mxu1 %v3106_v12  ;;  %2949 = vmatprep.subr.bf16.mxu0 %v3107_v13 }
  0x98   : > { %2978 = vmatprep.subr.bf16.mxu1 %v3107_v13  ;;  %2903 = vmatprep.mubr.bf16.mxu0 %v3285_v32 }
  0x99   : > { %2935 = vmatprep.mubr.bf16.mxu1 %v3289_v33 }
  0x9a   : > { %2950 = vmatpush3.bf16.msra.mxu0 %v3107_v13 }
  0x9b   : > { %2986 = vmatpush3.bf16.msra.mxu1 %v3107_v13  ;;  %2951 = vmatprep.subr.bf16.mxu0 %v3108_v18 }
  0x9c   : > { %2979 = vmatprep.subr.bf16.mxu1 %v3108_v18 }
  0x9d   : > { %2904 = vmatmul.mubr.bf16.gmra.mxu0 %v3293_v34 }
  0x9e   : > { %2936 = vmatmul.mubr.bf16.gmra.mxu1 %v3304_v37  ;;  %2952 = vmatpush3.bf16.msra.mxu0 %v3108_v18 }
  0x9f   : > { %2987 = vmatpush3.bf16.msra.mxu1 %v3108_v18  ;;  %2953 = vmatprep.subr.bf16.mxu0 %v3109_v21 }
  0xa0   : > { %2980 = vmatprep.subr.bf16.mxu1 %v3109_v21  ;;  %2907 = vmatprep.mubr.bf16.mxu0 %v3313_v40 }
  0xa1   : > { %2939 = vmatprep.mubr.bf16.mxu1 %v3317_v41 }
  0xa2   : > { %2954 = vmatpush3.bf16.msra.mxu0 %v3109_v21 }
  0xa3   : > { %2988 = vmatpush3.bf16.msra.mxu1 %v3109_v21  ;;  %2955 = vmatprep.subr.bf16.mxu0 %v3110_v24 }
  0xa4   : > { %2981 = vmatprep.subr.bf16.mxu1 %v3110_v24 }
  0xa5   : > { %2908 = vmatmul.mubr.bf16.gmra.mxu0 %v3321_v42 }
  0xa6   : > { %2940 = vmatmul.mubr.bf16.gmra.mxu1 %v3332_v45  ;;  %2956 = vmatpush3.bf16.msra.mxu0 %v3110_v24 }
  0xa7   : > { %2989 = vmatpush3.bf16.msra.mxu1 %v3110_v24  ;;  %2957 = vmatprep.subr.bf16.mxu0 %v3111_v25 }
  0xa8   : > { %2982 = vmatprep.subr.bf16.mxu1 %v3111_v25  ;;  %2959 = vmatprep.mubr.bf16.mxu0 %v3341_v48 }
  0xa9   : > { %2967 = vmatprep.mubr.bf16.mxu1 %v3385_v60 }
  0xaa   : > { %2958 = vmatpush3.bf16.msra.mxu0 %v3111_v25 }
  0xab   : > { %2990 = vmatpush3.bf16.msra.mxu1 %v3111_v25 }
  0xad   : > { %2960 = vmatmul.mubr.bf16.vlgmr.msra.gmra.mxu0 %v3354_v51 }
  0xae   : > { %2968 = vmatmul.mubr.bf16.vlgmr.msra.gmra.mxu1 %v3398_v63  ;;  %2963 = vmatprep.mubr.bf16.mxu0 %v3363_v54 }
  0xaf   : > { %2971 = vmatprep.mubr.bf16.mxu1 %v3407_v2 }
  0xb5   : > { %2964 = vmatmul.mubr.bf16.gmra.mxu0 %v3376_v57 }
  0xb6   : > { %2972 = vmatmul.mubr.bf16.gmra.mxu1 %v3420_v5 }
  0xed   : > { %v2705_v26 = vpop.f32.mrf.mxu0 }
  0xee   : > { %v2737_v29 = vpop.f32.mrf.mxu1 }
  0xef   : > { %v637_v32 = vadd.f32 %v2737_v29, %v2705_v26  ;;  %v444_v33 = vpop.f32.mrf.mxu0 }
  0xf0   : > { %v629_v34 = vpop.f32.mrf.mxu1 }
  0xf1   : > { %v630_v37 = vadd.f32 %v629_v34, %v444_v33  ;;  %v2706_v38 = vpop.f32.mrf.mxu0 }
  0xf2   : > { %v2738_v39 = vpop.f32.mrf.mxu1 }
  0xf3   : > { %v447_v40 = vpop.f32.mrf.mxu0 }
  0xf4   : > { %v632_v41 = vpop.f32.mrf.mxu1 }
  0xf5   : > { %v2709_v42 = vpop.f32.mrf.mxu0 }
  0xf6   : > { %v2741_v43 = vpop.f32.mrf.mxu1 }
  0xf7   : > { %v651_v44 = vadd.f32 %v2741_v43, %v2709_v42  ;;  %v458_v45 = vpop.f32.mrf.mxu0 }
  0xf8   : > { %v643_v46 = vpop.f32.mrf.mxu1 }
  0xf9   : > { %v644_v47 = vadd.f32 %v643_v46, %v458_v45  ;;  %v2710_v48 = vpop.f32.mrf.mxu0 }
  0xfa   : > { %v2742_v49 = vpop.f32.mrf.mxu1 }
  0xfb   : > { %v461_v50 = vpop.f32.mrf.mxu0 }
  0xfc   : > { %v646_v51 = vpop.f32.mrf.mxu1 }
  0xfd   : > { %v2713_v52 = vpop.f32.mrf.mxu0 }
  0xfe   : > { %v2745_v53 = vpop.f32.mrf.mxu1 }
  0xff   : > { %v665_v54 = vadd.f32 %v2745_v53, %v2713_v52  ;;  %v472_v55 = vpop.f32.mrf.mxu0 }
 0x100   : > { %v657_v56 = vpop.f32.mrf.mxu1 }
 0x101   : > { %v658_v57 = vadd.f32 %v657_v56, %v472_v55  ;;  %v2714_v58 = vpop.f32.mrf.mxu0 }
 0x102   : > { %v2746_v59 = vpop.f32.mrf.mxu1 }
 0x103   : > { %v475_v60 = vpop.f32.mrf.mxu0 }
 0x104   : > { %v660_v61 = vpop.f32.mrf.mxu1 }
 0x105   : > { %v2717_v62 = vpop.f32.mrf.mxu0 }
 0x106   : > { %v2749_v63 = vpop.f32.mrf.mxu1 }
 0x107   : > { %v679_v0 = vadd.f32 %v2749_v63, %v2717_v62  ;;  %v486_v1 = vpop.f32.mrf.mxu0 }
 0x108   : > { %v671_v2 = vpop.f32.mrf.mxu1 }
 0x109   : > { %v672_v3 = vadd.f32 %v671_v2, %v486_v1  ;;  %v2718_v4 = vpop.f32.mrf.mxu0 }
 0x10a   : > { %v2750_v5 = vpop.f32.mrf.mxu1 }
 0x10b   : > { %v489_v6 = vpop.f32.mrf.mxu0 }
 0x10c   : > { %v674_v7 = vpop.f32.mrf.mxu1 }
 0x10d   : > { %v2769_v8 = vpop.f32.mrf.mxu0 }
 0x10e   : > { %v3542_v9 = vadd.f32 %v2769_v8, %v637_v32  ;;  %v2801_v10 = vpop.f32.mrf.mxu1 }
 0x10f   : > { %v851_v11 = vpop.f32.mrf.mxu0 }
 0x110   : > { %v3544_v14 = vadd.f32 %v851_v11, %v630_v37  ;;  %v1038_v15 = vpop.f32.mrf.mxu1 }
 0x111   : > { %v2770_v16 = vpop.f32.mrf.mxu0 }
 0x112   : > { %v2802_v17 = vpop.f32.mrf.mxu1 }
 0x113   : > { %v854_v19 = vpop.f32.mrf.mxu0 }
 0x114   : > { %v1041_v20 = vpop.f32.mrf.mxu1 }
 0x115   : > { %v2773_v22 = vpop.f32.mrf.mxu0 }
 0x116   : > { %v3546_v23 = vadd.f32 %v2773_v22, %v651_v44  ;;  %v2805_v27 = vpop.f32.mrf.mxu1 }
 0x117   : > { %v865_v28 = vpop.f32.mrf.mxu0 }
 0x118   : > { %v3548_v30 = vadd.f32 %v865_v28, %v644_v47  ;;  %v1054_v31 = vpop.f32.mrf.mxu1 }
 0x119   : > { %v2774_v35 = vpop.f32.mrf.mxu0 }
 0x11a   : > { %v2806_v36 = vpop.f32.mrf.mxu1 }
 0x11b   : > { %v868_v12 = vpop.f32.mrf.mxu0 }
 0x11c   : > { %v1057_v13 = vpop.f32.mrf.mxu1 }
 0x11d   : > { %v2777_v18 = vpop.f32.mrf.mxu0 }
 0x11e   : > { %v3550_v21 = vadd.f32 %v2777_v18, %v665_v54  ;;  %v2809_v24 = vpop.f32.mrf.mxu1 }
 0x11f   : > { %v879_v25 = vpop.f32.mrf.mxu0 }
 0x120   : > { %v3552_v26 = vadd.f32 %v879_v25, %v658_v57  ;;  %v3554_v29 = vpop.f32.mrf.mxu1 }
 0x121   : > { %v2778_v32 = vpop.f32.mrf.mxu0 }
 0x122   : > { %v3556_v33 = vpop.f32.mrf.mxu1 }
 0x123   : > { %v882_v34 = vpop.f32.mrf.mxu0 }
 0x124   : > { %v3558_v37 = vpop.f32.mrf.mxu1 }
 0x125   : > { %v2781_v38 = vpop.f32.mrf.mxu0 }
 0x126   : > { %v3560_v39 = vadd.f32 %v2781_v38, %v679_v0  ;;  %v3562_v40 = vpop.f32.mrf.mxu1 }
 0x127   : > { %v893_v41 = vpop.f32.mrf.mxu0 }
 0x128   : > { %v3564_v42 = vadd.f32 %v893_v41, %v672_v3  ;;  %v3566_v43 = vpop.f32.mrf.mxu1 }
 0x129   : > { %v2782_v44 = vpop.f32.mrf.mxu0 }
 0x12a   : > { %v3568_v45 = vpop.f32.mrf.mxu1 }
 0x12b   : > { %v896_v46 = vpop.f32.mrf.mxu0 }
 0x12c   : > { %v3570_v47 = vpop.f32.mrf.mxu1 }
 0x12d   : > { %v2833_v48 = vpop.f32.mrf.mxu0 }
 0x12e   : > { %v1192_v49 = vadd.f32 %v2833_v48, %v2801_v10  ;;  %v2865_v50 = vpop.f32.mrf.mxu1 }
 0x12f   : > { %v1183_v51 = vpop.f32.mrf.mxu0 }
 0x130   : > { %v1410_v52 = vadd.f32 %v2865_v50, %v1192_v49  ;;  %v1184_v53 = vadd.f32 %v1183_v51, %v1038_v15  ;;  %v1345_v54 = vpop.f32.mrf.mxu1 }
 0x131   : > { %v2834_v55 = vpop.f32.mrf.mxu0 }
 0x132   : > { %v1408_v56 = vadd.f32 %v1345_v54, %v1184_v53  ;;  %v1195_v57 = vadd.f32 %v2834_v55, %v2802_v17  ;;  %v2866_v58 = vpop.f32.mrf.mxu1  ;;  %v1444_v0 = vrot.slane %v1410_v52, 1 }
 0x133   : > { %v1186_v59 = vpop.f32.mrf.mxu0 }
 0x134   : > { %v1411_v60 = vadd.f32 %v2866_v58, %v1195_v57  ;;  %v1187_v61 = vadd.f32 %v1186_v59, %v1041_v20  ;;  %v1348_v62 = vpop.f32.mrf.mxu1  ;;  %v1441_v5 = vrot.slane %v1408_v56, 1 }
 0x135   : > { %v2837_v63 = vpop.f32.mrf.mxu0 }
 0x136   : > { %v1445_v1 = vrot.slane %v1411_v60, 1  ;;  %v1409_v2 = vadd.f32 %v1348_v62, %v1187_v61  ;;  %v1208_v3 = vadd.f32 %v2837_v63, %v2805_v27  ;;  %v2869_v4 = vpop.f32.mrf.mxu1 }
 0x137   : > { %v1199_v6 = vpop.f32.mrf.mxu0 }
 0x138   : > { %v1446_v7 = vsel %vm1440_vm0, %v1444_v0, %v1445_v1  ;;  %v1442_v8 = vrot.slane %v1409_v2, 1  ;;  %v1414_v10 = vadd.f32 %v2869_v4, %v1208_v3  ;;  %v1200_v11 = vadd.f32 %v1199_v6, %v1054_v31  ;;  %v1361_v15 = vpop.f32.mrf.mxu1 }
 0x139   : > { %v3574_v16 = vadd.f32 %v1446_v7, %v3542_v9  ;;  %v2838_v17 = vpop.f32.mrf.mxu0 }
 0x13a   : > { %v1443_v19 = vsel %vm1440_vm0, %v1441_v5, %v1442_v8  ;;  %v1412_v20 = vadd.f32 %v1361_v15, %v1200_v11  ;;  %v1211_v22 = vadd.f32 %v2838_v17, %v2806_v36  ;;  %v2870_v28 = vpop.f32.mrf.mxu1  ;;  %v1450_v34 = vrot.slane %v1414_v10, 1 }
 0x13b   : > { %v3578_v27 = vadd.f32 %v1443_v19, %v3544_v14  ;;  %v1202_v35 = vpop.f32.mrf.mxu0 }
 0x13c   : > { %v1415_v12 = vadd.f32 %v2870_v28, %v1211_v22  ;;  %v1203_v18 = vadd.f32 %v1202_v35, %v1057_v13  ;;  %v1364_v25 = vpop.f32.mrf.mxu1  ;;  %v1447_v46 = vrot.slane %v1412_v20, 1 }
 0x13d   : > { %v2841_v32 = vpop.f32.mrf.mxu0 }
 0x13e   : > { %v1451_v31 = vrot.slane %v1415_v12, 1  ;;  %v1413_v38 = vadd.f32 %v1364_v25, %v1203_v18  ;;  %v1224_v41 = vadd.f32 %v2841_v32, %v2809_v24  ;;  %v2873_v9 = vpop.f32.mrf.mxu1 }
 0x13f   : > { %v1215_v44 = vpop.f32.mrf.mxu0 }
 0x140   : > { %v1452_v48 = vsel %vm1440_vm0, %v1450_v34, %v1451_v31  ;;  %v1448_v49 = vrot.slane %v1413_v38, 1  ;;  %v1216_v36 = vadd.f32 %v1215_v44, %v3554_v29  ;;  %v1377_v50 = vpop.f32.mrf.mxu1  ;;  %v1418_v52 = vadd.f32 %v2873_v9, %v1224_v41 }
 0x141   : > { %v3583_v14 = vadd.f32 %v1452_v48, %v3546_v23  ;;  %v2842_v51 = vpop.f32.mrf.mxu0 }
 0x142   : > { %v1449_v13 = vsel %vm1440_vm0, %v1447_v46, %v1448_v49  ;;  %v1227_v53 = vadd.f32 %v2842_v51, %v3556_v33  ;;  %v2874_v54 = vpop.f32.mrf.mxu1  ;;  %v1416_v56 = vadd.f32 %v1377_v50, %v1216_v36  ;;  %v1456_v60 = vrot.slane %v1418_v52, 1 }
 0x143   : > { %v3588_v24 = vadd.f32 %v1449_v13, %v3548_v30  ;;  %v1218_v55 = vpop.f32.mrf.mxu0 }
 0x144   : > { %v1419_v57 = vadd.f32 %v2874_v54, %v1227_v53  ;;  %v1219_v58 = vadd.f32 %v1218_v55, %v3558_v37  ;;  %v1380_v29 = vpop.f32.mrf.mxu1  ;;  %v1453_v1 = vrot.slane %v1416_v56, 1 }
 0x145   : > { %v2845_v59 = vpop.f32.mrf.mxu0 }
 0x146   : > { %v1457_v23 = vrot.slane %v1419_v57, 1  ;;  %v1417_v61 = vadd.f32 %v1380_v29, %v1219_v58  ;;  %v1240_v62 = vadd.f32 %v2845_v59, %v3562_v40  ;;  %v2877_v63 = vpop.f32.mrf.mxu1 }
 0x147   : > { %v1231_v0 = vpop.f32.mrf.mxu0 }
 0x148   : > { %v1458_v33 = vsel %vm1440_vm0, %v1456_v60, %v1457_v23  ;;  %v1454_v2 = vrot.slane %v1417_v61, 1  ;;  %v1232_v30 = vadd.f32 %v1231_v0, %v3566_v43  ;;  %v1393_v3 = vpop.f32.mrf.mxu1  ;;  %v1422_v6 = vadd.f32 %v2877_v63, %v1240_v62 }
 0x149   : > { %v3595_v4 = vadd.f32 %v1458_v33, %v3550_v21  ;;  %v2846_v37 = vpop.f32.mrf.mxu0 }
 0x14a   : > { %v1455_v5 = vsel %vm1440_vm0, %v1453_v1, %v1454_v2  ;;  %v1243_v7 = vadd.f32 %v2846_v37, %v3568_v45  ;;  %v2878_v8 = vpop.f32.mrf.mxu1  ;;  %v1420_v11 = vadd.f32 %v1393_v3, %v1232_v30  ;;  %v1462_v20 = vrot.slane %v1422_v6, 1 }
 0x14b   : > { %v3600_v40 = vadd.f32 %v1455_v5, %v3552_v26  ;;  %v1234_v10 = vpop.f32.mrf.mxu0 }
 0x14c   : > { %v1423_v15 = vadd.f32 %v2878_v8, %v1243_v7  ;;  %v1235_v17 = vadd.f32 %v1234_v10, %v3570_v47  ;;  %v1396_v43 = vpop.f32.mrf.mxu1  ;;  %v1459_v12 = vrot.slane %v1420_v11, 1 }
 0x14d   : > { %v2897_v19 = vpop.f32.mrf.mxu0 }
 0x14e   : > { %v1463_v21 = vrot.slane %v1423_v15, 1  ;;  %v1421_v22 = vadd.f32 %v1396_v43, %v1235_v17  ;;  %v2929_v28 = vpop.f32.mrf.mxu1 }
 0x14f   : > { %v1597_v35 = vpop.f32.mrf.mxu0  ;;  %v1751_v0 = vadd.f32 %v2929_v28, %v2897_v19 }
 0x150   : > { %v1464_v18 = vsel %vm1440_vm0, %v1462_v20, %v1463_v21  ;;  %v1460_v45 = vrot.slane %v1421_v22, 1  ;;  %v1742_v25 = vpop.f32.mrf.mxu1 }
 0x151   : > { %v3605_v26 = vadd.f32 %v1464_v18, %v3560_v39  ;;  %v2898_v32 = vpop.f32.mrf.mxu0  ;;  %v1743_v33 = vadd.f32 %v1742_v25, %v1597_v35 }
 0x152   : > { %v1461_v34 = vsel %vm1440_vm0, %v1459_v12, %v1460_v45  ;;  %v2930_v31 = vpop.f32.mrf.mxu1 }
 0x153   : > { %v3609_v47 = vadd.f32 %v1461_v34, %v3564_v42  ;;  %v1600_v38 = vpop.f32.mrf.mxu0  ;;  %v1754_v3 = vadd.f32 %v2930_v31, %v2898_v32 }
 0x154   : > { %v1745_v41 = vpop.f32.mrf.mxu1 }
 0x155   : > { %v2901_v9 = vpop.f32.mrf.mxu0  ;;  %v1746_v37 = vadd.f32 %v1745_v41, %v1600_v38 }
 0x156   : > { %v2933_v44 = vpop.f32.mrf.mxu1 }
 0x157   : > { %v1613_v46 = vpop.f32.mrf.mxu0  ;;  %v1767_v8 = vadd.f32 %v2933_v44, %v2901_v9 }
 0x158   : > { %v1758_v48 = vpop.f32.mrf.mxu1 }
 0x159   : > { %v2902_v49 = vpop.f32.mrf.mxu0  ;;  %v1759_v43 = vadd.f32 %v1758_v48, %v1613_v46 }
 0x15a   : > { %v2934_v36 = vpop.f32.mrf.mxu1 }
 0x15b   : > { %v1616_v50 = vpop.f32.mrf.mxu0  ;;  %v1770_v20 = vadd.f32 %v2934_v36, %v2902_v49  ;;  %v2500_v49 = vld [vmem:[%s3645_s2] ss:$0 sm:$0xff] }
 0x15c   : > { %v1761_v51 = vpop.f32.mrf.mxu1 }
 0x15d   : > { %v2905_v13 = vpop.f32.mrf.mxu0  ;;  %v1762_v28 = vadd.f32 %v1761_v51, %v1616_v50 }
 0x15e   : > { %v2937_v39 = vpop.f32.mrf.mxu1 }
 0x15f   : > { %v1629_v52 = vpop.f32.mrf.mxu0  ;;  %v1783_v2 = vadd.f32 %v2937_v39, %v2905_v13 }
 0x160   : > { %v1774_v53 = vpop.f32.mrf.mxu1 }
 0x161   : > { %v2906_v54 = vpop.f32.mrf.mxu0  ;;  %v1775_v5 = vadd.f32 %v1774_v53, %v1629_v52 }
 0x162   : > { %v2938_v55 = vpop.f32.mrf.mxu1 }
 0x163   : > { %v1632_v56 = vpop.f32.mrf.mxu0  ;;  %v1786_v10 = vadd.f32 %v2938_v55, %v2906_v54 }
 0x164   : > { %v1777_v57 = vpop.f32.mrf.mxu1 }
 0x165   : > { %v2909_v42 = vpop.f32.mrf.mxu0  ;;  %v1778_v35 = vadd.f32 %v1777_v57, %v1632_v56 }
 0x166   : > { %v2941_v58 = vpop.f32.mrf.mxu1 }
 0x167   : > { %v1645_v29 = vpop.f32.mrf.mxu0  ;;  %v1799_v12 = vadd.f32 %v2941_v58, %v2909_v42 }
 0x168   : > { %v1790_v59 = vpop.f32.mrf.mxu1 }
 0x169   : > { %v2910_v60 = vpop.f32.mrf.mxu0  ;;  %v1791_v25 = vadd.f32 %v1790_v59, %v1645_v29 }
 0x16a   : > { %v2942_v23 = vpop.f32.mrf.mxu1 }
 0x16b   : > { %v1648_v61 = vpop.f32.mrf.mxu0  ;;  %v1802_v57 = vadd.f32 %v2942_v23, %v2910_v60 }
 0x16c   : > { %v1793_v62 = vpop.f32.mrf.mxu1 }
 0x16d   : > { %v2961_v63 = vpop.f32.mrf.mxu0 }
 0x16e   : > { %v2969_v1 = vpop.f32.mrf.mxu1  ;;  %v1969_v6 = vadd.f32 %v2961_v63, %v1751_v0  ;;  %v1794_v63 = vadd.f32 %v1793_v62, %v1648_v61 }
 0x16f   : > { %v1904_v30 = vpop.f32.mrf.mxu0  ;;  %v1977_v11 = vadd.f32 %v2969_v1, %v1783_v2 }
 0x170   : > { %v1936_v7 = vpop.f32.mrf.mxu1  ;;  %v1967_v15 = vadd.f32 %v1904_v30, %v1743_v33  ;;  %v2003_v32 = vrot.slane %v1969_v6, 2 }
 0x171   : > { %v2962_v17 = vpop.f32.mrf.mxu0  ;;  %v1975_v21 = vadd.f32 %v1936_v7, %v1775_v5  ;;  %v2015_v41 = vrot.slane %v1977_v11, 2 }
 0x172   : > { %v1970_v22 = vadd.f32 %v2962_v17, %v1754_v3  ;;  %v2970_v19 = vpop.f32.mrf.mxu1  ;;  %v2000_v9 = vrot.slane %v1967_v15, 2 }
 0x173   : > { %v1978_v18 = vadd.f32 %v2970_v19, %v1786_v10  ;;  %v1907_v45 = vpop.f32.mrf.mxu0  ;;  %v2012_v46 = vrot.slane %v1975_v21, 2 }
 0x174   : > { %v2004_v34 = vrot.slane %v1970_v22, 2  ;;  %v1968_v31 = vadd.f32 %v1907_v45, %v1746_v37  ;;  %v1939_v38 = vpop.f32.mrf.mxu1 }
 0x175   : > { %v2016_v44 = vrot.slane %v1978_v18, 2  ;;  %v1976_v13 = vadd.f32 %v1939_v38, %v1778_v35  ;;  %v2965_v39 = vpop.f32.mrf.mxu0 }
 0x176   : > { %v2005_v48 = vsel %vm1999_vm1, %v2003_v32, %v2004_v34  ;;  %v2001_v36 = vrot.slane %v1968_v31, 2  ;;  %v1973_v50 = vadd.f32 %v2965_v39, %v1767_v8  ;;  %v2973_v51 = vpop.f32.mrf.mxu1 }
 0x177   : > { %v2033_v52 = vadd.f32 %v2005_v48, %v3574_v16  ;;  %v2017_v53 = vsel %vm1999_vm1, %v2015_v41, %v2016_v44  ;;  %v2013_v54 = vrot.slane %v1976_v13, 2  ;;  %v1981_v55 = vadd.f32 %v2973_v51, %v1799_v12  ;;  %v1920_v56 = vpop.f32.mrf.mxu0 }
 0x178   : > { %v2037_v42 = vadd.f32 %v2017_v53, %v3595_v4  ;;  %v2002_v58 = vsel %vm1999_vm1, %v2000_v9, %v2001_v36  ;;  %v1971_v29 = vadd.f32 %v1920_v56, %v1759_v43  ;;  %v1952_v59 = vpop.f32.mrf.mxu1  ;;  %v2009_v3 = vrot.slane %v1973_v50, 2 }
 0x179   : > { %v2048_v0 = vadd.f32 %v2500_v49, %v2033_v52  ;;  %v2032_v1 = vadd.f32 %v2002_v58, %v3578_v27  ;;  %v2014_v33 = vsel %vm1999_vm1, %v2012_v46, %v2013_v54  ;;  %v2966_v16 = vpop.f32.mrf.mxu0  ;;  %v1979_v37 = vadd.f32 %v1952_v59, %v1791_v25 }
 0x17a   : > { %v2052_v2 = vadd.f32 %v2500_v49, %v2037_v42  ;;  %v2036_v30 = vadd.f32 %v2014_v33, %v3600_v40  ;;  %v2974_v5 = vpop.f32.mrf.mxu1  ;;  %v2021_v4 = vrot.slane %v1981_v55, 2  ;;  %v1974_v23 = vadd.f32 %v2966_v16, %v1770_v20 }
 0x17b   : > { %v2047_v60 = vadd.f32 %v2500_v49, %v2032_v1  ;;  %v1982_v6 = vadd.f32 %v2974_v5, %v1802_v57  ;;  %v1923_v7 = vpop.f32.mrf.mxu0  ;;  %v2056_v8 = vmax.f32 %v2048_v0, 0.0  ;;  %v2006_v62 = vrot.slane %v1971_v29, 2 }
 0x17c   : > { %v2051_v61 = vadd.f32 %v2500_v49, %v2036_v30  ;;  %v1972_v10 = vadd.f32 %v1923_v7, %v1762_v28  ;;  %v1955_v27 = vpop.f32.mrf.mxu1  ;;  %v2010_v15 = vrot.slane %v1974_v23, 2  ;;  %v2060_v21 = vmax.f32 %v2052_v2, 0.0 }
 0x17d   : > { %v2055_v11 = vmax.f32 %v2047_v60, 0.0  ;;  %v2022_v17 = vrot.slane %v1982_v6, 2  ;;  %v1980_v43 = vadd.f32 %v1955_v27, %v1794_v63  ;;  %v2018_v22 = vrot.slane %v1979_v37, 2 }
 0x17e   : > { %v2059_v40 = vmax.f32 %v2051_v61, 0.0  ;;  %v2007_v19 = vrot.slane %v1972_v10, 2  ;;  %v2011_v35 = vsel %vm1999_vm1, %v2009_v3, %v2010_v15 }
 0x17f   : > { %v2523_v20 = vpack.c.bf16 %v2056_v8, %v2055_v11  ;;  %v2023_v12 = vsel %vm1999_vm1, %v2021_v4, %v2022_v17  ;;  %v2019_v18 = vrot.slane %v1980_v43, 2  ;;  %v2035_v45 = vadd.f32 %v2011_v35, %v3583_v14 }
 0x180   : > { %v2533_v28 = vpack.c.bf16 %v2060_v21, %v2059_v40  ;;  %v2039_v25 = vadd.f32 %v2023_v12, %v3605_v26  ;;  %v2008_v32 = vsel %vm1999_vm1, %v2006_v62, %v2007_v19 }
 0x181   : > { %2524 = vst [vmem:[%s238_s6] sm:$0xff] %v2523_v20   ;;  %v2034_v34 = vadd.f32 %v2008_v32, %v3588_v24  ;;  %v2020_v31 = vsel %vm1999_vm1, %v2018_v22, %v2019_v18  ;;  %v2050_v38 = vadd.f32 %v2500_v49, %v2035_v45 }
 0x182   : > { %2541 = vst [vmem:[%s238_s6 + $0x10] sm:$0xff] %v2533_v28   ;;  %v2054_v41 = vadd.f32 %v2500_v49, %v2039_v25  ;;  %v2038_v9 = vadd.f32 %v2020_v31, %v3609_v47 }
 0x183   : > { %v2049_v44 = vadd.f32 %v2500_v49, %v2034_v34  ;;  %v2058_v39 = vmax.f32 %v2050_v38, 0.0 }
 0x184   : > { %v2053_v13 = vadd.f32 %v2500_v49, %v2038_v9  ;;  %v2062_v48 = vmax.f32 %v2054_v41, 0.0 }
 0x185   : > { %v2057_v46 = vmax.f32 %v2049_v44, 0.0 }
 0x186   : > { %v2061_v14 = vmax.f32 %v2053_v13, 0.0 }
 0x187   : > { %v2528_v36 = vpack.c.bf16 %v2058_v39, %v2057_v46 }
 0x188   : > { %v2538_v26 = vpack.c.bf16 %v2062_v48, %v2061_v14 }
 0x189   : > { %2540 = vst [vmem:[%s238_s6 + $0x8] sm:$0xff] %v2528_v36  }
 0x18a   : > { %2542 = vst [vmem:[%s238_s6 + $0x18] sm:$0xff] %v2538_v26  }
 0x18b PF: > { %s13_s14 = sadd.s32 1, %s3134_s14   ;;  %s3647_s12 = smov %s3130_s13 }
 0x18c   : > { %p10_p5 = scmp.ge.s32.totalorder %s13_s14, 4   ;;  %s3648_s13 = smov %s3650_s15 }
 0x18e   :  { %12 = sbr.rel (!%p10_p5) target bundleno = 2 (0x2), region = 79 }

// kernel: model.7
= control target key start
LH: loop header
LB: loop body
LE: loop exit
PB: predicated region body
PF: predicated region fallthrough
CT: control target
= control target key end

     0   :  { %s3302_s15 = smov 0   ;;  %s3304_s16 = smov 0   ;;  %s3845_s0 = inlined_call_operand.vmem [shape: bf16[2,10,16,128], index: 0, kind: input, shape index: {}]   ;;  %s3846_s1 = inlined_call_operand.vmem [shape: bf16[3,3,128,128], index: 1, kind: input, shape index: {}]   ;;  %s3847_s2 = inlined_call_operand.vmem [shape: f32[1,128], index: 2, kind: input, shape index: {}]   ;;  %s3848_s3 = inlined_call_operand.vmem [shape: bf16[2,64,128], index: 3, kind: input, shape index: {}]   ;;  %s3849_s4 = inlined_call_operand.vmem [shape: bf16[2,64,128], index: 4, kind: output, shape index: {}]  }
   0x1   :  { %s3306_s17 = smov 0  }
   0x2 LB: > { %s29_s18 = sadd.s32 1, %s3271_s16  ;;  %p2359_p0 = scmp.ge.s32.totalorder %s3275_s17, 1  ;;  %s3275_s17 = sphi %s3306_s17, %s14_s17   ;;  %s3271_s16 = sphi %s3304_s16, %s3856_s16   ;;  %s3267_s15 = sphi %s3302_s15, %s3855_s15  }
   0x3   : > { %p31_p1 = scmp.ge.s32.totalorder %s29_s18, 2  ;;  %p224_p2 = scmp.lt.s32.totalorder %s3275_s17, 3 }
   0x5   : > { %s3858_s18 = smov (%p31_p1, %s29_s18), 0  ;;  %p225_p3 = pnand %p2359_p0, %p224_p2 }
   0x6   : > { %p276_p4 = scmp.lt.s32.totalorder (!%p225_p3), %s3267_s15, 1 }
   0x7   : > { %228 = sbr.rel (%p225_p3) target bundleno = 399 (0x18f), region = 36 }
   0xc   : > { %v3157_v0 = vld [vmem:[%s3846_s1 + $0xf8] sm:$0xff]   ;;  %v3159_v2 = vld [vmem:[%s3846_s1 + $0xf0] sm:$0xff]   ;;  %v3161_v4 = vld [vmem:[%s3846_s1 + $0xe8] sm:$0xff]   ;;  %s3860_s15 = smov (!%p276_p4, %s3267_s15), 1  ;;  %vm1514_vm0 = vcmask 1046528   ;;  %vm2073_vm1 = vcmask 1045504  }
   0xd   : > { %v3158_v1 = vld [vmem:[%s3846_s1 + $0x38] sm:$0xff]   ;;  %2828 = vmatprep.subr.bf16.mxu0 %v3157_v0  ;;  %v3160_v3 = vld [vmem:[%s3846_s1 + $0x30] sm:$0xff]   ;;  %v3162_v5 = vld [vmem:[%s3846_s1 + $0x28] sm:$0xff]   ;;  %s3132_s9 = smul.u32 80, %s3860_s15  ;;  %s2632_s11 = sshll.u32 %s3860_s15, 5 }
   0xe   : > { %2860 = vmatprep.subr.bf16.mxu1 %v3158_v1  ;;  %2829 = vmatpush3.bf16.msra.mxu0 %v3157_v0  ;;  %v3163_v6 = vld [vmem:[%s3846_s1 + $0xe0] sm:$0xff]   ;;  %v3165_v8 = vld [vmem:[%s3846_s1 + $0xd8] sm:$0xff]   ;;  %v3167_v10 = vld [vmem:[%s3846_s1 + $0xd0] sm:$0xff]   ;;  %s3763_s14 = scalar_lea.vmem %s3848_s3, %s2632_s11  ;;  %s3816_s24 = scalar_lea.vmem %s3849_s4, %s2632_s11 }
   0xf   : > { %2861 = vmatpush3.bf16.msra.mxu1 %v3158_v1  ;;  %2830 = vmatprep.subr.bf16.mxu0 %v3159_v2  ;;  %v3164_v7 = vld [vmem:[%s3846_s1 + $0x20] sm:$0xff]   ;;  %v3166_v9 = vld [vmem:[%s3846_s1 + $0x18] sm:$0xff]   ;;  %s3356_s20 = scalar_lea.vmem %s3845_s0, %s3132_s9  ;;  %v3168_v11 = vld [vmem:[%s3846_s1 + $0x10] sm:$0xff]  }
  0x10   : > { %2862 = vmatprep.subr.bf16.mxu1 %v3160_v3  ;;  %v3365_v12 = vld [vmem:[%s3356_s20 + $0x8] sm:$0xff]   ;;  %v3368_v13 = vld [vmem:[%s3356_s20] sm:$0xff]   ;;  %v3385_v18 = vld [vmem:[%s3356_s20 + $0x10] sm:$0xff]  }
  0x11   : > { %2844 = vmatprep.mubr.bf16.mxu0 %v3365_v12  ;;  %2876 = vmatprep.mubr.bf16.mxu1 %v3368_v13  ;;  %v3169_v14 = vld [vmem:[%s3846_s1 + $0xc8] sm:$0xff]   ;;  %v3171_v16 = vld [vmem:[%s3846_s1 + $0xc0] sm:$0xff]   ;;  %v3177_v19 = vld [vmem:[%s3846_s1 + $0x1b8] sm:$0xff]  }
  0x12   : > { %2831 = vmatpush3.bf16.msra.mxu0 %v3159_v2  ;;  %v3170_v15 = vld [vmem:[%s3846_s1 + $0x8] sm:$0xff]   ;;  %v3172_v17 = vld [vmem:[%s3846_s1] sm:$0xff]   ;;  %v3178_v20 = vld [vmem:[%s3846_s1 + $0x138] sm:$0xff]  }
  0x13   : > { %2863 = vmatpush3.bf16.msra.mxu1 %v3160_v3  ;;  %2832 = vmatprep.subr.bf16.mxu0 %v3161_v4  ;;  %v3394_v21 = vld [vmem:[%s3356_s20 + $0x8] sm:$0xff]   ;;  %v3179_v22 = vld [vmem:[%s3846_s1 + $0x1b0] sm:$0xff]   ;;  %v3403_v24 = vld [vmem:[%s3356_s20 + $0x18] sm:$0xff]  }
  0x14   : > { %2864 = vmatprep.subr.bf16.mxu1 %v3162_v5  ;;  %v3180_v23 = vld [vmem:[%s3846_s1 + $0x130] sm:$0xff]   ;;  %v3411_v26 = vld [vmem:[%s3356_s20 + $0x20] sm:$0xff]   ;;  %v3185_v27 = vld [vmem:[%s3846_s1 + $0x1a8] sm:$0xff]  }
  0x15   : > { %v3407_v25 = vld [vmem:[%s3356_s20 + $0x10] sm:$0xff]   ;;  %v3186_v28 = vld [vmem:[%s3846_s1 + $0x128] sm:$0xff]   ;;  %v3422_v29 = vld [vmem:[%s3356_s20 + $0x18] sm:$0xff]  }
  0x16   : > { %2833 = vmatpush3.bf16.msra.mxu0 %v3161_v4  ;;  %v3187_v30 = vld [vmem:[%s3846_s1 + $0x1a0] sm:$0xff]   ;;  %v3431_v32 = vld [vmem:[%s3356_s20 + $0x28] sm:$0xff]   ;;  %v3439_v34 = vld [vmem:[%s3356_s20 + $0x30] sm:$0xff]  }
  0x17   : > { %2865 = vmatpush3.bf16.msra.mxu1 %v3162_v5  ;;  %2834 = vmatprep.subr.bf16.mxu0 %v3163_v6  ;;  %v3188_v31 = vld [vmem:[%s3846_s1 + $0x120] sm:$0xff]   ;;  %v3193_v35 = vld [vmem:[%s3846_s1 + $0x198] sm:$0xff]   ;;  %v3450_v37 = vld [vmem:[%s3356_s20 + $0x28] sm:$0xff]  }
  0x18   : > { %2866 = vmatprep.subr.bf16.mxu1 %v3164_v7  ;;  %v3435_v33 = vld [vmem:[%s3356_s20 + $0x20] sm:$0xff]   ;;  %v3194_v36 = vld [vmem:[%s3846_s1 + $0x118] sm:$0xff]   ;;  %v3195_v38 = vld [vmem:[%s3846_s1 + $0x190] sm:$0xff]  }
  0x19   : > { %v3196_v39 = vld [vmem:[%s3846_s1 + $0x110] sm:$0xff]   ;;  %v3459_v40 = vld [vmem:[%s3356_s20 + $0x38] sm:$0xff]   ;;  %v3467_v42 = vld [vmem:[%s3356_s20 + $0x40] sm:$0xff]  }
  0x1a   : > { %2835 = vmatpush3.bf16.msra.mxu0 %v3163_v6  ;;  %v3463_v41 = vld [vmem:[%s3356_s20 + $0x30] sm:$0xff]   ;;  %v3201_v43 = vld [vmem:[%s3846_s1 + $0x188] sm:$0xff]   ;;  %v3478_v45 = vld [vmem:[%s3356_s20 + $0x38] sm:$0xff]  }
  0x1b   : > { %2867 = vmatpush3.bf16.msra.mxu1 %v3164_v7  ;;  %2836 = vmatprep.subr.bf16.mxu0 %v3165_v8  ;;  %v3202_v44 = vld [vmem:[%s3846_s1 + $0x108] sm:$0xff]   ;;  %v3203_v46 = vld [vmem:[%s3846_s1 + $0x180] sm:$0xff]   ;;  %v3487_v48 = vld [vmem:[%s3356_s20 + $0x10] sm:$0xff]  }
  0x1c   : > { %2868 = vmatprep.subr.bf16.mxu1 %v3166_v9  ;;  %v3204_v47 = vld [vmem:[%s3846_s1 + $0x100] sm:$0xff]   ;;  %v3207_v49 = vld [vmem:[%s3846_s1 + $0x78] sm:$0xff]   ;;  %v3209_v52 = vld [vmem:[%s3846_s1 + $0x70] sm:$0xff]  }
  0x1d   : > { %v3208_v50 = vld [vmem:[%s3846_s1 + $0x1f8] sm:$0xff]   ;;  %v3210_v53 = vld [vmem:[%s3846_s1 + $0x1f0] sm:$0xff]   ;;  %v3509_v54 = vld [vmem:[%s3356_s20 + $0x20] sm:$0xff]  }
  0x1e   : > { %2837 = vmatpush3.bf16.msra.mxu0 %v3165_v8  ;;  %v3500_v51 = vld [vmem:[%s3356_s20 + $0x18] sm:$0xff]   ;;  %v3213_v55 = vld [vmem:[%s3846_s1 + $0x68] sm:$0xff]   ;;  %v3215_v58 = vld [vmem:[%s3846_s1 + $0x60] sm:$0xff]  }
  0x1f   : > { %2869 = vmatpush3.bf16.msra.mxu1 %v3166_v9  ;;  %2838 = vmatprep.subr.bf16.mxu0 %v3167_v10  ;;  %v3214_v56 = vld [vmem:[%s3846_s1 + $0x1e8] sm:$0xff]   ;;  %v3216_v59 = vld [vmem:[%s3846_s1 + $0x1e0] sm:$0xff]   ;;  %v3531_v60 = vld [vmem:[%s3356_s20 + $0x30] sm:$0xff]  }
  0x20   : > { %2870 = vmatprep.subr.bf16.mxu1 %v3168_v11  ;;  %v3522_v57 = vld [vmem:[%s3356_s20 + $0x28] sm:$0xff]   ;;  %v3219_v61 = vld [vmem:[%s3846_s1 + $0x58] sm:$0xff]   ;;  %v3221_v0 = vld [vmem:[%s3846_s1 + $0x50] sm:$0xff]  }
  0x21   : > { %v3220_v62 = vld [vmem:[%s3846_s1 + $0x1d8] sm:$0xff]   ;;  %v3222_v1 = vld [vmem:[%s3846_s1 + $0x1d0] sm:$0xff]   ;;  %v3553_v2 = vld [vmem:[%s3356_s20 + $0x40] sm:$0xff]  }
  0x22   : > { %2839 = vmatpush3.bf16.msra.mxu0 %v3167_v10  ;;  %v3544_v63 = vld [vmem:[%s3356_s20 + $0x38] sm:$0xff]   ;;  %v3225_v3 = vld [vmem:[%s3846_s1 + $0x48] sm:$0xff]   ;;  %v3227_v6 = vld [vmem:[%s3846_s1 + $0x40] sm:$0xff]  }
  0x23   : > { %2871 = vmatpush3.bf16.msra.mxu1 %v3168_v11  ;;  %2840 = vmatprep.subr.bf16.mxu0 %v3169_v14  ;;  %v3226_v4 = vld [vmem:[%s3846_s1 + $0x1c8] sm:$0xff]   ;;  %v3228_v7 = vld [vmem:[%s3846_s1 + $0x1c0] sm:$0xff]   ;;  %v3229_v8 = vld [vmem:[%s3846_s1 + $0x178] sm:$0xff]  }
  0x24   : > { %2872 = vmatprep.subr.bf16.mxu1 %v3170_v15  ;;  %v3566_v5 = vld [vmem:[%s3356_s20 + $0x48] sm:$0xff]   ;;  %v3230_v9 = vld [vmem:[%s3846_s1 + $0xb8] sm:$0xff]   ;;  %v3231_v10 = vld [vmem:[%s3846_s1 + $0x170] sm:$0xff]  }
  0x25   : > { %v3232_v11 = vld [vmem:[%s3846_s1 + $0xb0] sm:$0xff]  }
  0x26   : > { %2841 = vmatpush3.bf16.msra.mxu0 %v3169_v14  ;;  %v3233_v14 = vld [vmem:[%s3846_s1 + $0x168] sm:$0xff]  }
  0x27   : > { %2873 = vmatpush3.bf16.msra.mxu1 %v3170_v15  ;;  %2842 = vmatprep.subr.bf16.mxu0 %v3171_v16  ;;  %v3234_v15 = vld [vmem:[%s3846_s1 + $0xa8] sm:$0xff]  }
  0x28   : > { %2874 = vmatprep.subr.bf16.mxu1 %v3172_v17 }
  0x2a   : > { %2843 = vmatpush3.bf16.msra.mxu0 %v3171_v16  ;;  %v3235_v16 = vld [vmem:[%s3846_s1 + $0x160] sm:$0xff]  }
  0x2b   : > { %2875 = vmatpush3.bf16.msra.mxu1 %v3172_v17  ;;  %2892 = vmatprep.subr.bf16.mxu0 %v3177_v19  ;;  %v3236_v17 = vld [vmem:[%s3846_s1 + $0xa0] sm:$0xff]  }
  0x2c   : > { %2924 = vmatprep.subr.bf16.mxu1 %v3178_v20 }
  0x2d   : > { %2845 = vmatmul.mubr.bf16.vlgmr.msra.gmra.mxu0 %v3385_v18 }
  0x2e   : > { %2877 = vmatmul.mubr.bf16.vlgmr.msra.gmra.mxu1 %v3394_v21  ;;  %2893 = vmatpush3.bf16.msra.mxu0 %v3177_v19  ;;  %v3237_v19 = vld [vmem:[%s3846_s1 + $0x158] sm:$0xff]  }
  0x2f   : > { %2925 = vmatpush3.bf16.msra.mxu1 %v3178_v20  ;;  %2894 = vmatprep.subr.bf16.mxu0 %v3179_v22  ;;  %v3238_v20 = vld [vmem:[%s3846_s1 + $0x98] sm:$0xff]  }
  0x30   : > { %2926 = vmatprep.subr.bf16.mxu1 %v3180_v23  ;;  %2848 = vmatprep.mubr.bf16.mxu0 %v3403_v24 }
  0x31   : > { %2880 = vmatprep.mubr.bf16.mxu1 %v3407_v25 }
  0x32   : > { %2895 = vmatpush3.bf16.msra.mxu0 %v3179_v22  ;;  %v3239_v22 = vld [vmem:[%s3846_s1 + $0x150] sm:$0xff]  }
  0x33   : > { %2927 = vmatpush3.bf16.msra.mxu1 %v3180_v23  ;;  %2896 = vmatprep.subr.bf16.mxu0 %v3185_v27  ;;  %v3240_v23 = vld [vmem:[%s3846_s1 + $0x90] sm:$0xff]  }
  0x34   : > { %2928 = vmatprep.subr.bf16.mxu1 %v3186_v28 }
  0x35   : > { %2849 = vmatmul.mubr.bf16.gmra.mxu0 %v3411_v26 }
  0x36   : > { %2881 = vmatmul.mubr.bf16.gmra.mxu1 %v3422_v29  ;;  %2897 = vmatpush3.bf16.msra.mxu0 %v3185_v27  ;;  %v3241_v27 = vld [vmem:[%s3846_s1 + $0x148] sm:$0xff]  }
  0x37   : > { %2929 = vmatpush3.bf16.msra.mxu1 %v3186_v28  ;;  %2898 = vmatprep.subr.bf16.mxu0 %v3187_v30  ;;  %v3242_v28 = vld [vmem:[%s3846_s1 + $0x88] sm:$0xff]  }
  0x38   : > { %2930 = vmatprep.subr.bf16.mxu1 %v3188_v31  ;;  %2852 = vmatprep.mubr.bf16.mxu0 %v3431_v32 }
  0x39   : > { %2884 = vmatprep.mubr.bf16.mxu1 %v3435_v33 }
  0x3a   : > { %2899 = vmatpush3.bf16.msra.mxu0 %v3187_v30  ;;  %v3243_v30 = vld [vmem:[%s3846_s1 + $0x140] sm:$0xff]  }
  0x3b   : > { %2931 = vmatpush3.bf16.msra.mxu1 %v3188_v31  ;;  %2900 = vmatprep.subr.bf16.mxu0 %v3193_v35  ;;  %v3244_v31 = vld [vmem:[%s3846_s1 + $0x80] sm:$0xff]  }
  0x3c   : > { %2932 = vmatprep.subr.bf16.mxu1 %v3194_v36 }
  0x3d   : > { %2853 = vmatmul.mubr.bf16.gmra.mxu0 %v3439_v34 }
  0x3e   : > { %2885 = vmatmul.mubr.bf16.gmra.mxu1 %v3450_v37  ;;  %2901 = vmatpush3.bf16.msra.mxu0 %v3193_v35  ;;  %v3245_v35 = vld [vmem:[%s3846_s1 + $0x238] sm:$0xff]  }
  0x3f   : > { %2933 = vmatpush3.bf16.msra.mxu1 %v3194_v36  ;;  %2902 = vmatprep.subr.bf16.mxu0 %v3195_v38  ;;  %v3246_v36 = vld [vmem:[%s3846_s1 + $0x230] sm:$0xff]  }
  0x40   : > { %2934 = vmatprep.subr.bf16.mxu1 %v3196_v39  ;;  %2856 = vmatprep.mubr.bf16.mxu0 %v3459_v40 }
  0x41   : > { %2888 = vmatprep.mubr.bf16.mxu1 %v3463_v41 }
  0x42   : > { %2903 = vmatpush3.bf16.msra.mxu0 %v3195_v38 }
  0x43   : > { %2935 = vmatpush3.bf16.msra.mxu1 %v3196_v39  ;;  %2904 = vmatprep.subr.bf16.mxu0 %v3201_v43 }
  0x44   : > { %2936 = vmatprep.subr.bf16.mxu1 %v3202_v44 }
  0x45   : > { %2857 = vmatmul.mubr.bf16.gmra.mxu0 %v3467_v42 }
  0x46   : > { %2889 = vmatmul.mubr.bf16.gmra.mxu1 %v3478_v45  ;;  %2905 = vmatpush3.bf16.msra.mxu0 %v3201_v43 }
  0x47   : > { %2937 = vmatpush3.bf16.msra.mxu1 %v3202_v44  ;;  %2906 = vmatprep.subr.bf16.mxu0 %v3203_v46 }
  0x48   : > { %2938 = vmatprep.subr.bf16.mxu1 %v3204_v47  ;;  %2908 = vmatprep.mubr.bf16.mxu0 %v3487_v48 }
  0x49   : > { %2940 = vmatprep.mubr.bf16.mxu1 %v3365_v12 }
  0x4a   : > { %2907 = vmatpush3.bf16.msra.mxu0 %v3203_v46 }
  0x4b   : > { %2939 = vmatpush3.bf16.msra.mxu1 %v3204_v47  ;;  %2956 = vmatprep.subr.bf16.mxu0 %v3207_v49 }
  0x4c   : > { %2988 = vmatprep.subr.bf16.mxu1 %v3208_v50 }
  0x4d   : > { %2909 = vmatmul.mubr.bf16.vlgmr.msra.gmra.mxu0 %v3500_v51 }
  0x4e   : > { %2941 = vmatmul.mubr.bf16.vlgmr.msra.gmra.mxu1 %v3385_v18  ;;  %2957 = vmatpush3.bf16.msra.mxu0 %v3207_v49 }
  0x4f   : > { %2989 = vmatpush3.bf16.msra.mxu1 %v3208_v50  ;;  %2958 = vmatprep.subr.bf16.mxu0 %v3209_v52 }
  0x50   : > { %2990 = vmatprep.subr.bf16.mxu1 %v3210_v53  ;;  %2912 = vmatprep.mubr.bf16.mxu0 %v3509_v54 }
  0x51   : > { %2944 = vmatprep.mubr.bf16.mxu1 %v3403_v24 }
  0x52   : > { %2959 = vmatpush3.bf16.msra.mxu0 %v3209_v52 }
  0x53   : > { %2991 = vmatpush3.bf16.msra.mxu1 %v3210_v53  ;;  %2960 = vmatprep.subr.bf16.mxu0 %v3213_v55 }
  0x54   : > { %2992 = vmatprep.subr.bf16.mxu1 %v3214_v56 }
  0x55   : > { %2913 = vmatmul.mubr.bf16.gmra.mxu0 %v3522_v57 }
  0x56   : > { %2945 = vmatmul.mubr.bf16.gmra.mxu1 %v3411_v26  ;;  %2961 = vmatpush3.bf16.msra.mxu0 %v3213_v55 }
  0x57   : > { %2993 = vmatpush3.bf16.msra.mxu1 %v3214_v56  ;;  %2962 = vmatprep.subr.bf16.mxu0 %v3215_v58 }
  0x58   : > { %2994 = vmatprep.subr.bf16.mxu1 %v3216_v59  ;;  %2916 = vmatprep.mubr.bf16.mxu0 %v3531_v60 }
  0x59   : > { %2948 = vmatprep.mubr.bf16.mxu1 %v3431_v32 }
  0x5a   : > { %2963 = vmatpush3.bf16.msra.mxu0 %v3215_v58 }
  0x5b   : > { %2995 = vmatpush3.bf16.msra.mxu1 %v3216_v59  ;;  %2964 = vmatprep.subr.bf16.mxu0 %v3219_v61 }
  0x5c   : > { %2996 = vmatprep.subr.bf16.mxu1 %v3220_v62 }
  0x5d   : > { %2917 = vmatmul.mubr.bf16.gmra.mxu0 %v3544_v63 }
  0x5e   : > { %2949 = vmatmul.mubr.bf16.gmra.mxu1 %v3439_v34  ;;  %2965 = vmatpush3.bf16.msra.mxu0 %v3219_v61 }
  0x5f   : > { %2997 = vmatpush3.bf16.msra.mxu1 %v3220_v62  ;;  %2966 = vmatprep.subr.bf16.mxu0 %v3221_v0 }
  0x60   : > { %2998 = vmatprep.subr.bf16.mxu1 %v3222_v1  ;;  %2920 = vmatprep.mubr.bf16.mxu0 %v3553_v2 }
  0x61   : > { %2952 = vmatprep.mubr.bf16.mxu1 %v3459_v40 }
  0x62   : > { %2967 = vmatpush3.bf16.msra.mxu0 %v3221_v0 }
  0x63   : > { %2999 = vmatpush3.bf16.msra.mxu1 %v3222_v1  ;;  %2968 = vmatprep.subr.bf16.mxu0 %v3225_v3 }
  0x64   : > { %3000 = vmatprep.subr.bf16.mxu1 %v3226_v4 }
  0x65   : > { %2921 = vmatmul.mubr.bf16.gmra.mxu0 %v3566_v5 }
  0x66   : > { %2953 = vmatmul.mubr.bf16.gmra.mxu1 %v3467_v42  ;;  %2969 = vmatpush3.bf16.msra.mxu0 %v3225_v3 }
  0x67   : > { %3001 = vmatpush3.bf16.msra.mxu1 %v3226_v4  ;;  %2970 = vmatprep.subr.bf16.mxu0 %v3227_v6 }
  0x68   : > { %3002 = vmatprep.subr.bf16.mxu1 %v3228_v7  ;;  %2972 = vmatprep.mubr.bf16.mxu0 %v3368_v13 }
  0x69   : > { %3004 = vmatprep.mubr.bf16.mxu1 %v3487_v48 }
  0x6a   : > { %2971 = vmatpush3.bf16.msra.mxu0 %v3227_v6 }
  0x6b   : > { %3003 = vmatpush3.bf16.msra.mxu1 %v3228_v7  ;;  %3020 = vmatprep.subr.bf16.mxu0 %v3229_v8 }
  0x6c   : > { %3052 = vmatprep.subr.bf16.mxu1 %v3230_v9 }
  0x6d   : > { %2973 = vmatmul.mubr.bf16.vlgmr.msra.gmra.mxu0 %v3394_v21 }
  0x6e   : > { %3005 = vmatmul.mubr.bf16.vlgmr.msra.gmra.mxu1 %v3500_v51  ;;  %3021 = vmatpush3.bf16.msra.mxu0 %v3229_v8 }
  0x6f   : > { %3053 = vmatpush3.bf16.msra.mxu1 %v3230_v9  ;;  %3022 = vmatprep.subr.bf16.mxu0 %v3231_v10 }
  0x70   : > { %3054 = vmatprep.subr.bf16.mxu1 %v3232_v11  ;;  %2976 = vmatprep.mubr.bf16.mxu0 %v3407_v25 }
  0x71   : > { %3008 = vmatprep.mubr.bf16.mxu1 %v3509_v54 }
  0x72   : > { %3023 = vmatpush3.bf16.msra.mxu0 %v3231_v10 }
  0x73   : > { %3055 = vmatpush3.bf16.msra.mxu1 %v3232_v11  ;;  %3024 = vmatprep.subr.bf16.mxu0 %v3233_v14 }
  0x74   : > { %3056 = vmatprep.subr.bf16.mxu1 %v3234_v15 }
  0x75   : > { %2977 = vmatmul.mubr.bf16.gmra.mxu0 %v3422_v29 }
  0x76   : > { %3009 = vmatmul.mubr.bf16.gmra.mxu1 %v3522_v57  ;;  %3025 = vmatpush3.bf16.msra.mxu0 %v3233_v14 }
  0x77   : > { %3057 = vmatpush3.bf16.msra.mxu1 %v3234_v15  ;;  %3026 = vmatprep.subr.bf16.mxu0 %v3235_v16 }
  0x78   : > { %3058 = vmatprep.subr.bf16.mxu1 %v3236_v17  ;;  %2980 = vmatprep.mubr.bf16.mxu0 %v3435_v33 }
  0x79   : > { %3012 = vmatprep.mubr.bf16.mxu1 %v3531_v60 }
  0x7a   : > { %3027 = vmatpush3.bf16.msra.mxu0 %v3235_v16 }
  0x7b   : > { %3059 = vmatpush3.bf16.msra.mxu1 %v3236_v17  ;;  %3028 = vmatprep.subr.bf16.mxu0 %v3237_v19 }
  0x7c   : > { %3060 = vmatprep.subr.bf16.mxu1 %v3238_v20 }
  0x7d   : > { %2981 = vmatmul.mubr.bf16.gmra.mxu0 %v3450_v37 }
  0x7e   : > { %3013 = vmatmul.mubr.bf16.gmra.mxu1 %v3544_v63  ;;  %3029 = vmatpush3.bf16.msra.mxu0 %v3237_v19 }
  0x7f   : > { %3061 = vmatpush3.bf16.msra.mxu1 %v3238_v20  ;;  %3030 = vmatprep.subr.bf16.mxu0 %v3239_v22 }
  0x80   : > { %3062 = vmatprep.subr.bf16.mxu1 %v3240_v23  ;;  %2984 = vmatprep.mubr.bf16.mxu0 %v3463_v41 }
  0x81   : > { %3016 = vmatprep.mubr.bf16.mxu1 %v3553_v2 }
  0x82   : > { %3031 = vmatpush3.bf16.msra.mxu0 %v3239_v22 }
  0x83   : > { %3063 = vmatpush3.bf16.msra.mxu1 %v3240_v23  ;;  %3032 = vmatprep.subr.bf16.mxu0 %v3241_v27 }
  0x84   : > { %3064 = vmatprep.subr.bf16.mxu1 %v3242_v28 }
  0x85   : > { %2985 = vmatmul.mubr.bf16.gmra.mxu0 %v3478_v45 }
  0x86   : > { %3017 = vmatmul.mubr.bf16.gmra.mxu1 %v3566_v5  ;;  %3033 = vmatpush3.bf16.msra.mxu0 %v3241_v27 }
  0x87   : > { %3065 = vmatpush3.bf16.msra.mxu1 %v3242_v28  ;;  %3034 = vmatprep.subr.bf16.mxu0 %v3243_v30 }
  0x88   : > { %3066 = vmatprep.subr.bf16.mxu1 %v3244_v31  ;;  %3036 = vmatprep.mubr.bf16.mxu0 %v3365_v12  ;;  %v3247_v12 = vld [vmem:[%s3846_s1 + $0x228] sm:$0xff]  }
  0x89   : > { %3068 = vmatprep.mubr.bf16.mxu1 %v3368_v13  ;;  %v3248_v13 = vld [vmem:[%s3846_s1 + $0x220] sm:$0xff]  }
  0x8a   : > { %3035 = vmatpush3.bf16.msra.mxu0 %v3243_v30 }
  0x8b   : > { %3067 = vmatpush3.bf16.msra.mxu1 %v3244_v31  ;;  %3084 = vmatprep.subr.bf16.mxu0 %v3245_v35 }
  0x8c   : > { %3116 = vmatprep.subr.bf16.mxu1 %v3245_v35 }
  0x8d   : > { %3037 = vmatmul.mubr.bf16.vlgmr.msra.gmra.mxu0 %v3385_v18  ;;  %v3249_v18 = vld [vmem:[%s3846_s1 + $0x218] sm:$0xff]  }
  0x8e   : > { %3069 = vmatmul.mubr.bf16.vlgmr.msra.gmra.mxu1 %v3394_v21  ;;  %3085 = vmatpush3.bf16.msra.mxu0 %v3245_v35  ;;  %v3250_v21 = vld [vmem:[%s3846_s1 + $0x210] sm:$0xff]  }
  0x8f   : > { %3124 = vmatpush3.bf16.msra.mxu1 %v3245_v35  ;;  %3086 = vmatprep.subr.bf16.mxu0 %v3246_v36 }
  0x90   : > { %3117 = vmatprep.subr.bf16.mxu1 %v3246_v36  ;;  %3040 = vmatprep.mubr.bf16.mxu0 %v3403_v24  ;;  %v3251_v24 = vld [vmem:[%s3846_s1 + $0x208] sm:$0xff]  }
  0x91   : > { %3072 = vmatprep.mubr.bf16.mxu1 %v3407_v25  ;;  %v3252_v25 = vld [vmem:[%s3846_s1 + $0x200] sm:$0xff]  }
  0x92   : > { %3087 = vmatpush3.bf16.msra.mxu0 %v3246_v36 }
  0x93   : > { %3125 = vmatpush3.bf16.msra.mxu1 %v3246_v36  ;;  %3088 = vmatprep.subr.bf16.mxu0 %v3247_v12 }
  0x94   : > { %3118 = vmatprep.subr.bf16.mxu1 %v3247_v12 }
  0x95   : > { %3041 = vmatmul.mubr.bf16.gmra.mxu0 %v3411_v26 }
  0x96   : > { %3073 = vmatmul.mubr.bf16.gmra.mxu1 %v3422_v29  ;;  %3089 = vmatpush3.bf16.msra.mxu0 %v3247_v12 }
  0x97   : > { %3126 = vmatpush3.bf16.msra.mxu1 %v3247_v12  ;;  %3090 = vmatprep.subr.bf16.mxu0 %v3248_v13 }
  0x98   : > { %3119 = vmatprep.subr.bf16.mxu1 %v3248_v13  ;;  %3044 = vmatprep.mubr.bf16.mxu0 %v3431_v32 }
  0x99   : > { %3076 = vmatprep.mubr.bf16.mxu1 %v3435_v33 }
  0x9a   : > { %3091 = vmatpush3.bf16.msra.mxu0 %v3248_v13 }
  0x9b   : > { %3127 = vmatpush3.bf16.msra.mxu1 %v3248_v13  ;;  %3092 = vmatprep.subr.bf16.mxu0 %v3249_v18 }
  0x9c   : > { %3120 = vmatprep.subr.bf16.mxu1 %v3249_v18 }
  0x9d   : > { %3045 = vmatmul.mubr.bf16.gmra.mxu0 %v3439_v34 }
  0x9e   : > { %3077 = vmatmul.mubr.bf16.gmra.mxu1 %v3450_v37  ;;  %3093 = vmatpush3.bf16.msra.mxu0 %v3249_v18 }
  0x9f   : > { %3128 = vmatpush3.bf16.msra.mxu1 %v3249_v18  ;;  %3094 = vmatprep.subr.bf16.mxu0 %v3250_v21 }
  0xa0   : > { %3121 = vmatprep.subr.bf16.mxu1 %v3250_v21  ;;  %3048 = vmatprep.mubr.bf16.mxu0 %v3459_v40 }
  0xa1   : > { %3080 = vmatprep.mubr.bf16.mxu1 %v3463_v41 }
  0xa2   : > { %3095 = vmatpush3.bf16.msra.mxu0 %v3250_v21 }
  0xa3   : > { %3129 = vmatpush3.bf16.msra.mxu1 %v3250_v21  ;;  %3096 = vmatprep.subr.bf16.mxu0 %v3251_v24 }
  0xa4   : > { %3122 = vmatprep.subr.bf16.mxu1 %v3251_v24 }
  0xa5   : > { %3049 = vmatmul.mubr.bf16.gmra.mxu0 %v3467_v42 }
  0xa6   : > { %3081 = vmatmul.mubr.bf16.gmra.mxu1 %v3478_v45  ;;  %3097 = vmatpush3.bf16.msra.mxu0 %v3251_v24 }
  0xa7   : > { %3130 = vmatpush3.bf16.msra.mxu1 %v3251_v24  ;;  %3098 = vmatprep.subr.bf16.mxu0 %v3252_v25 }
  0xa8   : > { %3123 = vmatprep.subr.bf16.mxu1 %v3252_v25  ;;  %3100 = vmatprep.mubr.bf16.mxu0 %v3487_v48 }
  0xa9   : > { %3108 = vmatprep.mubr.bf16.mxu1 %v3531_v60 }
  0xaa   : > { %3099 = vmatpush3.bf16.msra.mxu0 %v3252_v25 }
  0xab   : > { %3131 = vmatpush3.bf16.msra.mxu1 %v3252_v25 }
  0xad   : > { %3101 = vmatmul.mubr.bf16.vlgmr.msra.gmra.mxu0 %v3500_v51 }
  0xae   : > { %3109 = vmatmul.mubr.bf16.vlgmr.msra.gmra.mxu1 %v3544_v63  ;;  %3104 = vmatprep.mubr.bf16.mxu0 %v3509_v54 }
  0xaf   : > { %3112 = vmatprep.mubr.bf16.mxu1 %v3553_v2 }
  0xb5   : > { %3105 = vmatmul.mubr.bf16.gmra.mxu0 %v3522_v57 }
  0xb6   : > { %3113 = vmatmul.mubr.bf16.gmra.mxu1 %v3566_v5 }
  0xed   : > { %v2846_v26 = vpop.f32.mrf.mxu0 }
  0xee   : > { %v2878_v29 = vpop.f32.mrf.mxu1 }
  0xef   : > { %v711_v32 = vadd.f32 %v2878_v29, %v2846_v26  ;;  %v518_v33 = vpop.f32.mrf.mxu0 }
  0xf0   : > { %v703_v34 = vpop.f32.mrf.mxu1 }
  0xf1   : > { %v704_v37 = vadd.f32 %v703_v34, %v518_v33  ;;  %v2847_v38 = vpop.f32.mrf.mxu0 }
  0xf2   : > { %v2879_v39 = vpop.f32.mrf.mxu1 }
  0xf3   : > { %v521_v40 = vpop.f32.mrf.mxu0 }
  0xf4   : > { %v706_v41 = vpop.f32.mrf.mxu1 }
  0xf5   : > { %v2850_v42 = vpop.f32.mrf.mxu0 }
  0xf6   : > { %v2882_v43 = vpop.f32.mrf.mxu1 }
  0xf7   : > { %v725_v44 = vadd.f32 %v2882_v43, %v2850_v42  ;;  %v532_v45 = vpop.f32.mrf.mxu0 }
  0xf8   : > { %v717_v46 = vpop.f32.mrf.mxu1 }
  0xf9   : > { %v718_v47 = vadd.f32 %v717_v46, %v532_v45  ;;  %v2851_v48 = vpop.f32.mrf.mxu0 }
  0xfa   : > { %v2883_v49 = vpop.f32.mrf.mxu1 }
  0xfb   : > { %v535_v50 = vpop.f32.mrf.mxu0 }
  0xfc   : > { %v720_v51 = vpop.f32.mrf.mxu1 }
  0xfd   : > { %v2854_v52 = vpop.f32.mrf.mxu0 }
  0xfe   : > { %v2886_v53 = vpop.f32.mrf.mxu1 }
  0xff   : > { %v739_v54 = vadd.f32 %v2886_v53, %v2854_v52  ;;  %v546_v55 = vpop.f32.mrf.mxu0 }
 0x100   : > { %v731_v56 = vpop.f32.mrf.mxu1 }
 0x101   : > { %v732_v57 = vadd.f32 %v731_v56, %v546_v55  ;;  %v2855_v58 = vpop.f32.mrf.mxu0 }
 0x102   : > { %v2887_v59 = vpop.f32.mrf.mxu1 }
 0x103   : > { %v549_v60 = vpop.f32.mrf.mxu0 }
 0x104   : > { %v734_v61 = vpop.f32.mrf.mxu1 }
 0x105   : > { %v2858_v62 = vpop.f32.mrf.mxu0 }
 0x106   : > { %v2890_v63 = vpop.f32.mrf.mxu1 }
 0x107   : > { %v753_v0 = vadd.f32 %v2890_v63, %v2858_v62  ;;  %v560_v1 = vpop.f32.mrf.mxu0 }
 0x108   : > { %v745_v2 = vpop.f32.mrf.mxu1 }
 0x109   : > { %v746_v3 = vadd.f32 %v745_v2, %v560_v1  ;;  %v2859_v4 = vpop.f32.mrf.mxu0 }
 0x10a   : > { %v2891_v5 = vpop.f32.mrf.mxu1 }
 0x10b   : > { %v563_v6 = vpop.f32.mrf.mxu0 }
 0x10c   : > { %v748_v7 = vpop.f32.mrf.mxu1 }
 0x10d   : > { %v2910_v8 = vpop.f32.mrf.mxu0 }
 0x10e   : > { %v3688_v9 = vadd.f32 %v2910_v8, %v711_v32  ;;  %v2942_v10 = vpop.f32.mrf.mxu1 }
 0x10f   : > { %v925_v11 = vpop.f32.mrf.mxu0 }
 0x110   : > { %v3690_v14 = vadd.f32 %v925_v11, %v704_v37  ;;  %v1112_v15 = vpop.f32.mrf.mxu1 }
 0x111   : > { %v2911_v16 = vpop.f32.mrf.mxu0 }
 0x112   : > { %v2943_v17 = vpop.f32.mrf.mxu1 }
 0x113   : > { %v928_v19 = vpop.f32.mrf.mxu0 }
 0x114   : > { %v1115_v20 = vpop.f32.mrf.mxu1 }
 0x115   : > { %v2914_v22 = vpop.f32.mrf.mxu0 }
 0x116   : > { %v3692_v23 = vadd.f32 %v2914_v22, %v725_v44  ;;  %v2946_v27 = vpop.f32.mrf.mxu1 }
 0x117   : > { %v939_v28 = vpop.f32.mrf.mxu0 }
 0x118   : > { %v3694_v30 = vadd.f32 %v939_v28, %v718_v47  ;;  %v1128_v31 = vpop.f32.mrf.mxu1 }
 0x119   : > { %v2915_v35 = vpop.f32.mrf.mxu0 }
 0x11a   : > { %v2947_v36 = vpop.f32.mrf.mxu1 }
 0x11b   : > { %v942_v12 = vpop.f32.mrf.mxu0 }
 0x11c   : > { %v1131_v13 = vpop.f32.mrf.mxu1 }
 0x11d   : > { %v2918_v18 = vpop.f32.mrf.mxu0 }
 0x11e   : > { %v3696_v21 = vadd.f32 %v2918_v18, %v739_v54  ;;  %v2950_v24 = vpop.f32.mrf.mxu1 }
 0x11f   : > { %v953_v25 = vpop.f32.mrf.mxu0 }
 0x120   : > { %v3698_v26 = vadd.f32 %v953_v25, %v732_v57  ;;  %v3700_v29 = vpop.f32.mrf.mxu1 }
 0x121   : > { %v2919_v32 = vpop.f32.mrf.mxu0 }
 0x122   : > { %v3702_v33 = vpop.f32.mrf.mxu1 }
 0x123   : > { %v956_v34 = vpop.f32.mrf.mxu0 }
 0x124   : > { %v3704_v37 = vpop.f32.mrf.mxu1 }
 0x125   : > { %v2922_v38 = vpop.f32.mrf.mxu0 }
 0x126   : > { %v3706_v39 = vadd.f32 %v2922_v38, %v753_v0  ;;  %v3708_v40 = vpop.f32.mrf.mxu1 }
 0x127   : > { %v967_v41 = vpop.f32.mrf.mxu0 }
 0x128   : > { %v3710_v42 = vadd.f32 %v967_v41, %v746_v3  ;;  %v3712_v43 = vpop.f32.mrf.mxu1 }
 0x129   : > { %v2923_v44 = vpop.f32.mrf.mxu0 }
 0x12a   : > { %v3714_v45 = vpop.f32.mrf.mxu1 }
 0x12b   : > { %v970_v46 = vpop.f32.mrf.mxu0 }
 0x12c   : > { %v3716_v47 = vpop.f32.mrf.mxu1 }
 0x12d   : > { %v2974_v48 = vpop.f32.mrf.mxu0 }
 0x12e   : > { %v1266_v49 = vadd.f32 %v2974_v48, %v2942_v10  ;;  %v3006_v50 = vpop.f32.mrf.mxu1 }
 0x12f   : > { %v1257_v51 = vpop.f32.mrf.mxu0 }
 0x130   : > { %v1484_v52 = vadd.f32 %v3006_v50, %v1266_v49  ;;  %v1258_v53 = vadd.f32 %v1257_v51, %v1112_v15  ;;  %v1419_v54 = vpop.f32.mrf.mxu1 }
 0x131   : > { %v2975_v55 = vpop.f32.mrf.mxu0 }
 0x132   : > { %v1482_v56 = vadd.f32 %v1419_v54, %v1258_v53  ;;  %v1269_v57 = vadd.f32 %v2975_v55, %v2943_v17  ;;  %v3007_v58 = vpop.f32.mrf.mxu1  ;;  %v1518_v0 = vrot.slane %v1484_v52, 1 }
 0x133   : > { %v1260_v59 = vpop.f32.mrf.mxu0 }
 0x134   : > { %v1485_v60 = vadd.f32 %v3007_v58, %v1269_v57  ;;  %v1261_v61 = vadd.f32 %v1260_v59, %v1115_v20  ;;  %v1422_v62 = vpop.f32.mrf.mxu1  ;;  %v1515_v5 = vrot.slane %v1482_v56, 1 }
 0x135   : > { %v2978_v63 = vpop.f32.mrf.mxu0 }
 0x136   : > { %v1519_v1 = vrot.slane %v1485_v60, 1  ;;  %v1483_v2 = vadd.f32 %v1422_v62, %v1261_v61  ;;  %v1282_v3 = vadd.f32 %v2978_v63, %v2946_v27  ;;  %v3010_v4 = vpop.f32.mrf.mxu1 }
 0x137   : > { %v1273_v6 = vpop.f32.mrf.mxu0 }
 0x138   : > { %v1520_v7 = vsel %vm1514_vm0, %v1518_v0, %v1519_v1  ;;  %v1516_v8 = vrot.slane %v1483_v2, 1  ;;  %v1488_v10 = vadd.f32 %v3010_v4, %v1282_v3  ;;  %v1274_v11 = vadd.f32 %v1273_v6, %v1128_v31  ;;  %v1435_v15 = vpop.f32.mrf.mxu1 }
 0x139   : > { %v3720_v16 = vadd.f32 %v1520_v7, %v3688_v9  ;;  %v2979_v17 = vpop.f32.mrf.mxu0 }
 0x13a   : > { %v1517_v19 = vsel %vm1514_vm0, %v1515_v5, %v1516_v8  ;;  %v1486_v20 = vadd.f32 %v1435_v15, %v1274_v11  ;;  %v1285_v22 = vadd.f32 %v2979_v17, %v2947_v36  ;;  %v3011_v28 = vpop.f32.mrf.mxu1  ;;  %v1524_v34 = vrot.slane %v1488_v10, 1 }
 0x13b   : > { %v3724_v27 = vadd.f32 %v1517_v19, %v3690_v14  ;;  %v1276_v35 = vpop.f32.mrf.mxu0 }
 0x13c   : > { %v1489_v12 = vadd.f32 %v3011_v28, %v1285_v22  ;;  %v1277_v18 = vadd.f32 %v1276_v35, %v1131_v13  ;;  %v1438_v25 = vpop.f32.mrf.mxu1  ;;  %v1521_v46 = vrot.slane %v1486_v20, 1 }
 0x13d   : > { %v2982_v32 = vpop.f32.mrf.mxu0 }
 0x13e   : > { %v1525_v31 = vrot.slane %v1489_v12, 1  ;;  %v1487_v38 = vadd.f32 %v1438_v25, %v1277_v18  ;;  %v1298_v41 = vadd.f32 %v2982_v32, %v2950_v24  ;;  %v3014_v9 = vpop.f32.mrf.mxu1 }
 0x13f   : > { %v1289_v44 = vpop.f32.mrf.mxu0 }
 0x140   : > { %v1526_v48 = vsel %vm1514_vm0, %v1524_v34, %v1525_v31  ;;  %v1522_v49 = vrot.slane %v1487_v38, 1  ;;  %v1290_v36 = vadd.f32 %v1289_v44, %v3700_v29  ;;  %v1451_v50 = vpop.f32.mrf.mxu1  ;;  %v1492_v52 = vadd.f32 %v3014_v9, %v1298_v41 }
 0x141   : > { %v3729_v14 = vadd.f32 %v1526_v48, %v3692_v23  ;;  %v2983_v51 = vpop.f32.mrf.mxu0 }
 0x142   : > { %v1523_v13 = vsel %vm1514_vm0, %v1521_v46, %v1522_v49  ;;  %v1301_v53 = vadd.f32 %v2983_v51, %v3702_v33  ;;  %v3015_v54 = vpop.f32.mrf.mxu1  ;;  %v1490_v56 = vadd.f32 %v1451_v50, %v1290_v36  ;;  %v1530_v60 = vrot.slane %v1492_v52, 1 }
 0x143   : > { %v3734_v24 = vadd.f32 %v1523_v13, %v3694_v30  ;;  %v1292_v55 = vpop.f32.mrf.mxu0 }
 0x144   : > { %v1493_v57 = vadd.f32 %v3015_v54, %v1301_v53  ;;  %v1293_v58 = vadd.f32 %v1292_v55, %v3704_v37  ;;  %v1454_v29 = vpop.f32.mrf.mxu1  ;;  %v1527_v1 = vrot.slane %v1490_v56, 1 }
 0x145   : > { %v2986_v59 = vpop.f32.mrf.mxu0 }
 0x146   : > { %v1531_v23 = vrot.slane %v1493_v57, 1  ;;  %v1491_v61 = vadd.f32 %v1454_v29, %v1293_v58  ;;  %v1314_v62 = vadd.f32 %v2986_v59, %v3708_v40  ;;  %v3018_v63 = vpop.f32.mrf.mxu1 }
 0x147   : > { %v1305_v0 = vpop.f32.mrf.mxu0 }
 0x148   : > { %v1532_v33 = vsel %vm1514_vm0, %v1530_v60, %v1531_v23  ;;  %v1528_v2 = vrot.slane %v1491_v61, 1  ;;  %v1306_v30 = vadd.f32 %v1305_v0, %v3712_v43  ;;  %v1467_v3 = vpop.f32.mrf.mxu1  ;;  %v1496_v6 = vadd.f32 %v3018_v63, %v1314_v62  ;;  %v3766_v61 = vld [vmem:[%s3763_s14] sm:$0xff]   ;;  %v3771_v63 = vld [vmem:[%s3763_s14 + $0x10] sm:$0xff]  }
 0x149   : > { %v3741_v4 = vadd.f32 %v1532_v33, %v3696_v21  ;;  %v2987_v37 = vpop.f32.mrf.mxu0 }
 0x14a   : > { %v1529_v5 = vsel %vm1514_vm0, %v1527_v1, %v1528_v2  ;;  %v1317_v7 = vadd.f32 %v2987_v37, %v3714_v45  ;;  %v3019_v8 = vpop.f32.mrf.mxu1  ;;  %v1494_v11 = vadd.f32 %v1467_v3, %v1306_v30  ;;  %v1536_v20 = vrot.slane %v1496_v6, 1  ;;  %v3774_v1 = vld [vmem:[%s3763_s14 + $0x8] sm:$0xff]  }
 0x14b   : > { %v3746_v40 = vadd.f32 %v1529_v5, %v3698_v26  ;;  %v1308_v10 = vpop.f32.mrf.mxu0  ;;  %v2645_v2 = vunpack.c.h.bf16 %v3766_v61 }
 0x14c   : > { %v1497_v15 = vadd.f32 %v3019_v8, %v1317_v7  ;;  %v1309_v17 = vadd.f32 %v1308_v10, %v3716_v47  ;;  %v1470_v43 = vpop.f32.mrf.mxu1  ;;  %v1533_v12 = vrot.slane %v1494_v11, 1 }
 0x14d   : > { %v3038_v19 = vpop.f32.mrf.mxu0 }
 0x14e   : > { %v1537_v21 = vrot.slane %v1497_v15, 1  ;;  %v1495_v22 = vadd.f32 %v1470_v43, %v1309_v17  ;;  %v3070_v28 = vpop.f32.mrf.mxu1 }
 0x14f   : > { %v1671_v35 = vpop.f32.mrf.mxu0  ;;  %v1825_v30 = vadd.f32 %v3070_v28, %v3038_v19 }
 0x150   : > { %v1538_v18 = vsel %vm1514_vm0, %v1536_v20, %v1537_v21  ;;  %v1534_v45 = vrot.slane %v1495_v22, 1  ;;  %v1816_v25 = vpop.f32.mrf.mxu1 }
 0x151   : > { %v3751_v26 = vadd.f32 %v1538_v18, %v3706_v39  ;;  %v3039_v32 = vpop.f32.mrf.mxu0  ;;  %v1817_v7 = vadd.f32 %v1816_v25, %v1671_v35 }
 0x152   : > { %v1535_v34 = vsel %vm1514_vm0, %v1533_v12, %v1534_v45  ;;  %v3071_v31 = vpop.f32.mrf.mxu1 }
 0x153   : > { %v3755_v47 = vadd.f32 %v1535_v34, %v3710_v42  ;;  %v1674_v38 = vpop.f32.mrf.mxu0  ;;  %v1828_v17 = vadd.f32 %v3071_v31, %v3039_v32 }
 0x154   : > { %v1819_v41 = vpop.f32.mrf.mxu1 }
 0x155   : > { %v3042_v9 = vpop.f32.mrf.mxu0  ;;  %v1820_v43 = vadd.f32 %v1819_v41, %v1674_v38 }
 0x156   : > { %v3074_v44 = vpop.f32.mrf.mxu1 }
 0x157   : > { %v1687_v46 = vpop.f32.mrf.mxu0  ;;  %v1841_v19 = vadd.f32 %v3074_v44, %v3042_v9 }
 0x158   : > { %v1832_v48 = vpop.f32.mrf.mxu1 }
 0x159   : > { %v3043_v49 = vpop.f32.mrf.mxu0  ;;  %v1833_v34 = vadd.f32 %v1832_v48, %v1687_v46 }
 0x15a   : > { %v3075_v36 = vpop.f32.mrf.mxu1 }
 0x15b   : > { %v1690_v50 = vpop.f32.mrf.mxu0  ;;  %v1844_v5 = vadd.f32 %v3075_v36, %v3043_v49  ;;  %v3786_v49 = vld [vmem:[%s3847_s2] ss:$0 sm:$0xff] }
 0x15c   : > { %v1835_v39 = vpop.f32.mrf.mxu1 }
 0x15d   : > { %v3046_v51 = vpop.f32.mrf.mxu0 }
 0x15e   : > { %v3078_v13 = vpop.f32.mrf.mxu1 }
 0x15f   : > { %v1703_v52 = vpop.f32.mrf.mxu0  ;;  %v1857_v8 = vadd.f32 %v3078_v13, %v3046_v51  ;;  %v1836_v51 = vadd.f32 %v1835_v39, %v1690_v50 }
 0x160   : > { %v1848_v53 = vpop.f32.mrf.mxu1 }
 0x161   : > { %v3047_v54 = vpop.f32.mrf.mxu0  ;;  %v1849_v20 = vadd.f32 %v1848_v53, %v1703_v52 }
 0x162   : > { %v3079_v55 = vpop.f32.mrf.mxu1 }
 0x163   : > { %v1706_v42 = vpop.f32.mrf.mxu0  ;;  %v1860_v28 = vadd.f32 %v3079_v55, %v3047_v54 }
 0x164   : > { %v1851_v56 = vpop.f32.mrf.mxu1 }
 0x165   : > { %v3050_v57 = vpop.f32.mrf.mxu0  ;;  %v1852_v13 = vadd.f32 %v1851_v56, %v1706_v42 }
 0x166   : > { %v3082_v58 = vpop.f32.mrf.mxu1 }
 0x167   : > { %v1719_v29 = vpop.f32.mrf.mxu0  ;;  %v1873_v11 = vadd.f32 %v3082_v58, %v3050_v57 }
 0x168   : > { %v1864_v59 = vpop.f32.mrf.mxu1 }
 0x169   : > { %v3051_v60 = vpop.f32.mrf.mxu0  ;;  %v1865_v32 = vadd.f32 %v1864_v59, %v1719_v29 }
 0x16a   : > { %v3083_v23 = vpop.f32.mrf.mxu1 }
 0x16b   : > { %v3768_v62 = vpop.f32.mrf.mxu0  ;;  %v1876_v59 = vadd.f32 %v3083_v23, %v3051_v60 }
 0x16c   : > { %v1867_v0 = vpop.f32.mrf.mxu1 }
 0x16d   : > { %v3102_v33 = vpop.f32.mrf.mxu0 }
 0x16e   : > { %v3110_v3 = vpop.f32.mrf.mxu1  ;;  %v2043_v21 = vadd.f32 %v3102_v33, %v1825_v30 }
 0x16f   : > { %v1978_v10 = vpop.f32.mrf.mxu0  ;;  %v2051_v12 = vadd.f32 %v3110_v3, %v1857_v8 }
 0x170   : > { %v2010_v22 = vpop.f32.mrf.mxu1  ;;  %v2041_v18 = vadd.f32 %v1978_v10, %v1817_v7  ;;  %v2077_v31 = vrot.slane %v2043_v21, 2 }
 0x171   : > { %v3103_v45 = vpop.f32.mrf.mxu0  ;;  %v2049_v6 = vadd.f32 %v2010_v22, %v1849_v20  ;;  %v2089_v9 = vrot.slane %v2051_v12, 2  ;;  %v3851_v12 = vunpack.c.l.bf16 %v3766_v61 }
 0x172   : > { %v2044_v35 = vadd.f32 %v3103_v45, %v1828_v17  ;;  %v3111_v25 = vpop.f32.mrf.mxu1  ;;  %v2074_v44 = vrot.slane %v2041_v18, 2 }
 0x173   : > { %v2052_v37 = vadd.f32 %v3111_v25, %v1860_v28  ;;  %v1981_v15 = vpop.f32.mrf.mxu0  ;;  %v2086_v46 = vrot.slane %v2049_v6, 2  ;;  %v1868_v6 = vadd.f32 %v1867_v0, %v3768_v62 }
 0x174   : > { %v2078_v38 = vrot.slane %v2044_v35, 2  ;;  %v2042_v41 = vadd.f32 %v1981_v15, %v1820_v43  ;;  %v2013_v52 = vpop.f32.mrf.mxu1 }
 0x175   : > { %v2090_v53 = vrot.slane %v2052_v37, 2  ;;  %v2050_v54 = vadd.f32 %v2013_v52, %v1852_v13  ;;  %v3106_v55 = vpop.f32.mrf.mxu0 }
 0x176   : > { %v2079_v48 = vsel %vm2073_vm1, %v2077_v31, %v2078_v38  ;;  %v2075_v36 = vrot.slane %v2042_v41, 2  ;;  %v2047_v50 = vadd.f32 %v3106_v55, %v1841_v19  ;;  %v3114_v39 = vpop.f32.mrf.mxu1 }
 0x177   : > { %v2107_v42 = vadd.f32 %v2079_v48, %v3720_v16  ;;  %v2091_v56 = vsel %vm2073_vm1, %v2089_v9, %v2090_v53  ;;  %v2087_v57 = vrot.slane %v2050_v54, 2  ;;  %v2055_v58 = vadd.f32 %v3114_v39, %v1873_v11  ;;  %v1994_v29 = vpop.f32.mrf.mxu0 }
 0x178   : > { %v2111_v33 = vadd.f32 %v2091_v56, %v3741_v4  ;;  %v2076_v30 = vsel %vm2073_vm1, %v2074_v44, %v2075_v36  ;;  %v2045_v3 = vadd.f32 %v1994_v29, %v1833_v34  ;;  %v2026_v37 = vpop.f32.mrf.mxu1  ;;  %v2083_v60 = vrot.slane %v2047_v50, 2 }
 0x179   : > { %v2122_v7 = vadd.f32 %v3786_v49, %v2107_v42  ;;  %v2106_v8 = vadd.f32 %v2076_v30, %v3724_v27  ;;  %v2088_v16 = vsel %vm2073_vm1, %v2086_v46, %v2087_v57  ;;  %v3107_v10 = vpop.f32.mrf.mxu0  ;;  %v2095_v23 = vrot.slane %v2055_v58, 2 }
 0x17a   : > { %v2126_v15 = vadd.f32 %v3786_v49, %v2111_v33  ;;  %v2110_v11 = vadd.f32 %v2088_v16, %v3746_v40  ;;  %v3115_v4 = vpop.f32.mrf.mxu1  ;;  %v2048_v62 = vadd.f32 %v3107_v10, %v1844_v5  ;;  %v3850_v27 = vunpack.c.h.bf16 %v3771_v63 }
 0x17b   : > { %v2146_v17 = vadd.f32 %v2645_v2, %v2122_v7  ;;  %v2121_v43 = vadd.f32 %v3786_v49, %v2106_v8  ;;  %v2056_v0 = vadd.f32 %v3115_v4, %v1876_v59  ;;  %v1997_v20 = vpop.f32.mrf.mxu0  ;;  %v2080_v19 = vrot.slane %v2045_v3, 2 }
 0x17c   : > { %v2150_v21 = vadd.f32 %v3850_v27, %v2126_v15  ;;  %v2125_v22 = vadd.f32 %v3786_v49, %v2110_v11  ;;  %v2046_v40 = vadd.f32 %v1997_v20, %v1836_v51  ;;  %v2029_v28 = vpop.f32.mrf.mxu1  ;;  %v2053_v45 = vadd.f32 %v2026_v37, %v1865_v32  ;;  %v2680_v51 = vld [vmem:[%s3763_s14 + $0x18] sm:$0xff]  }
 0x17d   : > { %v2145_v18 = vadd.f32 %v3851_v12, %v2121_v43  ;;  %v2084_v2 = vrot.slane %v2048_v62, 2  ;;  %v2096_v34 = vrot.slane %v2056_v0, 2  ;;  %v2154_v35 = vmax.f32 %v2146_v17, 0.0 }
 0x17e   : > { %v3852_v5 = vunpack.c.l.bf16 %v3771_v63  ;;  %v2081_v13 = vrot.slane %v2046_v40, 2  ;;  %v2054_v31 = vadd.f32 %v2029_v28, %v1868_v6  ;;  %v2158_v38 = vmax.f32 %v2150_v21, 0.0 }
 0x17f   : > { %v2153_v41 = vmax.f32 %v2145_v18, 0.0  ;;  %v2085_v52 = vsel %vm2073_vm1, %v2083_v60, %v2084_v2  ;;  %v2097_v9 = vsel %vm2073_vm1, %v2095_v23, %v2096_v34  ;;  %v2092_v54 = vrot.slane %v2053_v45, 2 }
 0x180   : > { %v2149_v25 = vadd.f32 %v3852_v5, %v2125_v22  ;;  %v2109_v63 = vadd.f32 %v2085_v52, %v3729_v14  ;;  %v2113_v32 = vadd.f32 %v2097_v9, %v3751_v26  ;;  %v2082_v44 = vsel %vm2073_vm1, %v2080_v19, %v2081_v13 }
 0x181   : > { %v2661_v53 = vpack.c.bf16 %v2154_v35, %v2153_v41  ;;  %v2108_v55 = vadd.f32 %v2082_v44, %v3734_v24  ;;  %v2093_v46 = vrot.slane %v2054_v31, 2  ;;  %v2657_v39 = vunpack.c.h.bf16 %v2680_v51 }
 0x182   : > { %v2157_v61 = vmax.f32 %v2149_v25, 0.0  ;;  %v2124_v36 = vadd.f32 %v3786_v49, %v2109_v63  ;;  %v2128_v50 = vadd.f32 %v3786_v49, %v2113_v32  ;;  %v3853_v26 = vunpack.c.h.bf16 %v3774_v1 }
 0x183   : > { %2662 = vst [vmem:[%s3816_s24] sm:$0xff] %v2661_v53   ;;  %v2123_v42 = vadd.f32 %v3786_v49, %v2108_v55  ;;  %v2094_v14 = vsel %vm2073_vm1, %v2092_v54, %v2093_v46  ;;  %v2656_v57 = vunpack.c.l.bf16 %v2680_v51  ;;  %v3854_v58 = vunpack.c.l.bf16 %v3774_v1 }
 0x184   : > { %v2671_v48 = vpack.c.bf16 %v2158_v38, %v2157_v61  ;;  %v2148_v56 = vadd.f32 %v3853_v26, %v2124_v36  ;;  %v2112_v24 = vadd.f32 %v2094_v14, %v3755_v47  ;;  %v2152_v59 = vadd.f32 %v2657_v39, %v2128_v50 }
 0x185   : > { %v2147_v29 = vadd.f32 %v3854_v58, %v2123_v42 }
 0x186   : > { %2682 = vst [vmem:[%s3816_s24 + $0x10] sm:$0xff] %v2671_v48   ;;  %v2127_v33 = vadd.f32 %v3786_v49, %v2112_v24  ;;  %v2156_v30 = vmax.f32 %v2148_v56, 0.0  ;;  %v2160_v7 = vmax.f32 %v2152_v59, 0.0 }
 0x187   : > { %v2155_v3 = vmax.f32 %v2147_v29, 0.0 }
 0x188   : > { %v2151_v37 = vadd.f32 %v2656_v57, %v2127_v33 }
 0x189   : > { %v2666_v6 = vpack.c.bf16 %v2156_v30, %v2155_v3 }
 0x18a   : > { %v2159_v8 = vmax.f32 %v2151_v37, 0.0 }
 0x18b   : > { %2681 = vst [vmem:[%s3816_s24 + $0x8] sm:$0xff] %v2666_v6  }
 0x18c   : > { %v2676_v16 = vpack.c.bf16 %v2160_v7, %v2159_v8 }
 0x18e   : > { %2683 = vst [vmem:[%s3816_s24 + $0x18] sm:$0xff] %v2676_v16  }
 0x18f PF: > { %s14_s17 = sadd.s32 1, %s3275_s17   ;;  %s3855_s15 = smov %s3271_s16 }
 0x190   : > { %p11_p5 = scmp.ge.s32.totalorder %s14_s17, 4   ;;  %s3856_s16 = smov %s3858_s18 }
 0x192   :  { %13 = sbr.rel (!%p11_p5) target bundleno = 2 (0x2), region = 86 }

// kernel: model.5
= control target key start
LH: loop header
LB: loop body
LE: loop exit
PB: predicated region body
PF: predicated region fallthrough
CT: control target
= control target key end

     0   :  { %s3024_s12 = smov 0   ;;  %s3026_s13 = smov 0   ;;  %s3476_s0 = inlined_call_operand.vmem [shape: bf16[2,36,16,64], index: 0, kind: input, shape index: {}]   ;;  %s3477_s1 = inlined_call_operand.vmem [shape: bf16[3,3,64,128], index: 1, kind: input, shape index: {}]   ;;  %s3478_s2 = inlined_call_operand.vmem [shape: f32[1,128], index: 2, kind: input, shape index: {}]   ;;  %s3479_s3 = inlined_call_operand.vmem [shape: bf16[2,64,128], index: 3, kind: output, shape index: {}]  }
   0x1   :  { %s3028_s14 = smov 0  }
   0x2 LB: > { %s28_s15 = sadd.s32 1, %s2998_s13  ;;  %p2192_p0 = scmp.ge.s32.totalorder %s3002_s14, 1  ;;  %s3002_s14 = sphi %s3028_s14, %s13_s14   ;;  %s2998_s13 = sphi %s3026_s13, %s3481_s13   ;;  %s2994_s12 = sphi %s3024_s12, %s3480_s12  }
   0x3   : > { %p30_p1 = scmp.ge.s32.totalorder %s28_s15, 2  ;;  %p177_p2 = scmp.lt.s32.totalorder %s3002_s14, 3 }
   0x5   : > { %s3483_s15 = smov (%p30_p1, %s28_s15), 0  ;;  %p178_p3 = pnand %p2192_p0, %p177_p2 }
   0x6   : > { %p215_p4 = scmp.lt.s32.totalorder (!%p178_p3), %s2994_s12, 1 }
   0x7   : > { %181 = sbr.rel (%p178_p3) target bundleno = 380 (0x17c), region = 32 }
   0xc   : > { %v2896_v0 = vld [vmem:[%s3477_s1 + $0x38] sm:$0xff]   ;;  %v2897_v1 = vld [vmem:[%s3477_s1 + $0x30] sm:$0xff]   ;;  %s3485_s12 = smov (!%p215_p4, %s2994_s12), 1  ;;  %v2898_v2 = vld [vmem:[%s3477_s1 + $0x28] sm:$0xff]   ;;  %vm362_vm0 = vcmask 523264   ;;  %vm1939_vm1 = vcmask 1046528  }
   0xd   : > { %2647 = vmatprep.subr.bf16.mxu0 %v2896_v0  ;;  %2863 = vmatprep.subr.bf16.mxu1 %v2896_v0  ;;  %s2871_s22 = smul.u32 288, %s3485_s12  ;;  %v2899_v3 = vld [vmem:[%s3477_s1 + $0x20] sm:$0xff]   ;;  %v2904_v6 = vld [vmem:[%s3477_s1 + $0x18] sm:$0xff]   ;;  %v2906_v10 = vld [vmem:[%s3477_s1 + $0x10] sm:$0xff]   ;;  %s2507_s26 = sshll.u32 %s3485_s12, 5 }
   0xe   : > { %2648 = vmatpush3.bf16.msra.mxu0 %v2896_v0  ;;  %2867 = vmatpush3.bf16.msra.mxu1 %v2896_v0  ;;  %v2905_v7 = vld [vmem:[%s3477_s1 + $0x78] sm:$0xff]   ;;  %v2907_v11 = vld [vmem:[%s3477_s1 + $0x70] sm:$0xff]   ;;  %v2912_v14 = vld [vmem:[%s3477_s1 + $0x8] sm:$0xff]   ;;  %s3432_s12 = scalar_lea.vmem %s3479_s3, %s2507_s26 }
   0xf   : > { %2649 = vmatprep.subr.bf16.mxu0 %v2897_v1  ;;  %2864 = vmatprep.subr.bf16.mxu1 %v2897_v1  ;;  %s3060_s27 = scalar_lea.vmem %s3476_s0, %s2871_s22  ;;  %v2913_v16 = vld [vmem:[%s3477_s1 + $0x68] sm:$0xff]   ;;  %v2914_v18 = vld [vmem:[%s3477_s1] sm:$0xff]   ;;  %v2920_v22 = vld [vmem:[%s3477_s1 + $0x98] sm:$0xff]  }
  0x10   : > { %v2900_v4 = vld [vmem:[%s3060_s27 + $0x48] sm:$0xff]   ;;  %v2902_v8 = vld [vmem:[%s3060_s27 + $0x50] sm:$0xff]   ;;  %v2908_v12 = vld [vmem:[%s3060_s27 + $0x58] sm:$0xff]  }
  0x11   : > { %v2901_v5 = vld [vmem:[%s3060_s27 + $0x68] sm:$0xff]   ;;  %2655 = vmatprep.mubr.msk.bf16.mxu0 %vm362_vm0, %v2900_v4  ;;  %v2903_v9 = vld [vmem:[%s3060_s27 + $0x70] sm:$0xff]   ;;  %v2909_v13 = vld [vmem:[%s3060_s27 + $0x78] sm:$0xff]  }
  0x12   : > { %2650 = vmatpush3.bf16.msra.mxu0 %v2897_v1  ;;  %2868 = vmatpush3.bf16.msra.mxu1 %v2897_v1  ;;  %v2910_v15 = vld [vmem:[%s3060_s27 + $0x60] sm:$0xff]   ;;  %v3104_v21 = vld [vmem:[%s3060_s27 + $0x90] sm:$0xff]   ;;  %v3112_v23 = vld [vmem:[%s3060_s27 + $0x8] sm:$0xff]  }
  0x13   : > { %2651 = vmatprep.subr.bf16.mxu0 %v2898_v2  ;;  %2865 = vmatprep.subr.bf16.mxu1 %v2898_v2  ;;  %v2911_v17 = vld [vmem:[%s3060_s27 + $0x80] sm:$0xff]   ;;  %v2921_v24 = vld [vmem:[%s3477_s1 + $0xd8] sm:$0xff]   ;;  %v3125_v26 = vld [vmem:[%s3060_s27 + $0x10] sm:$0xff]  }
  0x14   : > { %2663 = vmatprep.mubr.msk.bf16.mxu1 %vm362_vm0, %v2901_v5  ;;  %v2915_v19 = vld [vmem:[%s3477_s1 + $0x60] sm:$0xff]   ;;  %v3122_v25 = vld [vmem:[%s3060_s27 + $0x98] sm:$0xff]   ;;  %v2926_v28 = vld [vmem:[%s3477_s1 + $0x90] sm:$0xff]  }
  0x15   : > { %v3101_v20 = vld [vmem:[%s3060_s27] sm:$0xff]   ;;  %v2927_v29 = vld [vmem:[%s3477_s1 + $0xd0] sm:$0xff]   ;;  %v3145_v30 = vld [vmem:[%s3060_s27 + $0x18] sm:$0xff]  }
  0x16   : > { %2652 = vmatpush3.bf16.msra.mxu0 %v2898_v2  ;;  %2869 = vmatpush3.bf16.msra.mxu1 %v2898_v2  ;;  %v3128_v27 = vld [vmem:[%s3060_s27 + $0xa0] sm:$0xff]   ;;  %v3148_v31 = vld [vmem:[%s3060_s27 + $0xa8] sm:$0xff]   ;;  %v3160_v35 = vld [vmem:[%s3060_s27 + $0xb0] sm:$0xff]  }
  0x17   : > { %2653 = vmatprep.subr.bf16.mxu0 %v2899_v3  ;;  %2866 = vmatprep.subr.bf16.mxu1 %v2899_v3  ;;  %v2932_v32 = vld [vmem:[%s3477_s1 + $0x88] sm:$0xff]   ;;  %v3157_v34 = vld [vmem:[%s3060_s27 + $0x20] sm:$0xff]   ;;  %v3180_v39 = vld [vmem:[%s3060_s27 + $0xb8] sm:$0xff]  }
  0x18   : > { %v2933_v33 = vld [vmem:[%s3477_s1 + $0xc8] sm:$0xff]   ;;  %v2938_v36 = vld [vmem:[%s3477_s1 + $0x80] sm:$0xff]   ;;  %v3183_v40 = vld [vmem:[%s3060_s27 + $0x30] sm:$0xff]  }
  0x19   : > { %v2939_v37 = vld [vmem:[%s3477_s1 + $0xc0] sm:$0xff]   ;;  %v3177_v38 = vld [vmem:[%s3060_s27 + $0x28] sm:$0xff]   ;;  %v2944_v42 = vld [vmem:[%s3477_s1 + $0xf8] sm:$0xff]  }
  0x1a   : > { %2654 = vmatpush3.bf16.msra.mxu0 %v2899_v3  ;;  %2870 = vmatpush3.bf16.msra.mxu1 %v2899_v3  ;;  %v3186_v41 = vld [vmem:[%s3060_s27 + $0xc0] sm:$0xff]   ;;  %v2945_v43 = vld [vmem:[%s3477_s1 + $0xb8] sm:$0xff]   ;;  %v3206_v45 = vld [vmem:[%s3060_s27 + $0xc8] sm:$0xff]  }
  0x1b   : > { %2671 = vmatprep.subr.bf16.mxu1 %v2904_v6  ;;  %2695 = vmatprep.subr.bf16.mxu0 %v2905_v7  ;;  %v3203_v44 = vld [vmem:[%s3060_s27 + $0x38] sm:$0xff]   ;;  %v3210_v47 = vld [vmem:[%s3060_s27 + $0x8] sm:$0xff]   ;;  %v2942_v48 = vld [vmem:[%s3060_s27 + $0xe0] sm:$0xff]  }
  0x1c   : > { %v2940_v46 = vld [vmem:[%s3060_s27 + $0xd8] sm:$0xff]   ;;  %v3221_v49 = vld [vmem:[%s3060_s27 + $0x10] sm:$0xff]   ;;  %v2946_v50 = vld [vmem:[%s3060_s27 + $0xe8] sm:$0xff]  }
  0x1d   : > { %2656 = vmatmul.mubr.msk.bf16.vlgmr.msra.gmra.mxu0 %vm362_vm0, %v2902_v8  ;;  %2664 = vmatmul.mubr.msk.bf16.vlgmr.msra.gmra.mxu1 %vm362_vm0, %v2903_v9  ;;  %v3225_v51 = vld [vmem:[%s3060_s27 + $0x18] sm:$0xff]   ;;  %v2950_v52 = vld [vmem:[%s3477_s1 + $0xf0] sm:$0xff]   ;;  %v2956_v54 = vld [vmem:[%s3477_s1 + $0xe8] sm:$0xff]  }
  0x1e   : > { %2672 = vmatpush3.bf16.msra.mxu1 %v2904_v6  ;;  %2696 = vmatpush3.bf16.msra.mxu0 %v2905_v7  ;;  %v2951_v53 = vld [vmem:[%s3477_s1 + $0xb0] sm:$0xff]   ;;  %v2957_v56 = vld [vmem:[%s3477_s1 + $0xa8] sm:$0xff]   ;;  %v3247_v57 = vld [vmem:[%s3060_s27 + $0x20] sm:$0xff]  }
  0x1f   : > { %2673 = vmatprep.subr.bf16.mxu1 %v2906_v10  ;;  %2697 = vmatprep.subr.bf16.mxu0 %v2907_v11  ;;  %v2948_v55 = vld [vmem:[%s3060_s27 + $0xf0] sm:$0xff]   ;;  %v2952_v58 = vld [vmem:[%s3060_s27 + $0xf8] sm:$0xff]   ;;  %v3251_v59 = vld [vmem:[%s3060_s27 + $0x28] sm:$0xff]  }
  0x20   : > { %2659 = vmatprep.mubr.msk.bf16.mxu0 %vm362_vm0, %v2908_v12  ;;  %2667 = vmatprep.mubr.msk.bf16.mxu1 %vm362_vm0, %v2909_v13  ;;  %v2962_v60 = vld [vmem:[%s3477_s1 + $0xe0] sm:$0xff]   ;;  %v3267_v63 = vld [vmem:[%s3060_s27 + $0x30] sm:$0xff]   ;;  %v2966_v0 = vld [vmem:[%s3477_s1 + $0x58] sm:$0xff]  }
  0x21   : > { %v2963_v61 = vld [vmem:[%s3477_s1 + $0xa0] sm:$0xff]   ;;  %v2967_v1 = vld [vmem:[%s3477_s1 + $0x118] sm:$0xff]   ;;  %v2958_v2 = vld [vmem:[%s3060_s27 + $0x108] sm:$0xff]  }
  0x22   : > { %2674 = vmatpush3.bf16.msra.mxu1 %v2906_v10  ;;  %2698 = vmatpush3.bf16.msra.mxu0 %v2907_v11  ;;  %v2954_v62 = vld [vmem:[%s3060_s27 + $0x100] sm:$0xff]   ;;  %v3277_v3 = vld [vmem:[%s3060_s27 + $0x38] sm:$0xff]   ;;  %v2960_v4 = vld [vmem:[%s3060_s27 + $0x110] sm:$0xff]  }
  0x23   : > { %2675 = vmatprep.subr.bf16.mxu1 %v2912_v14  ;;  %2699 = vmatprep.subr.bf16.mxu0 %v2913_v16  ;;  %v2961_v5 = vld [vmem:[%s3060_s27 + $0x40] sm:$0xff]   ;;  %v2964_v6 = vld [vmem:[%s3060_s27 + $0x50] sm:$0xff]   ;;  %v2965_v7 = vld [vmem:[%s3060_s27 + $0x58] sm:$0xff]  }
  0x24   : > { %v2968_v8 = vld [vmem:[%s3060_s27 + $0x60] sm:$0xff]   ;;  %v2970_v9 = vld [vmem:[%s3477_s1 + $0x50] sm:$0xff]   ;;  %v2974_v11 = vld [vmem:[%s3477_s1 + $0x48] sm:$0xff]  }
  0x25   : > { %2660 = vmatmul.mubr.msk.bf16.gmra.mxu0 %vm362_vm0, %v2910_v15  ;;  %2668 = vmatmul.mubr.msk.bf16.gmra.mxu1 %vm362_vm0, %v2911_v17  ;;  %v2971_v10 = vld [vmem:[%s3477_s1 + $0x110] sm:$0xff]   ;;  %v2975_v12 = vld [vmem:[%s3477_s1 + $0x108] sm:$0xff]   ;;  %v2978_v15 = vld [vmem:[%s3477_s1 + $0x40] sm:$0xff]  }
  0x26   : > { %2676 = vmatpush3.bf16.msra.mxu1 %v2912_v14  ;;  %2700 = vmatpush3.bf16.msra.mxu0 %v2913_v16  ;;  %v2969_v13 = vld [vmem:[%s3060_s27 + $0x68] sm:$0xff]   ;;  %v2972_v14 = vld [vmem:[%s3060_s27 + $0x70] sm:$0xff]   ;;  %v2979_v16 = vld [vmem:[%s3477_s1 + $0x100] sm:$0xff]  }
  0x27   : > { %2677 = vmatprep.subr.bf16.mxu1 %v2914_v18  ;;  %2701 = vmatprep.subr.bf16.mxu0 %v2915_v19  ;;  %v2973_v17 = vld [vmem:[%s3060_s27 + $0x78] sm:$0xff]  }
  0x28   : > { %2679 = vmatprep.mubr.msk.bf16.mxu1 %vm362_vm0, %v3101_v20  ;;  %2703 = vmatprep.mubr.msk.bf16.mxu0 %vm362_vm0, %v3104_v21 }
  0x2a   : > { %2678 = vmatpush3.bf16.msra.mxu1 %v2914_v18  ;;  %2702 = vmatpush3.bf16.msra.mxu0 %v2915_v19  ;;  %v2976_v18 = vld [vmem:[%s3060_s27 + $0x80] sm:$0xff]   ;;  %v2977_v19 = vld [vmem:[%s3060_s27 + $0x88] sm:$0xff]  }
  0x2b   : > { %2719 = vmatprep.subr.bf16.mxu1 %v2920_v22  ;;  %2743 = vmatprep.subr.bf16.mxu0 %v2921_v24 }
  0x2d   : > { %2680 = vmatmul.mubr.msk.bf16.vlgmr.msra.gmra.mxu1 %vm362_vm0, %v3112_v23  ;;  %2704 = vmatmul.mubr.msk.bf16.vlgmr.msra.gmra.mxu0 %vm362_vm0, %v3122_v25 }
  0x2e   : > { %2720 = vmatpush3.bf16.msra.mxu1 %v2920_v22  ;;  %2744 = vmatpush3.bf16.msra.mxu0 %v2921_v24 }
  0x2f   : > { %2683 = vmatprep.mubr.msk.bf16.mxu1 %vm362_vm0, %v3125_v26  ;;  %2707 = vmatprep.mubr.msk.bf16.mxu0 %vm362_vm0, %v3128_v27 }
  0x30   : > { %2721 = vmatprep.subr.bf16.mxu1 %v2926_v28  ;;  %2745 = vmatprep.subr.bf16.mxu0 %v2927_v29 }
  0x32   : > { %2722 = vmatpush3.bf16.msra.mxu1 %v2926_v28  ;;  %2746 = vmatpush3.bf16.msra.mxu0 %v2927_v29 }
  0x33   : > { %2723 = vmatprep.subr.bf16.mxu1 %v2932_v32  ;;  %2747 = vmatprep.subr.bf16.mxu0 %v2933_v33 }
  0x35   : > { %2684 = vmatmul.mubr.msk.bf16.gmra.mxu1 %vm362_vm0, %v3145_v30  ;;  %2708 = vmatmul.mubr.msk.bf16.gmra.mxu0 %vm362_vm0, %v3148_v31 }
  0x36   : > { %2687 = vmatprep.mubr.msk.bf16.mxu1 %vm362_vm0, %v3157_v34  ;;  %2711 = vmatprep.mubr.msk.bf16.mxu0 %vm362_vm0, %v3160_v35 }
  0x37   : > { %2724 = vmatpush3.bf16.msra.mxu1 %v2932_v32  ;;  %2748 = vmatpush3.bf16.msra.mxu0 %v2933_v33 }
  0x38   : > { %2725 = vmatprep.subr.bf16.mxu1 %v2938_v36  ;;  %2749 = vmatprep.subr.bf16.mxu0 %v2939_v37 }
  0x3b   : > { %2726 = vmatpush3.bf16.msra.mxu1 %v2938_v36  ;;  %2750 = vmatpush3.bf16.msra.mxu0 %v2939_v37 }
  0x3c   : > { %2767 = vmatprep.subr.bf16.mxu1 %v2944_v42  ;;  %2791 = vmatprep.subr.bf16.mxu0 %v2945_v43 }
  0x3d   : > { %2688 = vmatmul.mubr.msk.bf16.gmra.mxu1 %vm362_vm0, %v3177_v38  ;;  %2712 = vmatmul.mubr.msk.bf16.gmra.mxu0 %vm362_vm0, %v3180_v39 }
  0x3e   : > { %2691 = vmatprep.mubr.msk.bf16.mxu1 %vm362_vm0, %v3183_v40  ;;  %2715 = vmatprep.mubr.msk.bf16.mxu0 %vm362_vm0, %v3186_v41 }
  0x45   : > { %2692 = vmatmul.mubr.msk.bf16.gmra.mxu1 %vm362_vm0, %v3203_v44  ;;  %2716 = vmatmul.mubr.msk.bf16.gmra.mxu0 %vm362_vm0, %v3206_v45 }
  0x46   : > { %2727 = vmatprep.mubr.msk.bf16.mxu1 %vm362_vm0, %v2940_v46  ;;  %2751 = vmatprep.mubr.msk.bf16.mxu0 %vm362_vm0, %v3210_v47 }
  0x4d   : > { %2728 = vmatmul.mubr.msk.bf16.vlgmr.msra.gmra.mxu1 %vm362_vm0, %v2942_v48  ;;  %2752 = vmatmul.mubr.msk.bf16.vlgmr.msra.gmra.mxu0 %vm362_vm0, %v3221_v49 }
  0x4e   : > { %2768 = vmatpush3.bf16.msra.mxu1 %v2944_v42  ;;  %2792 = vmatpush3.bf16.msra.mxu0 %v2945_v43 }
  0x4f   : > { %2731 = vmatprep.mubr.msk.bf16.mxu1 %vm362_vm0, %v2946_v50  ;;  %2755 = vmatprep.mubr.msk.bf16.mxu0 %vm362_vm0, %v3225_v51 }
  0x50   : > { %2769 = vmatprep.subr.bf16.mxu1 %v2950_v52  ;;  %2793 = vmatprep.subr.bf16.mxu0 %v2951_v53 }
  0x52   : > { %2770 = vmatpush3.bf16.msra.mxu1 %v2950_v52  ;;  %2794 = vmatpush3.bf16.msra.mxu0 %v2951_v53 }
  0x53   : > { %2771 = vmatprep.subr.bf16.mxu1 %v2956_v54  ;;  %2795 = vmatprep.subr.bf16.mxu0 %v2957_v56 }
  0x55   : > { %2732 = vmatmul.mubr.msk.bf16.gmra.mxu1 %vm362_vm0, %v2948_v55  ;;  %2756 = vmatmul.mubr.msk.bf16.gmra.mxu0 %vm362_vm0, %v3247_v57 }
  0x56   : > { %2735 = vmatprep.mubr.msk.bf16.mxu1 %vm362_vm0, %v2952_v58  ;;  %2759 = vmatprep.mubr.msk.bf16.mxu0 %vm362_vm0, %v3251_v59 }
  0x57   : > { %2772 = vmatpush3.bf16.msra.mxu1 %v2956_v54  ;;  %2796 = vmatpush3.bf16.msra.mxu0 %v2957_v56 }
  0x58   : > { %2773 = vmatprep.subr.bf16.mxu1 %v2962_v60  ;;  %2797 = vmatprep.subr.bf16.mxu0 %v2963_v61 }
  0x5b   : > { %2774 = vmatpush3.bf16.msra.mxu1 %v2962_v60  ;;  %2798 = vmatpush3.bf16.msra.mxu0 %v2963_v61 }
  0x5c   : > { %2815 = vmatprep.subr.bf16.mxu1 %v2966_v0  ;;  %2839 = vmatprep.subr.bf16.mxu0 %v2967_v1 }
  0x5d   : > { %2736 = vmatmul.mubr.msk.bf16.gmra.mxu1 %vm362_vm0, %v2954_v62  ;;  %2760 = vmatmul.mubr.msk.bf16.gmra.mxu0 %vm362_vm0, %v3267_v63 }
  0x5e   : > { %2739 = vmatprep.mubr.msk.bf16.mxu1 %vm362_vm0, %v2958_v2  ;;  %2763 = vmatprep.mubr.msk.bf16.mxu0 %vm362_vm0, %v3277_v3 }
  0x65   : > { %2740 = vmatmul.mubr.msk.bf16.gmra.mxu1 %vm362_vm0, %v2960_v4  ;;  %2764 = vmatmul.mubr.msk.bf16.gmra.mxu0 %vm362_vm0, %v2961_v5 }
  0x66   : > { %2775 = vmatprep.mubr.msk.bf16.mxu1 %vm362_vm0, %v2964_v6  ;;  %2799 = vmatprep.mubr.msk.bf16.mxu0 %vm362_vm0, %v3104_v21 }
  0x6d   : > { %2776 = vmatmul.mubr.msk.bf16.vlgmr.msra.gmra.mxu1 %vm362_vm0, %v2965_v7  ;;  %2800 = vmatmul.mubr.msk.bf16.vlgmr.msra.gmra.mxu0 %vm362_vm0, %v3122_v25 }
  0x6e   : > { %2816 = vmatpush3.bf16.msra.mxu1 %v2966_v0  ;;  %2840 = vmatpush3.bf16.msra.mxu0 %v2967_v1 }
  0x6f   : > { %2779 = vmatprep.mubr.msk.bf16.mxu1 %vm362_vm0, %v2968_v8  ;;  %2803 = vmatprep.mubr.msk.bf16.mxu0 %vm362_vm0, %v3128_v27 }
  0x70   : > { %2817 = vmatprep.subr.bf16.mxu1 %v2970_v9  ;;  %2841 = vmatprep.subr.bf16.mxu0 %v2971_v10 }
  0x72   : > { %2818 = vmatpush3.bf16.msra.mxu1 %v2970_v9  ;;  %2842 = vmatpush3.bf16.msra.mxu0 %v2971_v10 }
  0x73   : > { %2819 = vmatprep.subr.bf16.mxu1 %v2974_v11  ;;  %2843 = vmatprep.subr.bf16.mxu0 %v2975_v12 }
  0x75   : > { %2780 = vmatmul.mubr.msk.bf16.gmra.mxu1 %vm362_vm0, %v2969_v13  ;;  %2804 = vmatmul.mubr.msk.bf16.gmra.mxu0 %vm362_vm0, %v3148_v31 }
  0x76   : > { %2783 = vmatprep.mubr.msk.bf16.mxu1 %vm362_vm0, %v2972_v14  ;;  %2807 = vmatprep.mubr.msk.bf16.mxu0 %vm362_vm0, %v3160_v35 }
  0x77   : > { %2820 = vmatpush3.bf16.msra.mxu1 %v2974_v11  ;;  %2844 = vmatpush3.bf16.msra.mxu0 %v2975_v12 }
  0x78   : > { %2821 = vmatprep.subr.bf16.mxu1 %v2978_v15  ;;  %2845 = vmatprep.subr.bf16.mxu0 %v2979_v16 }
  0x7b   : > { %2822 = vmatpush3.bf16.msra.mxu1 %v2978_v15  ;;  %2846 = vmatpush3.bf16.msra.mxu0 %v2979_v16 }
  0x7d   : > { %2784 = vmatmul.mubr.msk.bf16.gmra.mxu1 %vm362_vm0, %v2973_v17  ;;  %2808 = vmatmul.mubr.msk.bf16.gmra.mxu0 %vm362_vm0, %v3180_v39 }
  0x7e   : > { %2787 = vmatprep.mubr.msk.bf16.mxu1 %vm362_vm0, %v2976_v18  ;;  %2811 = vmatprep.mubr.msk.bf16.mxu0 %vm362_vm0, %v3186_v41 }
  0x85   : > { %2788 = vmatmul.mubr.msk.bf16.gmra.mxu1 %vm362_vm0, %v2977_v19  ;;  %2812 = vmatmul.mubr.msk.bf16.gmra.mxu0 %vm362_vm0, %v3206_v45 }
  0x86   : > { %2823 = vmatprep.mubr.msk.bf16.mxu1 %vm362_vm0, %v3101_v20  ;;  %2847 = vmatprep.mubr.msk.bf16.mxu0 %vm362_vm0, %v3210_v47 }
  0x8d   : > { %2824 = vmatmul.mubr.msk.bf16.vlgmr.msra.gmra.mxu1 %vm362_vm0, %v3112_v23  ;;  %2848 = vmatmul.mubr.msk.bf16.vlgmr.msra.gmra.mxu0 %vm362_vm0, %v3221_v49 }
  0x8e   : > { %2827 = vmatprep.mubr.msk.bf16.mxu1 %vm362_vm0, %v3125_v26  ;;  %2851 = vmatprep.mubr.msk.bf16.mxu0 %vm362_vm0, %v3225_v51 }
  0x95   : > { %2828 = vmatmul.mubr.msk.bf16.gmra.mxu1 %vm362_vm0, %v3145_v30  ;;  %2852 = vmatmul.mubr.msk.bf16.gmra.mxu0 %vm362_vm0, %v3247_v57 }
  0x96   : > { %2831 = vmatprep.mubr.msk.bf16.mxu1 %vm362_vm0, %v3157_v34  ;;  %2855 = vmatprep.mubr.msk.bf16.mxu0 %vm362_vm0, %v3251_v59 }
  0x9d   : > { %2832 = vmatmul.mubr.msk.bf16.gmra.mxu1 %vm362_vm0, %v3177_v38  ;;  %2856 = vmatmul.mubr.msk.bf16.gmra.mxu0 %vm362_vm0, %v3267_v63 }
  0x9e   : > { %2835 = vmatprep.mubr.msk.bf16.mxu1 %vm362_vm0, %v3183_v40  ;;  %2859 = vmatprep.mubr.msk.bf16.mxu0 %vm362_vm0, %v3277_v3 }
  0xa5   : > { %2836 = vmatmul.mubr.msk.bf16.gmra.mxu1 %vm362_vm0, %v3203_v44  ;;  %2860 = vmatmul.mubr.msk.bf16.gmra.mxu0 %vm362_vm0, %v2961_v5 }
  0xdd   : > { %v2657_v20 = vpop.f32.mrf.mxu0  ;;  %v2665_v21 = vpop.f32.mrf.mxu1 }
  0xdf   : > { %v421_v22 = vpop.f32.mrf.mxu0  ;;  %v449_v23 = vpop.f32.mrf.mxu1 }
  0xe1   : > { %v2658_v24 = vpop.f32.mrf.mxu0  ;;  %v2666_v25 = vpop.f32.mrf.mxu1 }
  0xe3   : > { %v424_v26 = vpop.f32.mrf.mxu0  ;;  %v452_v27 = vpop.f32.mrf.mxu1 }
  0xe5   : > { %v2661_v28 = vpop.f32.mrf.mxu0  ;;  %v2669_v29 = vpop.f32.mrf.mxu1 }
  0xe7   : > { %v435_v30 = vpop.f32.mrf.mxu0  ;;  %v463_v31 = vpop.f32.mrf.mxu1 }
  0xe9   : > { %v2662_v32 = vpop.f32.mrf.mxu0  ;;  %v2670_v33 = vpop.f32.mrf.mxu1 }
  0xeb   : > { %v438_v34 = vpop.f32.mrf.mxu0  ;;  %v466_v35 = vpop.f32.mrf.mxu1 }
  0xed   : > { %v2681_v36 = vpop.f32.mrf.mxu1  ;;  %v2705_v37 = vpop.f32.mrf.mxu0 }
  0xee   : > { %v606_v38 = vadd.f32 %v2681_v36, %v2657_v20 }
  0xef   : > { %v598_v39 = vpop.f32.mrf.mxu1  ;;  %v804_v40 = vpop.f32.mrf.mxu0 }
  0xf0   : > { %v860_v41 = vadd.f32 %v2705_v37, %v606_v38  ;;  %v599_v42 = vadd.f32 %v598_v39, %v421_v22 }
  0xf1   : > { %v2682_v43 = vpop.f32.mrf.mxu1  ;;  %v2706_v44 = vpop.f32.mrf.mxu0 }
  0xf2   : > { %v859_v45 = vadd.f32 %v804_v40, %v599_v42 }
  0xf3   : > { %v601_v46 = vpop.f32.mrf.mxu1  ;;  %v807_v47 = vpop.f32.mrf.mxu0 }
  0xf5   : > { %v2685_v48 = vpop.f32.mrf.mxu1  ;;  %v2709_v49 = vpop.f32.mrf.mxu0 }
  0xf6   : > { %v620_v50 = vadd.f32 %v2685_v48, %v2661_v28 }
  0xf7   : > { %v612_v51 = vpop.f32.mrf.mxu1  ;;  %v818_v52 = vpop.f32.mrf.mxu0 }
  0xf8   : > { %v862_v53 = vadd.f32 %v2709_v49, %v620_v50  ;;  %v613_v54 = vadd.f32 %v612_v51, %v435_v30 }
  0xf9   : > { %v2686_v55 = vpop.f32.mrf.mxu1  ;;  %v2710_v56 = vpop.f32.mrf.mxu0 }
  0xfa   : > { %v861_v57 = vadd.f32 %v818_v52, %v613_v54 }
  0xfb   : > { %v615_v58 = vpop.f32.mrf.mxu1  ;;  %v821_v59 = vpop.f32.mrf.mxu0 }
  0xfd   : > { %v2689_v60 = vpop.f32.mrf.mxu1  ;;  %v2713_v61 = vpop.f32.mrf.mxu0 }
  0xfe   : > { %v634_v62 = vadd.f32 %v2689_v60, %v2665_v21 }
  0xff   : > { %v626_v63 = vpop.f32.mrf.mxu1  ;;  %v832_v0 = vpop.f32.mrf.mxu0 }
 0x100   : > { %v864_v1 = vadd.f32 %v2713_v61, %v634_v62  ;;  %v627_v2 = vadd.f32 %v626_v63, %v449_v23 }
 0x101   : > { %v2690_v3 = vpop.f32.mrf.mxu1  ;;  %v2714_v4 = vpop.f32.mrf.mxu0 }
 0x102   : > { %v863_v5 = vadd.f32 %v832_v0, %v627_v2 }
 0x103   : > { %v629_v6 = vpop.f32.mrf.mxu1  ;;  %v835_v7 = vpop.f32.mrf.mxu0 }
 0x105   : > { %v2693_v8 = vpop.f32.mrf.mxu1  ;;  %v2717_v9 = vpop.f32.mrf.mxu0 }
 0x106   : > { %v648_v10 = vadd.f32 %v2693_v8, %v2669_v29 }
 0x107   : > { %v640_v11 = vpop.f32.mrf.mxu1  ;;  %v846_v12 = vpop.f32.mrf.mxu0 }
 0x108   : > { %v866_v13 = vadd.f32 %v2717_v9, %v648_v10  ;;  %v641_v14 = vadd.f32 %v640_v11, %v463_v31 }
 0x109   : > { %v2694_v15 = vpop.f32.mrf.mxu1  ;;  %v2718_v16 = vpop.f32.mrf.mxu0 }
 0x10a   : > { %v865_v17 = vadd.f32 %v846_v12, %v641_v14 }
 0x10b   : > { %v643_v18 = vpop.f32.mrf.mxu1  ;;  %v849_v19 = vpop.f32.mrf.mxu0 }
 0x10d   : > { %v2729_v20 = vpop.f32.mrf.mxu1  ;;  %v2753_v21 = vpop.f32.mrf.mxu0 }
 0x10e   : > { %v1074_v22 = vadd.f32 %v2729_v20, %v860_v41 }
 0x10f   : > { %v1018_v23 = vpop.f32.mrf.mxu1  ;;  %v1232_v24 = vpop.f32.mrf.mxu0 }
 0x110   : > { %v3370_v25 = vadd.f32 %v2753_v21, %v1074_v22  ;;  %v1073_v26 = vadd.f32 %v1018_v23, %v859_v45 }
 0x111   : > { %v2730_v27 = vpop.f32.mrf.mxu1  ;;  %v2754_v28 = vpop.f32.mrf.mxu0 }
 0x112   : > { %v3372_v29 = vadd.f32 %v1232_v24, %v1073_v26 }
 0x113   : > { %v1021_v30 = vpop.f32.mrf.mxu1  ;;  %v1235_v32 = vpop.f32.mrf.mxu0 }
 0x115   : > { %v2733_v31 = vpop.f32.mrf.mxu1  ;;  %v2757_v33 = vpop.f32.mrf.mxu0 }
 0x116   : > { %v1076_v34 = vadd.f32 %v2733_v31, %v862_v53 }
 0x117   : > { %v1032_v35 = vpop.f32.mrf.mxu1  ;;  %v1246_v36 = vpop.f32.mrf.mxu0 }
 0x118   : > { %v3374_v37 = vadd.f32 %v2757_v33, %v1076_v34  ;;  %v1075_v38 = vadd.f32 %v1032_v35, %v861_v57 }
 0x119   : > { %v2734_v39 = vpop.f32.mrf.mxu1  ;;  %v2758_v40 = vpop.f32.mrf.mxu0 }
 0x11a   : > { %v3376_v41 = vadd.f32 %v1246_v36, %v1075_v38 }
 0x11b   : > { %v1035_v42 = vpop.f32.mrf.mxu1  ;;  %v1249_v43 = vpop.f32.mrf.mxu0 }
 0x11d   : > { %v2737_v44 = vpop.f32.mrf.mxu1  ;;  %v2761_v45 = vpop.f32.mrf.mxu0 }
 0x11e   : > { %v1078_v46 = vadd.f32 %v2737_v44, %v864_v1 }
 0x11f   : > { %v1046_v47 = vpop.f32.mrf.mxu1  ;;  %v1260_v48 = vpop.f32.mrf.mxu0 }
 0x120   : > { %v3378_v49 = vadd.f32 %v2761_v45, %v1078_v46  ;;  %v1077_v50 = vadd.f32 %v1046_v47, %v863_v5 }
 0x121   : > { %v2738_v51 = vpop.f32.mrf.mxu1  ;;  %v2762_v52 = vpop.f32.mrf.mxu0 }
 0x122   : > { %v3380_v53 = vadd.f32 %v1260_v48, %v1077_v50 }
 0x123   : > { %v1049_v54 = vpop.f32.mrf.mxu1  ;;  %v1263_v55 = vpop.f32.mrf.mxu0 }
 0x125   : > { %v2741_v56 = vpop.f32.mrf.mxu1  ;;  %v2765_v57 = vpop.f32.mrf.mxu0 }
 0x126   : > { %v1080_v58 = vadd.f32 %v2741_v56, %v866_v13 }
 0x127   : > { %v1060_v59 = vpop.f32.mrf.mxu1  ;;  %v1274_v60 = vpop.f32.mrf.mxu0 }
 0x128   : > { %v3382_v61 = vadd.f32 %v2765_v57, %v1080_v58  ;;  %v1079_v62 = vadd.f32 %v1060_v59, %v865_v17 }
 0x129   : > { %v2742_v63 = vpop.f32.mrf.mxu1  ;;  %v2766_v0 = vpop.f32.mrf.mxu0 }
 0x12a   : > { %v3384_v1 = vadd.f32 %v1274_v60, %v1079_v62 }
 0x12b   : > { %v1063_v2 = vpop.f32.mrf.mxu1  ;;  %v1277_v3 = vpop.f32.mrf.mxu0 }
 0x12d   : > { %v2777_v4 = vpop.f32.mrf.mxu1  ;;  %v2801_v5 = vpop.f32.mrf.mxu0 }
 0x12e   : > { %v1502_v0 = vadd.f32 %v2777_v4, %v3370_v25 }
 0x12f   : > { %v1446_v6 = vpop.f32.mrf.mxu1  ;;  %v1593_v7 = vpop.f32.mrf.mxu0 }
 0x131   : > { %v2778_v8 = vpop.f32.mrf.mxu1  ;;  %v2802_v9 = vpop.f32.mrf.mxu0 }
 0x132   : > { %v3419_v8 = vld [vmem:[%s3478_s2] ss:$0 sm:$0xff] }
 0x133   : > { %v1449_v10 = vpop.f32.mrf.mxu1  ;;  %v1596_v11 = vpop.f32.mrf.mxu0 }
 0x135   : > { %v3386_v12 = vpop.f32.mrf.mxu1  ;;  %v2805_v13 = vpop.f32.mrf.mxu0 }
 0x137   : > { %v3388_v14 = vpop.f32.mrf.mxu1  ;;  %v1609_v15 = vpop.f32.mrf.mxu0 }
 0x139   : > { %v2782_v16 = vpop.f32.mrf.mxu1  ;;  %v2806_v17 = vpop.f32.mrf.mxu0 }
 0x13b   : > { %v1463_v18 = vpop.f32.mrf.mxu1  ;;  %v1612_v19 = vpop.f32.mrf.mxu0 }
 0x13d   : > { %v3390_v20 = vpop.f32.mrf.mxu1  ;;  %v3392_v21 = vpop.f32.mrf.mxu0 }
 0x13f   : > { %v3394_v22 = vpop.f32.mrf.mxu1  ;;  %v3396_v23 = vpop.f32.mrf.mxu0 }
 0x141   : > { %v2786_v24 = vpop.f32.mrf.mxu1  ;;  %v3398_v26 = vpop.f32.mrf.mxu0 }
 0x143   : > { %v1477_v27 = vpop.f32.mrf.mxu1  ;;  %v3400_v28 = vpop.f32.mrf.mxu0 }
 0x145   : > { %v3402_v30 = vpop.f32.mrf.mxu1  ;;  %v3404_v32 = vpop.f32.mrf.mxu0 }
 0x147   : > { %v3406_v31 = vpop.f32.mrf.mxu1  ;;  %v3408_v33 = vpop.f32.mrf.mxu0 }
 0x149   : > { %v2790_v34 = vpop.f32.mrf.mxu1  ;;  %v3410_v35 = vpop.f32.mrf.mxu0 }
 0x14b   : > { %v1491_v36 = vpop.f32.mrf.mxu1  ;;  %v3412_v38 = vpop.f32.mrf.mxu0 }
 0x14d   : > { %v2825_v39 = vpop.f32.mrf.mxu1  ;;  %v2849_v40 = vpop.f32.mrf.mxu0 }
 0x14e   : > { %v1723_v42 = vadd.f32 %v2825_v39, %v2801_v5 }
 0x14f   : > { %v1714_v43 = vpop.f32.mrf.mxu1  ;;  %v1844_v44 = vpop.f32.mrf.mxu0 }
 0x150   : > { %v1715_v45 = vadd.f32 %v1714_v43, %v1593_v7  ;;  %v1909_v48 = vadd.f32 %v2849_v40, %v1723_v42 }
 0x151   : > { %v2826_v46 = vpop.f32.mrf.mxu1  ;;  %v2850_v47 = vpop.f32.mrf.mxu0 }
 0x152   : > { %v1726_v50 = vadd.f32 %v2826_v46, %v2802_v9  ;;  %v1907_v54 = vadd.f32 %v1844_v44, %v1715_v45  ;;  %v1943_v59 = vrot.slane %v1909_v48, 1 }
 0x153   : > { %v1717_v51 = vpop.f32.mrf.mxu1  ;;  %v1847_v52 = vpop.f32.mrf.mxu0 }
 0x154   : > { %v1910_v55 = vadd.f32 %v2850_v47, %v1726_v50  ;;  %v1718_v56 = vadd.f32 %v1717_v51, %v1596_v11  ;;  %v1940_v5 = vrot.slane %v1907_v54, 1  ;;  %v1501_v11 = vadd.f32 %v1446_v6, %v3372_v29 }
 0x155   : > { %v2829_v57 = vpop.f32.mrf.mxu1  ;;  %v2853_v58 = vpop.f32.mrf.mxu0 }
 0x156   : > { %v1944_v60 = vrot.slane %v1910_v55, 1  ;;  %v1908_v62 = vadd.f32 %v1847_v52, %v1718_v56  ;;  %v1739_v63 = vadd.f32 %v2829_v57, %v2805_v13 }
 0x157   : > { %v1730_v2 = vpop.f32.mrf.mxu1  ;;  %v1860_v3 = vpop.f32.mrf.mxu0 }
 0x158   : > { %v1945_v7 = vsel %vm1939_vm1, %v1943_v59, %v1944_v60  ;;  %v1941_v9 = vrot.slane %v1908_v62, 1  ;;  %v1731_v10 = vadd.f32 %v1730_v2, %v1609_v15  ;;  %v1913_v4 = vadd.f32 %v2853_v58, %v1739_v63 }
 0x159   : > { %v1973_v16 = vadd.f32 %v1945_v7, %v1502_v0  ;;  %v2830_v18 = vpop.f32.mrf.mxu1  ;;  %v2854_v13 = vpop.f32.mrf.mxu0 }
 0x15a   : > { %v1942_v25 = vsel %vm1939_vm1, %v1940_v5, %v1941_v9  ;;  %v1742_v24 = vadd.f32 %v2830_v18, %v2806_v17  ;;  %v1911_v40 = vadd.f32 %v1860_v3, %v1731_v10  ;;  %v1949_v6 = vrot.slane %v1913_v4, 1 }
 0x15b   : > { %v1988_v27 = vadd.f32 %v3419_v8, %v1973_v16  ;;  %v1972_v34 = vadd.f32 %v1942_v25, %v1501_v11  ;;  %v1733_v36 = vpop.f32.mrf.mxu1  ;;  %v1863_v39 = vpop.f32.mrf.mxu0  ;;  %v1504_v17 = vadd.f32 %v3386_v12, %v3374_v37 }
 0x15c   : > { %v1914_v42 = vadd.f32 %v2854_v13, %v1742_v24  ;;  %v1734_v43 = vadd.f32 %v1733_v36, %v1612_v19  ;;  %v1946_v19 = vrot.slane %v1911_v40, 1 }
 0x15d   : > { %v1987_v15 = vadd.f32 %v3419_v8, %v1972_v34  ;;  %v2833_v44 = vpop.f32.mrf.mxu1  ;;  %v2857_v29 = vpop.f32.mrf.mxu0  ;;  %v1996_v48 = vmax.f32 %v1988_v27, 0.0 }
 0x15e   : > { %v1950_v45 = vrot.slane %v1914_v42, 1  ;;  %v1912_v46 = vadd.f32 %v1863_v39, %v1734_v43  ;;  %v1755_v47 = vadd.f32 %v2833_v44, %v3392_v21  ;;  %v1503_v21 = vadd.f32 %v3388_v14, %v3376_v41 }
 0x15f   : > { %v1995_v50 = vmax.f32 %v1987_v15, 0.0  ;;  %v1746_v51 = vpop.f32.mrf.mxu1  ;;  %v1876_v52 = vpop.f32.mrf.mxu0  ;;  %v1505_v39 = vadd.f32 %v3394_v22, %v3380_v53 }
 0x160   : > { %v1951_v54 = vsel %vm1939_vm1, %v1949_v6, %v1950_v45  ;;  %v1947_v55 = vrot.slane %v1912_v46, 1  ;;  %v1747_v56 = vadd.f32 %v1746_v51, %v3396_v23  ;;  %v1917_v60 = vadd.f32 %v2857_v29, %v1755_v47 }
 0x161   : > { %v2519_v37 = vpack.c.bf16 %v1996_v48, %v1995_v50  ;;  %v1975_v12 = vadd.f32 %v1951_v54, %v1504_v17  ;;  %v2834_v57 = vpop.f32.mrf.mxu1  ;;  %v2858_v58 = vpop.f32.mrf.mxu0  ;;  %v1508_v50 = vadd.f32 %v3402_v30, %v3382_v61 }
 0x162   : > { %v1948_v59 = vsel %vm1939_vm1, %v1946_v19, %v1947_v55  ;;  %v1758_v62 = vadd.f32 %v2834_v57, %v3398_v26  ;;  %v1915_v5 = vadd.f32 %v1876_v52, %v1747_v56  ;;  %v1955_v10 = vrot.slane %v1917_v60, 1 }
 0x163   : > { %2520 = vst [vmem:[%s3432_s12] sm:$0xff] %v2519_v37   ;;  %v1990_v63 = vadd.f32 %v3419_v8, %v1975_v12  ;;  %v1974_v0 = vadd.f32 %v1948_v59, %v1503_v21  ;;  %v1749_v2 = vpop.f32.mrf.mxu1  ;;  %v1879_v3 = vpop.f32.mrf.mxu0  ;;  %v1506_v26 = vadd.f32 %v3390_v20, %v3378_v49 }
 0x164   : > { %v1918_v23 = vadd.f32 %v2858_v58, %v1758_v62  ;;  %v1750_v7 = vadd.f32 %v1749_v2, %v3400_v28  ;;  %v1952_v27 = vrot.slane %v1915_v5, 1 }
 0x165   : > { %v1989_v41 = vadd.f32 %v3419_v8, %v1974_v0  ;;  %v2837_v14 = vpop.f32.mrf.mxu1  ;;  %v2861_v9 = vpop.f32.mrf.mxu0  ;;  %v1998_v13 = vmax.f32 %v1990_v63, 0.0 }
 0x166   : > { %v1956_v11 = vrot.slane %v1918_v23, 1  ;;  %v1916_v16 = vadd.f32 %v1879_v3, %v1750_v7  ;;  %v1771_v18 = vadd.f32 %v2837_v14, %v3404_v32 }
 0x167   : > { %v1997_v25 = vmax.f32 %v1989_v41, 0.0  ;;  %v1762_v4 = vpop.f32.mrf.mxu1  ;;  %v1892_v24 = vpop.f32.mrf.mxu0 }
 0x168   : > { %v1957_v28 = vsel %vm1939_vm1, %v1955_v10, %v1956_v11  ;;  %v1953_v34 = vrot.slane %v1916_v16, 1  ;;  %v1763_v36 = vadd.f32 %v1762_v4, %v3408_v33  ;;  %v1921_v20 = vadd.f32 %v2861_v9, %v1771_v18 }
 0x169   : > { %v2524_v40 = vpack.c.bf16 %v1998_v13, %v1997_v25  ;;  %v1977_v42 = vadd.f32 %v1957_v28, %v1506_v26  ;;  %v2838_v32 = vpop.f32.mrf.mxu1  ;;  %v2862_v43 = vpop.f32.mrf.mxu0 }
 0x16a   : > { %v1954_v49 = vsel %vm1939_vm1, %v1952_v27, %v1953_v34  ;;  %v1774_v15 = vadd.f32 %v2838_v32, %v3410_v35  ;;  %v1919_v45 = vadd.f32 %v1892_v24, %v1763_v36  ;;  %v1961_v47 = vrot.slane %v1921_v20, 1 }
 0x16b   : > { %2536 = vst [vmem:[%s3432_s12 + $0x8] sm:$0xff] %v2524_v40   ;;  %v1992_v44 = vadd.f32 %v3419_v8, %v1977_v42  ;;  %v1976_v29 = vadd.f32 %v1954_v49, %v1505_v39  ;;  %v1765_v6 = vpop.f32.mrf.mxu1  ;;  %v1895_v22 = vpop.f32.mrf.mxu0 }
 0x16c   : > { %v1922_v46 = vadd.f32 %v2862_v43, %v1774_v15  ;;  %v1766_v33 = vadd.f32 %v1765_v6, %v3412_v38  ;;  %v1958_v52 = vrot.slane %v1919_v45, 1  ;;  %v1507_v38 = vadd.f32 %v3406_v31, %v3384_v1 }
 0x16d   : > { %v1991_v53 = vadd.f32 %v3419_v8, %v1976_v29  ;;  %v2000_v35 = vmax.f32 %v1992_v44, 0.0 }
 0x16e   : > { %v1962_v17 = vrot.slane %v1922_v46, 1  ;;  %v1920_v48 = vadd.f32 %v1895_v22, %v1766_v33 }
 0x16f   : > { %v1999_v51 = vmax.f32 %v1991_v53, 0.0 }
 0x170   : > { %v1963_v19 = vsel %vm1939_vm1, %v1961_v47, %v1962_v17  ;;  %v1959_v54 = vrot.slane %v1920_v48, 1 }
 0x171   : > { %v2529_v55 = vpack.c.bf16 %v2000_v35, %v1999_v51  ;;  %v1979_v56 = vadd.f32 %v1963_v19, %v1508_v50 }
 0x172   : > { %v1960_v21 = vsel %vm1939_vm1, %v1958_v52, %v1959_v54 }
 0x173   : > { %2537 = vst [vmem:[%s3432_s12 + $0x10] sm:$0xff] %v2529_v55   ;;  %v1994_v37 = vadd.f32 %v3419_v8, %v1979_v56  ;;  %v1978_v12 = vadd.f32 %v1960_v21, %v1507_v38 }
 0x175   : > { %v1993_v61 = vadd.f32 %v3419_v8, %v1978_v12  ;;  %v2002_v30 = vmax.f32 %v1994_v37, 0.0 }
 0x177   : > { %v2001_v57 = vmax.f32 %v1993_v61, 0.0 }
 0x179   : > { %v2534_v58 = vpack.c.bf16 %v2002_v30, %v2001_v57 }
 0x17b   : > { %2538 = vst [vmem:[%s3432_s12 + $0x18] sm:$0xff] %v2534_v58  }
 0x17c PF: > { %s13_s14 = sadd.s32 1, %s3002_s14   ;;  %s3480_s12 = smov %s2998_s13 }
 0x17d   : > { %p10_p5 = scmp.ge.s32.totalorder %s13_s14, 4   ;;  %s3481_s13 = smov %s3483_s15 }
 0x17f   :  { %12 = sbr.rel (!%p10_p5) target bundleno = 2 (0x2), region = 82 }

</bundles_post_ra>
